<compile_context>
chip_gen: v6e
topology: v6e:2x2x1
jax: 0.10.0
libtpu: 0.0.40
codegen_flags: <defaults>
</compile_context>

<pallas_src>
import functools
import math

import jax
import jax.numpy as jnp
import numpy as np
from jax import lax
from jax.experimental import pallas as pl
from jax.experimental.pallas import tpu as pltpu

NUM_HEADS = 8
BN_EPS = 1e-5


# ----------------------------- helpers ---------------------------------------

def _shift_matrices(H, W):
    """M[t] is (S,S) 0/1 with (x @ M[t])[c, s] == zero-padded 3x3 tap-t sample."""
    S = H * W
    m = np.zeros((9, S, S), np.float32)
    for ky in range(3):
        for kx in range(3):
            t = ky * 3 + kx
            dy, dx = ky - 1, kx - 1
            for y in range(H):
                yy = y + dy
                if not 0 <= yy < H:
                    continue
                for x in range(W):
                    xx = x + dx
                    if not 0 <= xx < W:
                        continue
                    m[t, yy * W + xx, y * W + x] = 1.0
    return jnp.asarray(m)


def bn_fold(gamma, beta, mean, var):
    s = gamma / jnp.sqrt(var + BN_EPS)
    return s, beta - mean * s


# ----------------------------- fused kernel ----------------------------------

def _fused_kernel(hf_ref, lf_ref,
                  w_dh_ref, sh1_ref,
                  w_dl_ref, sh12_ref,
                  w_kvl_ref, b_kvl_ref,
                  w_h_ref, m_ref,
                  w_ol_ref, b_ol_ref, s22_ref, sh22_ref,
                  w_oh_ref, s2_ref, sh2_ref,
                  hi_ref, lo_ref,
                  hi_scr, lo_scr,
                  *, C, NH):
    f32 = jnp.float32
    bf16 = jnp.bfloat16
    dh = C // NH

    xh = hf_ref[0]                                   # (C, Sh) f32 = identity_h
    xl = lf_ref[0]                                   # (C, Sl) f32 = identity_l

    # ---- high stage 1: conv_down + bn1 + relu, produced channel-replicated ----
    # Row j of the replicated weight equals (bn1-scaled) conv_down row j//2, so
    # hf1r[j] is exactly the input the grouped qkv_h conv needs for output ch j.
    hf1r = jnp.dot(w_dh_ref[...], xh.astype(bf16), preferred_element_type=f32)
    hf1r = jnp.maximum(hf1r + sh1_ref[...], 0.0)     # (2C, Sh)

    # ---- low stage 1 + to_qkv_l (K and V in a single matmul) ----
    tl = jnp.dot(w_dl_ref[...], xl.astype(bf16), preferred_element_type=f32)
    tl = jnp.maximum(tl + sh12_ref[...], 0.0)        # (C, Sl)
    kv = jnp.dot(w_kvl_ref[...], tl.astype(bf16), preferred_element_type=f32)
    kv = kv + b_kvl_ref[...]                         # (2C, Sl)
    k_l = kv[:C]                                     # (C, Sl)
    v_l = kv[C:]                                     # (C, Sl)

    # ---- to_qkv_h: grouped 3x3 conv = 9 shift-matmuls + per-channel FMA ------
    # (attention scale already folded into the q-half filter weights)
    qv = jnp.zeros_like(hf1r)                        # (2C, Sh)
    for t in range(9):
        qv = qv + w_h_ref[t] * jnp.dot(hf1r, m_ref[t], preferred_element_type=f32)
    q_h = qv[:C]                                     # (C, Sh)
    v_h = qv[C:]                                     # (C, Sh)

    # ---- cross-frequency attention (heads unrolled; results assembled in VMEM) ----
    for n in range(NH):
        r0, r1 = n * dh, (n + 1) * dh
        s = lax.dot_general(q_h[r0:r1], k_l[r0:r1], (((0,), (0,)), ((), ())),
                            preferred_element_type=f32)          # (Sh, Sl)
        s = s - jnp.max(s, axis=-1, keepdims=True)
        e = jnp.exp(s)
        p = e * pl.reciprocal(jnp.sum(e, axis=-1, keepdims=True), approx=True)
        # low_out[c, h]  = sum_H p[H, h] * v_h[c, H]
        lo_scr[r0:r1, :] = jnp.dot(v_h[r0:r1], p, preferred_element_type=f32)
        # high_out[c, H] = sum_h p[H, h] * v_l[c, h]
        hi_scr[r0:r1, :] = lax.dot_general(v_l[r0:r1], p, (((1,), (1,)), ((), ())),
                                           preferred_element_type=f32)

    # ---- low epilogue: out_l(+bias) -> relu -> +identity -> bn2_2 -> relu ----
    yl = jnp.dot(w_ol_ref[...], lo_scr[...].astype(bf16),
                 preferred_element_type=f32)
    yl = jnp.maximum(yl + b_ol_ref[...], 0.0) + xl
    lo_ref[0] = jnp.maximum(yl * s22_ref[...] + sh22_ref[...], 0.0)

    # ---- high epilogue: out_h (dw 3x3) -> relu -> +identity -> bn2 -> relu ----
    hd = hi_scr[...]                                 # (C, Sh)
    acc = jnp.zeros_like(hd)
    for t in range(9):
        acc = acc + w_oh_ref[t] * jnp.dot(hd, m_ref[t], preferred_element_type=f32)
    yh = jnp.maximum(acc, 0.0) + xh
    hi_ref[0] = jnp.maximum(yh * s2_ref[...] + sh2_ref[...], 0.0)


# ----------------------------- forward pass ----------------------------------

def double_multifreq_forward(params, high_f, low_f):
    B, C, H, W = high_f.shape
    _, _, Hl, Wl = low_f.shape
    Sh, Sl = H * W, Hl * Wl
    NH = NUM_HEADS
    dh = C // NH
    attn_scale = float(dh) ** (-0.5)
    bf16 = jnp.bfloat16
    f32 = jnp.float32

    # ---- fold eval-mode BatchNorm ----
    s1, b1 = bn_fold(*params['bn1'])
    s12, b12 = bn_fold(*params['bn1_2'])
    s2, b2 = bn_fold(*params['bn2'])
    s22, b22 = bn_fold(*params['bn2_2'])

    # conv_down (+bn1 scale), replicated to 2C rows (row j = folded row j//2).
    w_dh = s1[:, None] * params['conv_down']
    w_dh_rep = jnp.repeat(w_dh, 2, axis=0).astype(bf16)         # (2C, C)
    sh1_rep = jnp.repeat(b1, 2)[:, None]                        # (2C, 1)

    w_dl = (s12[:, None] * params['conv_down_2']).astype(bf16)  # (C, C)
    sh12 = b12[:, None]

    w_kvl = params['w_qkv_l'].astype(bf16)                      # (2C, C)
    b_kvl = params['b_qkv_l'][:, None]                          # (2C, 1)

    # grouped 3x3 qkv_h weights -> (9, 2C, 1); fold attention scale into q half.
    w_h = params['w_qkv_h'].at[:C].multiply(attn_scale)         # (2C, 9)
    w_h = w_h.T[:, :, None]                                     # (9, 2C, 1)

    w_ol = params['w_out_l'].astype(bf16)                       # (C, C)
    b_ol = params['b_out_l'][:, None]                           # (C, 1)
    w_oh = params['w_out_h'].T[:, :, None]                      # (9, C, 1)

    s2c, b2c = s2[:, None], b2[:, None]
    s22c, b22c = s22[:, None], b22[:, None]

    m = _shift_matrices(H, W)                                   # (9, Sh, Sh)

    hf = high_f.reshape(B, C, Sh)        # free NCHW reshapes, no transposes
    lf = low_f.reshape(B, C, Sl)

    full2 = lambda b: (0, 0)
    full3 = lambda b: (0, 0, 0)

    hi, lo = pl.pallas_call(
        functools.partial(_fused_kernel, C=C, NH=NH),
        grid=(B,),
        in_specs=[
            pl.BlockSpec((1, C, Sh), lambda b: (b, 0, 0)),
            pl.BlockSpec((1, C, Sl), lambda b: (b, 0, 0)),
            pl.BlockSpec((2 * C, C), full2), pl.BlockSpec((2 * C, 1), full2),
            pl.BlockSpec((C, C), full2), pl.BlockSpec((C, 1), full2),
            pl.BlockSpec((2 * C, C), full2), pl.BlockSpec((2 * C, 1), full2),
            pl.BlockSpec((9, 2 * C, 1), full3),
            pl.BlockSpec((9, Sh, Sh), full3),
            pl.BlockSpec((C, C), full2), pl.BlockSpec((C, 1), full2),
            pl.BlockSpec((C, 1), full2), pl.BlockSpec((C, 1), full2),
            pl.BlockSpec((9, C, 1), full3),
            pl.BlockSpec((C, 1), full2), pl.BlockSpec((C, 1), full2),
        ],
        out_specs=[pl.BlockSpec((1, C, Sh), lambda b: (b, 0, 0)),
                   pl.BlockSpec((1, C, Sl), lambda b: (b, 0, 0))],
        out_shape=(jax.ShapeDtypeStruct((B, C, Sh), f32),
                   jax.ShapeDtypeStruct((B, C, Sl), f32)),
        scratch_shapes=[pltpu.VMEM((C, Sh), f32),
                        pltpu.VMEM((C, Sl), f32)],
        compiler_params=pltpu.CompilerParams(
            dimension_semantics=("parallel",)),
    )(hf, lf, w_dh_rep, sh1_rep, w_dl, sh12, w_kvl, b_kvl,
      w_h, m, w_ol, b_ol, s22c, b22c, w_oh, s2c, b2c)

    return hi.reshape(B, C, H, W), lo.reshape(B, C, Hl, Wl)


# ----------------------------- parameter init ---------------------------------

def init_params(key, C):
    ks = jax.random.split(key, 6)

    def conv_init(k, shape, n):   # torch: normal(0, sqrt(2/n)), n = k*k*out_channels
        return jax.random.normal(k, shape, jnp.float32) * math.sqrt(2.0 / n)

    def bn():
        return (jnp.ones((C,), jnp.float32), jnp.zeros((C,), jnp.float32),
                jnp.zeros((C,), jnp.float32), jnp.ones((C,), jnp.float32))

    return {
        'conv_down':   conv_init(ks[0], (C, C), C),            # 1x1, no bias
        'conv_down_2': conv_init(ks[1], (C, C), C),
        'bn1': bn(), 'bn1_2': bn(), 'bn2': bn(), 'bn2_2': bn(),
        'w_qkv_h': conv_init(ks[2], (2 * C, 9), 9 * 2 * C),    # grouped 3x3 (out_ch, 3*3)
        'w_qkv_l': conv_init(ks[3], (2 * C, C), 2 * C),        # 1x1 (Cout, Cin)
        'b_qkv_l': jnp.zeros((2 * C,), jnp.float32),
        'w_out_h': conv_init(ks[4], (C, 9), 9 * C),            # depthwise 3x3 (ch, 3*3)
        'w_out_l': conv_init(ks[5], (C, C), C),
        'b_out_l': jnp.zeros((C,), jnp.float32),
    }


# ----------------------------------- main --------------------------------------

if __name__ == "__main__":
    B, C, H, W = 2, 32, 8, 8               # C divisible by num_heads=8; low = H/2 x W/2
    key = jax.random.PRNGKey(0)
    k_p, k_h, k_l = jax.random.split(key, 3)
    params = init_params(k_p, C)
    high_f = jax.random.normal(k_h, (B, C, H, W), jnp.float32)
    low_f = jax.random.normal(k_l, (B, C, H // 2, W // 2), jnp.float32)

    fwd = jax.jit(double_multifreq_forward)
    high_out, low_out = fwd(params, high_f, low_f)
    jax.block_until_ready((high_out, low_out))

    assert high_out.shape == (B, C, H, W)
    assert low_out.shape == (B, C, H // 2, W // 2)
    assert bool(jnp.all(jnp.isfinite(high_out))) and bool(jnp.all(jnp.isfinite(low_out)))
    print("KERNEL_OK")
</pallas_src>

<mosaic_0001>
module attributes {stable_mosaic.version = 11 : i64} {
  func.func @_fused_kernel(%arg0: i32, %arg1: memref<1x32x64xf32, #tpu.memory_space<vmem>>, %arg2: memref<1x32x16xf32, #tpu.memory_space<vmem>>, %arg3: memref<64x32xbf16, #tpu.memory_space<vmem>>, %arg4: memref<64x1xf32, #tpu.memory_space<vmem>>, %arg5: memref<32x32xbf16, #tpu.memory_space<vmem>>, %arg6: memref<32x1xf32, #tpu.memory_space<vmem>>, %arg7: memref<64x32xbf16, #tpu.memory_space<vmem>>, %arg8: memref<64x1xf32, #tpu.memory_space<vmem>>, %arg9: memref<9x64x1xf32, #tpu.memory_space<vmem>>, %arg10: memref<9x64x64xf32, #tpu.memory_space<vmem>>, %arg11: memref<32x32xbf16, #tpu.memory_space<vmem>>, %arg12: memref<32x1xf32, #tpu.memory_space<vmem>>, %arg13: memref<32x1xf32, #tpu.memory_space<vmem>>, %arg14: memref<32x1xf32, #tpu.memory_space<vmem>>, %arg15: memref<9x32x1xf32, #tpu.memory_space<vmem>>, %arg16: memref<32x1xf32, #tpu.memory_space<vmem>>, %arg17: memref<32x1xf32, #tpu.memory_space<vmem>>, %arg18: memref<1x32x64xf32, #tpu.memory_space<vmem>>, %arg19: memref<1x32x16xf32, #tpu.memory_space<vmem>>, %arg20: memref<32x64xf32, #tpu.memory_space<vmem>>, %arg21: memref<32x16xf32, #tpu.memory_space<vmem>>) attributes {dimension_semantics = [#tpu.dimension_semantics<parallel>], iteration_bounds = array<i64: 2>, scalar_prefetch = 0 : i64, scratch_operands = 2 : i64, tpu.core_type = #tpu.core_type<tc>, window_params = [{transform_indices = @transform_0, window_bounds = array<i64: 1, 32, 64>}, {transform_indices = @transform_1, window_bounds = array<i64: 1, 32, 16>}, {pipeline_mode = #tpu.pipeline_mode<synchronous>, transform_indices = @transform_2, window_bounds = array<i64: 64, 32>}, {pipeline_mode = #tpu.pipeline_mode<synchronous>, transform_indices = @transform_3, window_bounds = array<i64: 64, 1>}, {pipeline_mode = #tpu.pipeline_mode<synchronous>, transform_indices = @transform_4, window_bounds = array<i64: 32, 32>}, {pipeline_mode = #tpu.pipeline_mode<synchronous>, transform_indices = @transform_5, window_bounds = array<i64: 32, 1>}, {pipeline_mode = #tpu.pipeline_mode<synchronous>, transform_indices = @transform_6, window_bounds = array<i64: 64, 32>}, {pipeline_mode = #tpu.pipeline_mode<synchronous>, transform_indices = @transform_7, window_bounds = array<i64: 64, 1>}, {pipeline_mode = #tpu.pipeline_mode<synchronous>, transform_indices = @transform_8, window_bounds = array<i64: 9, 64, 1>}, {pipeline_mode = #tpu.pipeline_mode<synchronous>, transform_indices = @transform_9, window_bounds = array<i64: 9, 64, 64>}, {pipeline_mode = #tpu.pipeline_mode<synchronous>, transform_indices = @transform_10, window_bounds = array<i64: 32, 32>}, {pipeline_mode = #tpu.pipeline_mode<synchronous>, transform_indices = @transform_11, window_bounds = array<i64: 32, 1>}, {pipeline_mode = #tpu.pipeline_mode<synchronous>, transform_indices = @transform_12, window_bounds = array<i64: 32, 1>}, {pipeline_mode = #tpu.pipeline_mode<synchronous>, transform_indices = @transform_13, window_bounds = array<i64: 32, 1>}, {pipeline_mode = #tpu.pipeline_mode<synchronous>, transform_indices = @transform_14, window_bounds = array<i64: 9, 32, 1>}, {pipeline_mode = #tpu.pipeline_mode<synchronous>, transform_indices = @transform_15, window_bounds = array<i64: 32, 1>}, {pipeline_mode = #tpu.pipeline_mode<synchronous>, transform_indices = @transform_16, window_bounds = array<i64: 32, 1>}, {transform_indices = @transform_17, window_bounds = array<i64: 1, 32, 64>}, {transform_indices = @transform_18, window_bounds = array<i64: 1, 32, 16>}]} {
    %c0 = arith.constant 0 : index
    %c0_0 = arith.constant 0 : index
    %c0_1 = arith.constant 0 : index
    %0 = vector.load %arg1[%c0, %c0_0, %c0_1] : memref<1x32x64xf32, #tpu.memory_space<vmem>>, vector<1x32x64xf32>
    %1 = vector.shape_cast %0 : vector<1x32x64xf32> to vector<32x64xf32>
    %c0_2 = arith.constant 0 : index
    %c0_3 = arith.constant 0 : index
    %c0_4 = arith.constant 0 : index
    %2 = vector.load %arg2[%c0_2, %c0_3, %c0_4] : memref<1x32x16xf32, #tpu.memory_space<vmem>>, vector<1x32x16xf32>
    %3 = vector.shape_cast %2 : vector<1x32x16xf32> to vector<32x16xf32>
    %c0_5 = arith.constant 0 : index
    %c0_6 = arith.constant 0 : index
    %4 = vector.load %arg3[%c0_5, %c0_6] : memref<64x32xbf16, #tpu.memory_space<vmem>>, vector<64x32xbf16>
    %5 = arith.truncf %1 : vector<32x64xf32> to vector<32x64xbf16>
    %cst = arith.constant dense<0.000000e+00> : vector<64x64xf32>
    %6 = tpu.matmul %4, %5, %cst {dimension_numbers = #tpu.dot_dimension_numbers<[1], [0], [0], [1], [0, 0, 1, 1], [], []>} : vector<64x32xbf16>, vector<32x64xbf16>, vector<64x64xf32> -> vector<64x64xf32>
    %c0_7 = arith.constant 0 : index
    %c0_8 = arith.constant 0 : index
    %7 = vector.load %arg4[%c0_7, %c0_8] : memref<64x1xf32, #tpu.memory_space<vmem>>, vector<64x1xf32>
    %8 = vector.broadcast %7 : vector<64x1xf32> to vector<64x64xf32>
    %9 = arith.addf %6, %8 : vector<64x64xf32>
    %cst_9 = arith.constant 0.000000e+00 : f32
    %10 = vector.broadcast %cst_9 : f32 to vector<64x64xf32>
    %11 = arith.maximumf %9, %10 : vector<64x64xf32>
    %c0_10 = arith.constant 0 : index
    %c0_11 = arith.constant 0 : index
    %12 = vector.load %arg5[%c0_10, %c0_11] : memref<32x32xbf16, #tpu.memory_space<vmem>>, vector<32x32xbf16>
    %13 = arith.truncf %3 : vector<32x16xf32> to vector<32x16xbf16>
    %cst_12 = arith.constant dense<0.000000e+00> : vector<32x16xf32>
    %14 = tpu.matmul %12, %13, %cst_12 {dimension_numbers = #tpu.dot_dimension_numbers<[1], [0], [0], [1], [0, 0, 1, 1], [], []>} : vector<32x32xbf16>, vector<32x16xbf16>, vector<32x16xf32> -> vector<32x16xf32>
    %c0_13 = arith.constant 0 : index
    %c0_14 = arith.constant 0 : index
    %15 = vector.load %arg6[%c0_13, %c0_14] : memref<32x1xf32, #tpu.memory_space<vmem>>, vector<32x1xf32>
    %16 = vector.broadcast %15 : vector<32x1xf32> to vector<32x16xf32>
    %17 = arith.addf %14, %16 : vector<32x16xf32>
    %cst_15 = arith.constant 0.000000e+00 : f32
    %18 = vector.broadcast %cst_15 : f32 to vector<32x16xf32>
    %19 = arith.maximumf %17, %18 : vector<32x16xf32>
    %c0_16 = arith.constant 0 : index
    %c0_17 = arith.constant 0 : index
    %20 = vector.load %arg7[%c0_16, %c0_17] : memref<64x32xbf16, #tpu.memory_space<vmem>>, vector<64x32xbf16>
    %21 = arith.truncf %19 : vector<32x16xf32> to vector<32x16xbf16>
    %cst_18 = arith.constant dense<0.000000e+00> : vector<64x16xf32>
    %22 = tpu.matmul %20, %21, %cst_18 {dimension_numbers = #tpu.dot_dimension_numbers<[1], [0], [0], [1], [0, 0, 1, 1], [], []>} : vector<64x32xbf16>, vector<32x16xbf16>, vector<64x16xf32> -> vector<64x16xf32>
    %c0_19 = arith.constant 0 : index
    %c0_20 = arith.constant 0 : index
    %23 = vector.load %arg8[%c0_19, %c0_20] : memref<64x1xf32, #tpu.memory_space<vmem>>, vector<64x1xf32>
    %24 = vector.broadcast %23 : vector<64x1xf32> to vector<64x16xf32>
    %25 = arith.addf %22, %24 : vector<64x16xf32>
    %26 = vector.extract_strided_slice %25 {offsets = [0, 0], sizes = [32, 16], strides = [1, 1]} : vector<64x16xf32> to vector<32x16xf32>
    %27 = vector.extract_strided_slice %25 {offsets = [32, 0], sizes = [32, 16], strides = [1, 1]} : vector<64x16xf32> to vector<32x16xf32>
    %cst_21 = arith.constant 0.000000e+00 : f32
    %28 = vector.broadcast %cst_21 : f32 to vector<64x64xf32>
    %c0_22 = arith.constant 0 : index
    %c0_23 = arith.constant 0 : index
    %c0_24 = arith.constant 0 : index
    %29 = vector.load %arg9[%c0_22, %c0_23, %c0_24] : memref<9x64x1xf32, #tpu.memory_space<vmem>>, vector<1x64x1xf32>
    %30 = vector.shape_cast %29 : vector<1x64x1xf32> to vector<64x1xf32>
    %c0_25 = arith.constant 0 : index
    %c0_26 = arith.constant 0 : index
    %c0_27 = arith.constant 0 : index
    %31 = vector.load %arg10[%c0_25, %c0_26, %c0_27] : memref<9x64x64xf32, #tpu.memory_space<vmem>>, vector<1x64x64xf32>
    %32 = vector.shape_cast %31 : vector<1x64x64xf32> to vector<64x64xf32>
    %cst_28 = arith.constant dense<0.000000e+00> : vector<64x64xf32>
    %33 = tpu.matmul %11, %32, %cst_28 {dimension_numbers = #tpu.dot_dimension_numbers<[1], [0], [0], [1], [0, 0, 1, 1], [], []>} : vector<64x64xf32>, vector<64x64xf32>, vector<64x64xf32> -> vector<64x64xf32>
    %34 = vector.broadcast %30 : vector<64x1xf32> to vector<64x64xf32>
    %35 = arith.mulf %34, %33 : vector<64x64xf32>
    %36 = arith.addf %28, %35 : vector<64x64xf32>
    %c1 = arith.constant 1 : index
    %c0_29 = arith.constant 0 : index
    %c0_30 = arith.constant 0 : index
    %37 = vector.load %arg9[%c1, %c0_29, %c0_30] : memref<9x64x1xf32, #tpu.memory_space<vmem>>, vector<1x64x1xf32>
    %38 = vector.shape_cast %37 : vector<1x64x1xf32> to vector<64x1xf32>
    %c1_31 = arith.constant 1 : index
    %c0_32 = arith.constant 0 : index
    %c0_33 = arith.constant 0 : index
    %39 = vector.load %arg10[%c1_31, %c0_32, %c0_33] : memref<9x64x64xf32, #tpu.memory_space<vmem>>, vector<1x64x64xf32>
    %40 = vector.shape_cast %39 : vector<1x64x64xf32> to vector<64x64xf32>
    %cst_34 = arith.constant dense<0.000000e+00> : vector<64x64xf32>
    %41 = tpu.matmul %11, %40, %cst_34 {dimension_numbers = #tpu.dot_dimension_numbers<[1], [0], [0], [1], [0, 0, 1, 1], [], []>} : vector<64x64xf32>, vector<64x64xf32>, vector<64x64xf32> -> vector<64x64xf32>
    %42 = vector.broadcast %38 : vector<64x1xf32> to vector<64x64xf32>
    %43 = arith.mulf %42, %41 : vector<64x64xf32>
    %44 = arith.addf %36, %43 : vector<64x64xf32>
    %c2 = arith.constant 2 : index
    %c0_35 = arith.constant 0 : index
    %c0_36 = arith.constant 0 : index
    %45 = vector.load %arg9[%c2, %c0_35, %c0_36] : memref<9x64x1xf32, #tpu.memory_space<vmem>>, vector<1x64x1xf32>
    %46 = vector.shape_cast %45 : vector<1x64x1xf32> to vector<64x1xf32>
    %c2_37 = arith.constant 2 : index
    %c0_38 = arith.constant 0 : index
    %c0_39 = arith.constant 0 : index
    %47 = vector.load %arg10[%c2_37, %c0_38, %c0_39] : memref<9x64x64xf32, #tpu.memory_space<vmem>>, vector<1x64x64xf32>
    %48 = vector.shape_cast %47 : vector<1x64x64xf32> to vector<64x64xf32>
    %cst_40 = arith.constant dense<0.000000e+00> : vector<64x64xf32>
    %49 = tpu.matmul %11, %48, %cst_40 {dimension_numbers = #tpu.dot_dimension_numbers<[1], [0], [0], [1], [0, 0, 1, 1], [], []>} : vector<64x64xf32>, vector<64x64xf32>, vector<64x64xf32> -> vector<64x64xf32>
    %50 = vector.broadcast %46 : vector<64x1xf32> to vector<64x64xf32>
    %51 = arith.mulf %50, %49 : vector<64x64xf32>
    %52 = arith.addf %44, %51 : vector<64x64xf32>
    %c3 = arith.constant 3 : index
    %c0_41 = arith.constant 0 : index
    %c0_42 = arith.constant 0 : index
    %53 = vector.load %arg9[%c3, %c0_41, %c0_42] : memref<9x64x1xf32, #tpu.memory_space<vmem>>, vector<1x64x1xf32>
    %54 = vector.shape_cast %53 : vector<1x64x1xf32> to vector<64x1xf32>
    %c3_43 = arith.constant 3 : index
    %c0_44 = arith.constant 0 : index
    %c0_45 = arith.constant 0 : index
    %55 = vector.load %arg10[%c3_43, %c0_44, %c0_45] : memref<9x64x64xf32, #tpu.memory_space<vmem>>, vector<1x64x64xf32>
    %56 = vector.shape_cast %55 : vector<1x64x64xf32> to vector<64x64xf32>
    %cst_46 = arith.constant dense<0.000000e+00> : vector<64x64xf32>
    %57 = tpu.matmul %11, %56, %cst_46 {dimension_numbers = #tpu.dot_dimension_numbers<[1], [0], [0], [1], [0, 0, 1, 1], [], []>} : vector<64x64xf32>, vector<64x64xf32>, vector<64x64xf32> -> vector<64x64xf32>
    %58 = vector.broadcast %54 : vector<64x1xf32> to vector<64x64xf32>
    %59 = arith.mulf %58, %57 : vector<64x64xf32>
    %60 = arith.addf %52, %59 : vector<64x64xf32>
    %c4 = arith.constant 4 : index
    %c0_47 = arith.constant 0 : index
    %c0_48 = arith.constant 0 : index
    %61 = vector.load %arg9[%c4, %c0_47, %c0_48] : memref<9x64x1xf32, #tpu.memory_space<vmem>>, vector<1x64x1xf32>
    %62 = vector.shape_cast %61 : vector<1x64x1xf32> to vector<64x1xf32>
    %c4_49 = arith.constant 4 : index
    %c0_50 = arith.constant 0 : index
    %c0_51 = arith.constant 0 : index
    %63 = vector.load %arg10[%c4_49, %c0_50, %c0_51] : memref<9x64x64xf32, #tpu.memory_space<vmem>>, vector<1x64x64xf32>
    %64 = vector.shape_cast %63 : vector<1x64x64xf32> to vector<64x64xf32>
    %cst_52 = arith.constant dense<0.000000e+00> : vector<64x64xf32>
    %65 = tpu.matmul %11, %64, %cst_52 {dimension_numbers = #tpu.dot_dimension_numbers<[1], [0], [0], [1], [0, 0, 1, 1], [], []>} : vector<64x64xf32>, vector<64x64xf32>, vector<64x64xf32> -> vector<64x64xf32>
    %66 = vector.broadcast %62 : vector<64x1xf32> to vector<64x64xf32>
    %67 = arith.mulf %66, %65 : vector<64x64xf32>
    %68 = arith.addf %60, %67 : vector<64x64xf32>
    %c5 = arith.constant 5 : index
    %c0_53 = arith.constant 0 : index
    %c0_54 = arith.constant 0 : index
    %69 = vector.load %arg9[%c5, %c0_53, %c0_54] : memref<9x64x1xf32, #tpu.memory_space<vmem>>, vector<1x64x1xf32>
    %70 = vector.shape_cast %69 : vector<1x64x1xf32> to vector<64x1xf32>
    %c5_55 = arith.constant 5 : index
    %c0_56 = arith.constant 0 : index
    %c0_57 = arith.constant 0 : index
    %71 = vector.load %arg10[%c5_55, %c0_56, %c0_57] : memref<9x64x64xf32, #tpu.memory_space<vmem>>, vector<1x64x64xf32>
    %72 = vector.shape_cast %71 : vector<1x64x64xf32> to vector<64x64xf32>
    %cst_58 = arith.constant dense<0.000000e+00> : vector<64x64xf32>
    %73 = tpu.matmul %11, %72, %cst_58 {dimension_numbers = #tpu.dot_dimension_numbers<[1], [0], [0], [1], [0, 0, 1, 1], [], []>} : vector<64x64xf32>, vector<64x64xf32>, vector<64x64xf32> -> vector<64x64xf32>
    %74 = vector.broadcast %70 : vector<64x1xf32> to vector<64x64xf32>
    %75 = arith.mulf %74, %73 : vector<64x64xf32>
    %76 = arith.addf %68, %75 : vector<64x64xf32>
    %c6 = arith.constant 6 : index
    %c0_59 = arith.constant 0 : index
    %c0_60 = arith.constant 0 : index
    %77 = vector.load %arg9[%c6, %c0_59, %c0_60] : memref<9x64x1xf32, #tpu.memory_space<vmem>>, vector<1x64x1xf32>
    %78 = vector.shape_cast %77 : vector<1x64x1xf32> to vector<64x1xf32>
    %c6_61 = arith.constant 6 : index
    %c0_62 = arith.constant 0 : index
    %c0_63 = arith.constant 0 : index
    %79 = vector.load %arg10[%c6_61, %c0_62, %c0_63] : memref<9x64x64xf32, #tpu.memory_space<vmem>>, vector<1x64x64xf32>
    %80 = vector.shape_cast %79 : vector<1x64x64xf32> to vector<64x64xf32>
    %cst_64 = arith.constant dense<0.000000e+00> : vector<64x64xf32>
    %81 = tpu.matmul %11, %80, %cst_64 {dimension_numbers = #tpu.dot_dimension_numbers<[1], [0], [0], [1], [0, 0, 1, 1], [], []>} : vector<64x64xf32>, vector<64x64xf32>, vector<64x64xf32> -> vector<64x64xf32>
    %82 = vector.broadcast %78 : vector<64x1xf32> to vector<64x64xf32>
    %83 = arith.mulf %82, %81 : vector<64x64xf32>
    %84 = arith.addf %76, %83 : vector<64x64xf32>
    %c7 = arith.constant 7 : index
    %c0_65 = arith.constant 0 : index
    %c0_66 = arith.constant 0 : index
    %85 = vector.load %arg9[%c7, %c0_65, %c0_66] : memref<9x64x1xf32, #tpu.memory_space<vmem>>, vector<1x64x1xf32>
    %86 = vector.shape_cast %85 : vector<1x64x1xf32> to vector<64x1xf32>
    %c7_67 = arith.constant 7 : index
    %c0_68 = arith.constant 0 : index
    %c0_69 = arith.constant 0 : index
    %87 = vector.load %arg10[%c7_67, %c0_68, %c0_69] : memref<9x64x64xf32, #tpu.memory_space<vmem>>, vector<1x64x64xf32>
    %88 = vector.shape_cast %87 : vector<1x64x64xf32> to vector<64x64xf32>
    %cst_70 = arith.constant dense<0.000000e+00> : vector<64x64xf32>
    %89 = tpu.matmul %11, %88, %cst_70 {dimension_numbers = #tpu.dot_dimension_numbers<[1], [0], [0], [1], [0, 0, 1, 1], [], []>} : vector<64x64xf32>, vector<64x64xf32>, vector<64x64xf32> -> vector<64x64xf32>
    %90 = vector.broadcast %86 : vector<64x1xf32> to vector<64x64xf32>
    %91 = arith.mulf %90, %89 : vector<64x64xf32>
    %92 = arith.addf %84, %91 : vector<64x64xf32>
    %c8 = arith.constant 8 : index
    %c0_71 = arith.constant 0 : index
    %c0_72 = arith.constant 0 : index
    %93 = vector.load %arg9[%c8, %c0_71, %c0_72] : memref<9x64x1xf32, #tpu.memory_space<vmem>>, vector<1x64x1xf32>
    %94 = vector.shape_cast %93 : vector<1x64x1xf32> to vector<64x1xf32>
    %c8_73 = arith.constant 8 : index
    %c0_74 = arith.constant 0 : index
    %c0_75 = arith.constant 0 : index
    %95 = vector.load %arg10[%c8_73, %c0_74, %c0_75] : memref<9x64x64xf32, #tpu.memory_space<vmem>>, vector<1x64x64xf32>
    %96 = vector.shape_cast %95 : vector<1x64x64xf32> to vector<64x64xf32>
    %cst_76 = arith.constant dense<0.000000e+00> : vector<64x64xf32>
    %97 = tpu.matmul %11, %96, %cst_76 {dimension_numbers = #tpu.dot_dimension_numbers<[1], [0], [0], [1], [0, 0, 1, 1], [], []>} : vector<64x64xf32>, vector<64x64xf32>, vector<64x64xf32> -> vector<64x64xf32>
    %98 = vector.broadcast %94 : vector<64x1xf32> to vector<64x64xf32>
    %99 = arith.mulf %98, %97 : vector<64x64xf32>
    %100 = arith.addf %92, %99 : vector<64x64xf32>
    %101 = vector.extract_strided_slice %100 {offsets = [0, 0], sizes = [32, 64], strides = [1, 1]} : vector<64x64xf32> to vector<32x64xf32>
    %102 = vector.extract_strided_slice %100 {offsets = [32, 0], sizes = [32, 64], strides = [1, 1]} : vector<64x64xf32> to vector<32x64xf32>
    %103 = vector.extract_strided_slice %101 {offsets = [0, 0], sizes = [4, 64], strides = [1, 1]} : vector<32x64xf32> to vector<4x64xf32>
    %104 = vector.extract_strided_slice %26 {offsets = [0, 0], sizes = [4, 16], strides = [1, 1]} : vector<32x16xf32> to vector<4x16xf32>
    %cst_77 = arith.constant dense<0.000000e+00> : vector<64x16xf32>
    %105 = tpu.matmul %103, %104, %cst_77 {dimension_numbers = #tpu.dot_dimension_numbers<[0], [0], [1], [1], [0, 1, 1, 1], [], []>} : vector<4x64xf32>, vector<4x16xf32>, vector<64x16xf32> -> vector<64x16xf32>
    %cst_78 = arith.constant dense<0xFF800000> : vector<64xf32>
    %106 = vector.multi_reduction <maximumf>, %105, %cst_78 [1] : vector<64x16xf32> to vector<64xf32>
    %107 = vector.shape_cast %106 : vector<64xf32> to vector<64x1xf32>
    %108 = vector.broadcast %107 : vector<64x1xf32> to vector<64x16xf32>
    %109 = arith.subf %105, %108 : vector<64x16xf32>
    %110 = math.exp %109 : vector<64x16xf32>
    %cst_79 = arith.constant dense<0.000000e+00> : vector<64xf32>
    %111 = vector.multi_reduction <add>, %110, %cst_79 [1] : vector<64x16xf32> to vector<64xf32>
    %112 = vector.shape_cast %111 : vector<64xf32> to vector<64x1xf32>
    %113 = tpu.reciprocal %112 {approx = true} : vector<64x1xf32> -> vector<64x1xf32>
    %114 = vector.broadcast %113 : vector<64x1xf32> to vector<64x16xf32>
    %115 = arith.mulf %110, %114 : vector<64x16xf32>
    %116 = vector.extract_strided_slice %102 {offsets = [0, 0], sizes = [4, 64], strides = [1, 1]} : vector<32x64xf32> to vector<4x64xf32>
    %cst_80 = arith.constant dense<0.000000e+00> : vector<4x16xf32>
    %117 = tpu.matmul %116, %115, %cst_80 {dimension_numbers = #tpu.dot_dimension_numbers<[1], [0], [0], [1], [0, 0, 1, 1], [], []>} : vector<4x64xf32>, vector<64x16xf32>, vector<4x16xf32> -> vector<4x16xf32>
    %c0_81 = arith.constant 0 : index
    %c0_82 = arith.constant 0 : index
    %118 = vector.load %arg21[%c0_81, %c0_82] : memref<32x16xf32, #tpu.memory_space<vmem>>, vector<4x16xf32>
    tpu.vector_store %arg21[%c0_81, %c0_82], %117 {strides = array<i32>} : memref<32x16xf32, #tpu.memory_space<vmem>>, vector<4x16xf32>,
    %119 = vector.extract_strided_slice %27 {offsets = [0, 0], sizes = [4, 16], strides = [1, 1]} : vector<32x16xf32> to vector<4x16xf32>
    %cst_83 = arith.constant dense<0.000000e+00> : vector<4x64xf32>
    %120 = tpu.matmul %119, %115, %cst_83 {dimension_numbers = #tpu.dot_dimension_numbers<[1], [1], [0], [0], [0, 0, 1, 0], [], []>} : vector<4x16xf32>, vector<64x16xf32>, vector<4x64xf32> -> vector<4x64xf32>
    %c0_84 = arith.constant 0 : index
    %c0_85 = arith.constant 0 : index
    %121 = vector.load %arg20[%c0_84, %c0_85] : memref<32x64xf32, #tpu.memory_space<vmem>>, vector<4x64xf32>
    tpu.vector_store %arg20[%c0_84, %c0_85], %120 {strides = array<i32>} : memref<32x64xf32, #tpu.memory_space<vmem>>, vector<4x64xf32>,
    %122 = vector.extract_strided_slice %101 {offsets = [4, 0], sizes = [4, 64], strides = [1, 1]} : vector<32x64xf32> to vector<4x64xf32>
    %123 = vector.extract_strided_slice %26 {offsets = [4, 0], sizes = [4, 16], strides = [1, 1]} : vector<32x16xf32> to vector<4x16xf32>
    %cst_86 = arith.constant dense<0.000000e+00> : vector<64x16xf32>
    %124 = tpu.matmul %122, %123, %cst_86 {dimension_numbers = #tpu.dot_dimension_numbers<[0], [0], [1], [1], [0, 1, 1, 1], [], []>} : vector<4x64xf32>, vector<4x16xf32>, vector<64x16xf32> -> vector<64x16xf32>
    %cst_87 = arith.constant dense<0xFF800000> : vector<64xf32>
    %125 = vector.multi_reduction <maximumf>, %124, %cst_87 [1] : vector<64x16xf32> to vector<64xf32>
    %126 = vector.shape_cast %125 : vector<64xf32> to vector<64x1xf32>
    %127 = vector.broadcast %126 : vector<64x1xf32> to vector<64x16xf32>
    %128 = arith.subf %124, %127 : vector<64x16xf32>
    %129 = math.exp %128 : vector<64x16xf32>
    %cst_88 = arith.constant dense<0.000000e+00> : vector<64xf32>
    %130 = vector.multi_reduction <add>, %129, %cst_88 [1] : vector<64x16xf32> to vector<64xf32>
    %131 = vector.shape_cast %130 : vector<64xf32> to vector<64x1xf32>
    %132 = tpu.reciprocal %131 {approx = true} : vector<64x1xf32> -> vector<64x1xf32>
    %133 = vector.broadcast %132 : vector<64x1xf32> to vector<64x16xf32>
    %134 = arith.mulf %129, %133 : vector<64x16xf32>
    %135 = vector.extract_strided_slice %102 {offsets = [4, 0], sizes = [4, 64], strides = [1, 1]} : vector<32x64xf32> to vector<4x64xf32>
    %cst_89 = arith.constant dense<0.000000e+00> : vector<4x16xf32>
    %136 = tpu.matmul %135, %134, %cst_89 {dimension_numbers = #tpu.dot_dimension_numbers<[1], [0], [0], [1], [0, 0, 1, 1], [], []>} : vector<4x64xf32>, vector<64x16xf32>, vector<4x16xf32> -> vector<4x16xf32>
    %c4_90 = arith.constant 4 : index
    %c0_91 = arith.constant 0 : index
    %137 = vector.load %arg21[%c4_90, %c0_91] : memref<32x16xf32, #tpu.memory_space<vmem>>, vector<4x16xf32>
    tpu.vector_store %arg21[%c4_90, %c0_91], %136 {strides = array<i32>} : memref<32x16xf32, #tpu.memory_space<vmem>>, vector<4x16xf32>,
    %138 = vector.extract_strided_slice %27 {offsets = [4, 0], sizes = [4, 16], strides = [1, 1]} : vector<32x16xf32> to vector<4x16xf32>
    %cst_92 = arith.constant dense<0.000000e+00> : vector<4x64xf32>
    %139 = tpu.matmul %138, %134, %cst_92 {dimension_numbers = #tpu.dot_dimension_numbers<[1], [1], [0], [0], [0, 0, 1, 0], [], []>} : vector<4x16xf32>, vector<64x16xf32>, vector<4x64xf32> -> vector<4x64xf32>
    %c4_93 = arith.constant 4 : index
    %c0_94 = arith.constant 0 : index
    %140 = vector.load %arg20[%c4_93, %c0_94] : memref<32x64xf32, #tpu.memory_space<vmem>>, vector<4x64xf32>
    tpu.vector_store %arg20[%c4_93, %c0_94], %139 {strides = array<i32>} : memref<32x64xf32, #tpu.memory_space<vmem>>, vector<4x64xf32>,
    %141 = vector.extract_strided_slice %101 {offsets = [8, 0], sizes = [4, 64], strides = [1, 1]} : vector<32x64xf32> to vector<4x64xf32>
    %142 = vector.extract_strided_slice %26 {offsets = [8, 0], sizes = [4, 16], strides = [1, 1]} : vector<32x16xf32> to vector<4x16xf32>
    %cst_95 = arith.constant dense<0.000000e+00> : vector<64x16xf32>
    %143 = tpu.matmul %141, %142, %cst_95 {dimension_numbers = #tpu.dot_dimension_numbers<[0], [0], [1], [1], [0, 1, 1, 1], [], []>} : vector<4x64xf32>, vector<4x16xf32>, vector<64x16xf32> -> vector<64x16xf32>
    %cst_96 = arith.constant dense<0xFF800000> : vector<64xf32>
    %144 = vector.multi_reduction <maximumf>, %143, %cst_96 [1] : vector<64x16xf32> to vector<64xf32>
    %145 = vector.shape_cast %144 : vector<64xf32> to vector<64x1xf32>
    %146 = vector.broadcast %145 : vector<64x1xf32> to vector<64x16xf32>
    %147 = arith.subf %143, %146 : vector<64x16xf32>
    %148 = math.exp %147 : vector<64x16xf32>
    %cst_97 = arith.constant dense<0.000000e+00> : vector<64xf32>
    %149 = vector.multi_reduction <add>, %148, %cst_97 [1] : vector<64x16xf32> to vector<64xf32>
    %150 = vector.shape_cast %149 : vector<64xf32> to vector<64x1xf32>
    %151 = tpu.reciprocal %150 {approx = true} : vector<64x1xf32> -> vector<64x1xf32>
    %152 = vector.broadcast %151 : vector<64x1xf32> to vector<64x16xf32>
    %153 = arith.mulf %148, %152 : vector<64x16xf32>
    %154 = vector.extract_strided_slice %102 {offsets = [8, 0], sizes = [4, 64], strides = [1, 1]} : vector<32x64xf32> to vector<4x64xf32>
    %cst_98 = arith.constant dense<0.000000e+00> : vector<4x16xf32>
    %155 = tpu.matmul %154, %153, %cst_98 {dimension_numbers = #tpu.dot_dimension_numbers<[1], [0], [0], [1], [0, 0, 1, 1], [], []>} : vector<4x64xf32>, vector<64x16xf32>, vector<4x16xf32> -> vector<4x16xf32>
    %c8_99 = arith.constant 8 : index
    %c0_100 = arith.constant 0 : index
    %156 = vector.load %arg21[%c8_99, %c0_100] : memref<32x16xf32, #tpu.memory_space<vmem>>, vector<4x16xf32>
    tpu.vector_store %arg21[%c8_99, %c0_100], %155 {strides = array<i32>} : memref<32x16xf32, #tpu.memory_space<vmem>>, vector<4x16xf32>,
    %157 = vector.extract_strided_slice %27 {offsets = [8, 0], sizes = [4, 16], strides = [1, 1]} : vector<32x16xf32> to vector<4x16xf32>
    %cst_101 = arith.constant dense<0.000000e+00> : vector<4x64xf32>
    %158 = tpu.matmul %157, %153, %cst_101 {dimension_numbers = #tpu.dot_dimension_numbers<[1], [1], [0], [0], [0, 0, 1, 0], [], []>} : vector<4x16xf32>, vector<64x16xf32>, vector<4x64xf32> -> vector<4x64xf32>
    %c8_102 = arith.constant 8 : index
    %c0_103 = arith.constant 0 : index
    %159 = vector.load %arg20[%c8_102, %c0_103] : memref<32x64xf32, #tpu.memory_space<vmem>>, vector<4x64xf32>
    tpu.vector_store %arg20[%c8_102, %c0_103], %158 {strides = array<i32>} : memref<32x64xf32, #tpu.memory_space<vmem>>, vector<4x64xf32>,
    %160 = vector.extract_strided_slice %101 {offsets = [12, 0], sizes = [4, 64], strides = [1, 1]} : vector<32x64xf32> to vector<4x64xf32>
    %161 = vector.extract_strided_slice %26 {offsets = [12, 0], sizes = [4, 16], strides = [1, 1]} : vector<32x16xf32> to vector<4x16xf32>
    %cst_104 = arith.constant dense<0.000000e+00> : vector<64x16xf32>
    %162 = tpu.matmul %160, %161, %cst_104 {dimension_numbers = #tpu.dot_dimension_numbers<[0], [0], [1], [1], [0, 1, 1, 1], [], []>} : vector<4x64xf32>, vector<4x16xf32>, vector<64x16xf32> -> vector<64x16xf32>
    %cst_105 = arith.constant dense<0xFF800000> : vector<64xf32>
    %163 = vector.multi_reduction <maximumf>, %162, %cst_105 [1] : vector<64x16xf32> to vector<64xf32>
    %164 = vector.shape_cast %163 : vector<64xf32> to vector<64x1xf32>
    %165 = vector.broadcast %164 : vector<64x1xf32> to vector<64x16xf32>
    %166 = arith.subf %162, %165 : vector<64x16xf32>
    %167 = math.exp %166 : vector<64x16xf32>
    %cst_106 = arith.constant dense<0.000000e+00> : vector<64xf32>
    %168 = vector.multi_reduction <add>, %167, %cst_106 [1] : vector<64x16xf32> to vector<64xf32>
    %169 = vector.shape_cast %168 : vector<64xf32> to vector<64x1xf32>
    %170 = tpu.reciprocal %169 {approx = true} : vector<64x1xf32> -> vector<64x1xf32>
    %171 = vector.broadcast %170 : vector<64x1xf32> to vector<64x16xf32>
    %172 = arith.mulf %167, %171 : vector<64x16xf32>
    %173 = vector.extract_strided_slice %102 {offsets = [12, 0], sizes = [4, 64], strides = [1, 1]} : vector<32x64xf32> to vector<4x64xf32>
    %cst_107 = arith.constant dense<0.000000e+00> : vector<4x16xf32>
    %174 = tpu.matmul %173, %172, %cst_107 {dimension_numbers = #tpu.dot_dimension_numbers<[1], [0], [0], [1], [0, 0, 1, 1], [], []>} : vector<4x64xf32>, vector<64x16xf32>, vector<4x16xf32> -> vector<4x16xf32>
    %c12 = arith.constant 12 : index
    %c0_108 = arith.constant 0 : index
    %175 = vector.load %arg21[%c12, %c0_108] : memref<32x16xf32, #tpu.memory_space<vmem>>, vector<4x16xf32>
    tpu.vector_store %arg21[%c12, %c0_108], %174 {strides = array<i32>} : memref<32x16xf32, #tpu.memory_space<vmem>>, vector<4x16xf32>,
    %176 = vector.extract_strided_slice %27 {offsets = [12, 0], sizes = [4, 16], strides = [1, 1]} : vector<32x16xf32> to vector<4x16xf32>
    %cst_109 = arith.constant dense<0.000000e+00> : vector<4x64xf32>
    %177 = tpu.matmul %176, %172, %cst_109 {dimension_numbers = #tpu.dot_dimension_numbers<[1], [1], [0], [0], [0, 0, 1, 0], [], []>} : vector<4x16xf32>, vector<64x16xf32>, vector<4x64xf32> -> vector<4x64xf32>
    %c12_110 = arith.constant 12 : index
    %c0_111 = arith.constant 0 : index
    %178 = vector.load %arg20[%c12_110, %c0_111] : memref<32x64xf32, #tpu.memory_space<vmem>>, vector<4x64xf32>
    tpu.vector_store %arg20[%c12_110, %c0_111], %177 {strides = array<i32>} : memref<32x64xf32, #tpu.memory_space<vmem>>, vector<4x64xf32>,
    %179 = vector.extract_strided_slice %101 {offsets = [16, 0], sizes = [4, 64], strides = [1, 1]} : vector<32x64xf32> to vector<4x64xf32>
    %180 = vector.extract_strided_slice %26 {offsets = [16, 0], sizes = [4, 16], strides = [1, 1]} : vector<32x16xf32> to vector<4x16xf32>
    %cst_112 = arith.constant dense<0.000000e+00> : vector<64x16xf32>
    %181 = tpu.matmul %179, %180, %cst_112 {dimension_numbers = #tpu.dot_dimension_numbers<[0], [0], [1], [1], [0, 1, 1, 1], [], []>} : vector<4x64xf32>, vector<4x16xf32>, vector<64x16xf32> -> vector<64x16xf32>
    %cst_113 = arith.constant dense<0xFF800000> : vector<64xf32>
    %182 = vector.multi_reduction <maximumf>, %181, %cst_113 [1] : vector<64x16xf32> to vector<64xf32>
    %183 = vector.shape_cast %182 : vector<64xf32> to vector<64x1xf32>
    %184 = vector.broadcast %183 : vector<64x1xf32> to vector<64x16xf32>
    %185 = arith.subf %181, %184 : vector<64x16xf32>
    %186 = math.exp %185 : vector<64x16xf32>
    %cst_114 = arith.constant dense<0.000000e+00> : vector<64xf32>
    %187 = vector.multi_reduction <add>, %186, %cst_114 [1] : vector<64x16xf32> to vector<64xf32>
    %188 = vector.shape_cast %187 : vector<64xf32> to vector<64x1xf32>
    %189 = tpu.reciprocal %188 {approx = true} : vector<64x1xf32> -> vector<64x1xf32>
    %190 = vector.broadcast %189 : vector<64x1xf32> to vector<64x16xf32>
    %191 = arith.mulf %186, %190 : vector<64x16xf32>
    %192 = vector.extract_strided_slice %102 {offsets = [16, 0], sizes = [4, 64], strides = [1, 1]} : vector<32x64xf32> to vector<4x64xf32>
    %cst_115 = arith.constant dense<0.000000e+00> : vector<4x16xf32>
    %193 = tpu.matmul %192, %191, %cst_115 {dimension_numbers = #tpu.dot_dimension_numbers<[1], [0], [0], [1], [0, 0, 1, 1], [], []>} : vector<4x64xf32>, vector<64x16xf32>, vector<4x16xf32> -> vector<4x16xf32>
    %c16 = arith.constant 16 : index
    %c0_116 = arith.constant 0 : index
    %194 = vector.load %arg21[%c16, %c0_116] : memref<32x16xf32, #tpu.memory_space<vmem>>, vector<4x16xf32>
    tpu.vector_store %arg21[%c16, %c0_116], %193 {strides = array<i32>} : memref<32x16xf32, #tpu.memory_space<vmem>>, vector<4x16xf32>,
    %195 = vector.extract_strided_slice %27 {offsets = [16, 0], sizes = [4, 16], strides = [1, 1]} : vector<32x16xf32> to vector<4x16xf32>
    %cst_117 = arith.constant dense<0.000000e+00> : vector<4x64xf32>
    %196 = tpu.matmul %195, %191, %cst_117 {dimension_numbers = #tpu.dot_dimension_numbers<[1], [1], [0], [0], [0, 0, 1, 0], [], []>} : vector<4x16xf32>, vector<64x16xf32>, vector<4x64xf32> -> vector<4x64xf32>
    %c16_118 = arith.constant 16 : index
    %c0_119 = arith.constant 0 : index
    %197 = vector.load %arg20[%c16_118, %c0_119] : memref<32x64xf32, #tpu.memory_space<vmem>>, vector<4x64xf32>
    tpu.vector_store %arg20[%c16_118, %c0_119], %196 {strides = array<i32>} : memref<32x64xf32, #tpu.memory_space<vmem>>, vector<4x64xf32>,
    %198 = vector.extract_strided_slice %101 {offsets = [20, 0], sizes = [4, 64], strides = [1, 1]} : vector<32x64xf32> to vector<4x64xf32>
    %199 = vector.extract_strided_slice %26 {offsets = [20, 0], sizes = [4, 16], strides = [1, 1]} : vector<32x16xf32> to vector<4x16xf32>
    %cst_120 = arith.constant dense<0.000000e+00> : vector<64x16xf32>
    %200 = tpu.matmul %198, %199, %cst_120 {dimension_numbers = #tpu.dot_dimension_numbers<[0], [0], [1], [1], [0, 1, 1, 1], [], []>} : vector<4x64xf32>, vector<4x16xf32>, vector<64x16xf32> -> vector<64x16xf32>
    %cst_121 = arith.constant dense<0xFF800000> : vector<64xf32>
    %201 = vector.multi_reduction <maximumf>, %200, %cst_121 [1] : vector<64x16xf32> to vector<64xf32>
    %202 = vector.shape_cast %201 : vector<64xf32> to vector<64x1xf32>
    %203 = vector.broadcast %202 : vector<64x1xf32> to vector<64x16xf32>
    %204 = arith.subf %200, %203 : vector<64x16xf32>
    %205 = math.exp %204 : vector<64x16xf32>
    %cst_122 = arith.constant dense<0.000000e+00> : vector<64xf32>
    %206 = vector.multi_reduction <add>, %205, %cst_122 [1] : vector<64x16xf32> to vector<64xf32>
    %207 = vector.shape_cast %206 : vector<64xf32> to vector<64x1xf32>
    %208 = tpu.reciprocal %207 {approx = true} : vector<64x1xf32> -> vector<64x1xf32>
    %209 = vector.broadcast %208 : vector<64x1xf32> to vector<64x16xf32>
    %210 = arith.mulf %205, %209 : vector<64x16xf32>
    %211 = vector.extract_strided_slice %102 {offsets = [20, 0], sizes = [4, 64], strides = [1, 1]} : vector<32x64xf32> to vector<4x64xf32>
    %cst_123 = arith.constant dense<0.000000e+00> : vector<4x16xf32>
    %212 = tpu.matmul %211, %210, %cst_123 {dimension_numbers = #tpu.dot_dimension_numbers<[1], [0], [0], [1], [0, 0, 1, 1], [], []>} : vector<4x64xf32>, vector<64x16xf32>, vector<4x16xf32> -> vector<4x16xf32>
    %c20 = arith.constant 20 : index
    %c0_124 = arith.constant 0 : index
    %213 = vector.load %arg21[%c20, %c0_124] : memref<32x16xf32, #tpu.memory_space<vmem>>, vector<4x16xf32>
    tpu.vector_store %arg21[%c20, %c0_124], %212 {strides = array<i32>} : memref<32x16xf32, #tpu.memory_space<vmem>>, vector<4x16xf32>,
    %214 = vector.extract_strided_slice %27 {offsets = [20, 0], sizes = [4, 16], strides = [1, 1]} : vector<32x16xf32> to vector<4x16xf32>
    %cst_125 = arith.constant dense<0.000000e+00> : vector<4x64xf32>
    %215 = tpu.matmul %214, %210, %cst_125 {dimension_numbers = #tpu.dot_dimension_numbers<[1], [1], [0], [0], [0, 0, 1, 0], [], []>} : vector<4x16xf32>, vector<64x16xf32>, vector<4x64xf32> -> vector<4x64xf32>
    %c20_126 = arith.constant 20 : index
    %c0_127 = arith.constant 0 : index
    %216 = vector.load %arg20[%c20_126, %c0_127] : memref<32x64xf32, #tpu.memory_space<vmem>>, vector<4x64xf32>
    tpu.vector_store %arg20[%c20_126, %c0_127], %215 {strides = array<i32>} : memref<32x64xf32, #tpu.memory_space<vmem>>, vector<4x64xf32>,
    %217 = vector.extract_strided_slice %101 {offsets = [24, 0], sizes = [4, 64], strides = [1, 1]} : vector<32x64xf32> to vector<4x64xf32>
    %218 = vector.extract_strided_slice %26 {offsets = [24, 0], sizes = [4, 16], strides = [1, 1]} : vector<32x16xf32> to vector<4x16xf32>
    %cst_128 = arith.constant dense<0.000000e+00> : vector<64x16xf32>
    %219 = tpu.matmul %217, %218, %cst_128 {dimension_numbers = #tpu.dot_dimension_numbers<[0], [0], [1], [1], [0, 1, 1, 1], [], []>} : vector<4x64xf32>, vector<4x16xf32>, vector<64x16xf32> -> vector<64x16xf32>
    %cst_129 = arith.constant dense<0xFF800000> : vector<64xf32>
    %220 = vector.multi_reduction <maximumf>, %219, %cst_129 [1] : vector<64x16xf32> to vector<64xf32>
    %221 = vector.shape_cast %220 : vector<64xf32> to vector<64x1xf32>
    %222 = vector.broadcast %221 : vector<64x1xf32> to vector<64x16xf32>
    %223 = arith.subf %219, %222 : vector<64x16xf32>
    %224 = math.exp %223 : vector<64x16xf32>
    %cst_130 = arith.constant dense<0.000000e+00> : vector<64xf32>
    %225 = vector.multi_reduction <add>, %224, %cst_130 [1] : vector<64x16xf32> to vector<64xf32>
    %226 = vector.shape_cast %225 : vector<64xf32> to vector<64x1xf32>
    %227 = tpu.reciprocal %226 {approx = true} : vector<64x1xf32> -> vector<64x1xf32>
    %228 = vector.broadcast %227 : vector<64x1xf32> to vector<64x16xf32>
    %229 = arith.mulf %224, %228 : vector<64x16xf32>
    %230 = vector.extract_strided_slice %102 {offsets = [24, 0], sizes = [4, 64], strides = [1, 1]} : vector<32x64xf32> to vector<4x64xf32>
    %cst_131 = arith.constant dense<0.000000e+00> : vector<4x16xf32>
    %231 = tpu.matmul %230, %229, %cst_131 {dimension_numbers = #tpu.dot_dimension_numbers<[1], [0], [0], [1], [0, 0, 1, 1], [], []>} : vector<4x64xf32>, vector<64x16xf32>, vector<4x16xf32> -> vector<4x16xf32>
    %c24 = arith.constant 24 : index
    %c0_132 = arith.constant 0 : index
    %232 = vector.load %arg21[%c24, %c0_132] : memref<32x16xf32, #tpu.memory_space<vmem>>, vector<4x16xf32>
    tpu.vector_store %arg21[%c24, %c0_132], %231 {strides = array<i32>} : memref<32x16xf32, #tpu.memory_space<vmem>>, vector<4x16xf32>,
    %233 = vector.extract_strided_slice %27 {offsets = [24, 0], sizes = [4, 16], strides = [1, 1]} : vector<32x16xf32> to vector<4x16xf32>
    %cst_133 = arith.constant dense<0.000000e+00> : vector<4x64xf32>
    %234 = tpu.matmul %233, %229, %cst_133 {dimension_numbers = #tpu.dot_dimension_numbers<[1], [1], [0], [0], [0, 0, 1, 0], [], []>} : vector<4x16xf32>, vector<64x16xf32>, vector<4x64xf32> -> vector<4x64xf32>
    %c24_134 = arith.constant 24 : index
    %c0_135 = arith.constant 0 : index
    %235 = vector.load %arg20[%c24_134, %c0_135] : memref<32x64xf32, #tpu.memory_space<vmem>>, vector<4x64xf32>
    tpu.vector_store %arg20[%c24_134, %c0_135], %234 {strides = array<i32>} : memref<32x64xf32, #tpu.memory_space<vmem>>, vector<4x64xf32>,
    %236 = vector.extract_strided_slice %101 {offsets = [28, 0], sizes = [4, 64], strides = [1, 1]} : vector<32x64xf32> to vector<4x64xf32>
    %237 = vector.extract_strided_slice %26 {offsets = [28, 0], sizes = [4, 16], strides = [1, 1]} : vector<32x16xf32> to vector<4x16xf32>
    %cst_136 = arith.constant dense<0.000000e+00> : vector<64x16xf32>
    %238 = tpu.matmul %236, %237, %cst_136 {dimension_numbers = #tpu.dot_dimension_numbers<[0], [0], [1], [1], [0, 1, 1, 1], [], []>} : vector<4x64xf32>, vector<4x16xf32>, vector<64x16xf32> -> vector<64x16xf32>
    %cst_137 = arith.constant dense<0xFF800000> : vector<64xf32>
    %239 = vector.multi_reduction <maximumf>, %238, %cst_137 [1] : vector<64x16xf32> to vector<64xf32>
    %240 = vector.shape_cast %239 : vector<64xf32> to vector<64x1xf32>
    %241 = vector.broadcast %240 : vector<64x1xf32> to vector<64x16xf32>
    %242 = arith.subf %238, %241 : vector<64x16xf32>
    %243 = math.exp %242 : vector<64x16xf32>
    %cst_138 = arith.constant dense<0.000000e+00> : vector<64xf32>
    %244 = vector.multi_reduction <add>, %243, %cst_138 [1] : vector<64x16xf32> to vector<64xf32>
    %245 = vector.shape_cast %244 : vector<64xf32> to vector<64x1xf32>
    %246 = tpu.reciprocal %245 {approx = true} : vector<64x1xf32> -> vector<64x1xf32>
    %247 = vector.broadcast %246 : vector<64x1xf32> to vector<64x16xf32>
    %248 = arith.mulf %243, %247 : vector<64x16xf32>
    %249 = vector.extract_strided_slice %102 {offsets = [28, 0], sizes = [4, 64], strides = [1, 1]} : vector<32x64xf32> to vector<4x64xf32>
    %cst_139 = arith.constant dense<0.000000e+00> : vector<4x16xf32>
    %250 = tpu.matmul %249, %248, %cst_139 {dimension_numbers = #tpu.dot_dimension_numbers<[1], [0], [0], [1], [0, 0, 1, 1], [], []>} : vector<4x64xf32>, vector<64x16xf32>, vector<4x16xf32> -> vector<4x16xf32>
    %c28 = arith.constant 28 : index
    %c0_140 = arith.constant 0 : index
    %251 = vector.load %arg21[%c28, %c0_140] : memref<32x16xf32, #tpu.memory_space<vmem>>, vector<4x16xf32>
    tpu.vector_store %arg21[%c28, %c0_140], %250 {strides = array<i32>} : memref<32x16xf32, #tpu.memory_space<vmem>>, vector<4x16xf32>,
    %252 = vector.extract_strided_slice %27 {offsets = [28, 0], sizes = [4, 16], strides = [1, 1]} : vector<32x16xf32> to vector<4x16xf32>
    %cst_141 = arith.constant dense<0.000000e+00> : vector<4x64xf32>
    %253 = tpu.matmul %252, %248, %cst_141 {dimension_numbers = #tpu.dot_dimension_numbers<[1], [1], [0], [0], [0, 0, 1, 0], [], []>} : vector<4x16xf32>, vector<64x16xf32>, vector<4x64xf32> -> vector<4x64xf32>
    %c28_142 = arith.constant 28 : index
    %c0_143 = arith.constant 0 : index
    %254 = vector.load %arg20[%c28_142, %c0_143] : memref<32x64xf32, #tpu.memory_space<vmem>>, vector<4x64xf32>
    tpu.vector_store %arg20[%c28_142, %c0_143], %253 {strides = array<i32>} : memref<32x64xf32, #tpu.memory_space<vmem>>, vector<4x64xf32>,
    %c0_144 = arith.constant 0 : index
    %c0_145 = arith.constant 0 : index
    %255 = vector.load %arg11[%c0_144, %c0_145] : memref<32x32xbf16, #tpu.memory_space<vmem>>, vector<32x32xbf16>
    %c0_146 = arith.constant 0 : index
    %c0_147 = arith.constant 0 : index
    %256 = vector.load %arg21[%c0_146, %c0_147] : memref<32x16xf32, #tpu.memory_space<vmem>>, vector<32x16xf32>
    %257 = arith.truncf %256 : vector<32x16xf32> to vector<32x16xbf16>
    %cst_148 = arith.constant dense<0.000000e+00> : vector<32x16xf32>
    %258 = tpu.matmul %255, %257, %cst_148 {dimension_numbers = #tpu.dot_dimension_numbers<[1], [0], [0], [1], [0, 0, 1, 1], [], []>} : vector<32x32xbf16>, vector<32x16xbf16>, vector<32x16xf32> -> vector<32x16xf32>
    %c0_149 = arith.constant 0 : index
    %c0_150 = arith.constant 0 : index
    %259 = vector.load %arg12[%c0_149, %c0_150] : memref<32x1xf32, #tpu.memory_space<vmem>>, vector<32x1xf32>
    %260 = vector.broadcast %259 : vector<32x1xf32> to vector<32x16xf32>
    %261 = arith.addf %258, %260 : vector<32x16xf32>
    %cst_151 = arith.constant 0.000000e+00 : f32
    %262 = vector.broadcast %cst_151 : f32 to vector<32x16xf32>
    %263 = arith.maximumf %261, %262 : vector<32x16xf32>
    %264 = arith.addf %263, %3 : vector<32x16xf32>
    %c0_152 = arith.constant 0 : index
    %c0_153 = arith.constant 0 : index
    %265 = vector.load %arg13[%c0_152, %c0_153] : memref<32x1xf32, #tpu.memory_space<vmem>>, vector<32x1xf32>
    %266 = vector.broadcast %265 : vector<32x1xf32> to vector<32x16xf32>
    %267 = arith.mulf %264, %266 : vector<32x16xf32>
    %c0_154 = arith.constant 0 : index
    %c0_155 = arith.constant 0 : index
    %268 = vector.load %arg14[%c0_154, %c0_155] : memref<32x1xf32, #tpu.memory_space<vmem>>, vector<32x1xf32>
    %269 = vector.broadcast %268 : vector<32x1xf32> to vector<32x16xf32>
    %270 = arith.addf %267, %269 : vector<32x16xf32>
    %cst_156 = arith.constant 0.000000e+00 : f32
    %271 = vector.broadcast %cst_156 : f32 to vector<32x16xf32>
    %272 = arith.maximumf %270, %271 : vector<32x16xf32>
    %c0_157 = arith.constant 0 : index
    %c0_158 = arith.constant 0 : index
    %c0_159 = arith.constant 0 : index
    %273 = vector.load %arg19[%c0_157, %c0_158, %c0_159] : memref<1x32x16xf32, #tpu.memory_space<vmem>>, vector<1x32x16xf32>
    %274 = vector.shape_cast %273 : vector<1x32x16xf32> to vector<32x16xf32>
    %275 = vector.shape_cast %272 : vector<32x16xf32> to vector<1x32x16xf32>
    tpu.vector_store %arg19[%c0_157, %c0_158, %c0_159], %275 {strides = array<i32>} : memref<1x32x16xf32, #tpu.memory_space<vmem>>, vector<1x32x16xf32>,
    %c0_160 = arith.constant 0 : index
    %c0_161 = arith.constant 0 : index
    %276 = vector.load %arg20[%c0_160, %c0_161] : memref<32x64xf32, #tpu.memory_space<vmem>>, vector<32x64xf32>
    %cst_162 = arith.constant 0.000000e+00 : f32
    %277 = vector.broadcast %cst_162 : f32 to vector<32x64xf32>
    %c0_163 = arith.constant 0 : index
    %c0_164 = arith.constant 0 : index
    %c0_165 = arith.constant 0 : index
    %278 = vector.load %arg15[%c0_163, %c0_164, %c0_165] : memref<9x32x1xf32, #tpu.memory_space<vmem>>, vector<1x32x1xf32>
    %279 = vector.shape_cast %278 : vector<1x32x1xf32> to vector<32x1xf32>
    %c0_166 = arith.constant 0 : index
    %c0_167 = arith.constant 0 : index
    %c0_168 = arith.constant 0 : index
    %280 = vector.load %arg10[%c0_166, %c0_167, %c0_168] : memref<9x64x64xf32, #tpu.memory_space<vmem>>, vector<1x64x64xf32>
    %281 = vector.shape_cast %280 : vector<1x64x64xf32> to vector<64x64xf32>
    %cst_169 = arith.constant dense<0.000000e+00> : vector<32x64xf32>
    %282 = tpu.matmul %276, %281, %cst_169 {dimension_numbers = #tpu.dot_dimension_numbers<[1], [0], [0], [1], [0, 0, 1, 1], [], []>} : vector<32x64xf32>, vector<64x64xf32>, vector<32x64xf32> -> vector<32x64xf32>
    %283 = vector.broadcast %279 : vector<32x1xf32> to vector<32x64xf32>
    %284 = arith.mulf %283, %282 : vector<32x64xf32>
    %285 = arith.addf %277, %284 : vector<32x64xf32>
    %c1_170 = arith.constant 1 : index
    %c0_171 = arith.constant 0 : index
    %c0_172 = arith.constant 0 : index
    %286 = vector.load %arg15[%c1_170, %c0_171, %c0_172] : memref<9x32x1xf32, #tpu.memory_space<vmem>>, vector<1x32x1xf32>
    %287 = vector.shape_cast %286 : vector<1x32x1xf32> to vector<32x1xf32>
    %c1_173 = arith.constant 1 : index
    %c0_174 = arith.constant 0 : index
    %c0_175 = arith.constant 0 : index
    %288 = vector.load %arg10[%c1_173, %c0_174, %c0_175] : memref<9x64x64xf32, #tpu.memory_space<vmem>>, vector<1x64x64xf32>
    %289 = vector.shape_cast %288 : vector<1x64x64xf32> to vector<64x64xf32>
    %cst_176 = arith.constant dense<0.000000e+00> : vector<32x64xf32>
    %290 = tpu.matmul %276, %289, %cst_176 {dimension_numbers = #tpu.dot_dimension_numbers<[1], [0], [0], [1], [0, 0, 1, 1], [], []>} : vector<32x64xf32>, vector<64x64xf32>, vector<32x64xf32> -> vector<32x64xf32>
    %291 = vector.broadcast %287 : vector<32x1xf32> to vector<32x64xf32>
    %292 = arith.mulf %291, %290 : vector<32x64xf32>
    %293 = arith.addf %285, %292 : vector<32x64xf32>
    %c2_177 = arith.constant 2 : index
    %c0_178 = arith.constant 0 : index
    %c0_179 = arith.constant 0 : index
    %294 = vector.load %arg15[%c2_177, %c0_178, %c0_179] : memref<9x32x1xf32, #tpu.memory_space<vmem>>, vector<1x32x1xf32>
    %295 = vector.shape_cast %294 : vector<1x32x1xf32> to vector<32x1xf32>
    %c2_180 = arith.constant 2 : index
    %c0_181 = arith.constant 0 : index
    %c0_182 = arith.constant 0 : index
    %296 = vector.load %arg10[%c2_180, %c0_181, %c0_182] : memref<9x64x64xf32, #tpu.memory_space<vmem>>, vector<1x64x64xf32>
    %297 = vector.shape_cast %296 : vector<1x64x64xf32> to vector<64x64xf32>
    %cst_183 = arith.constant dense<0.000000e+00> : vector<32x64xf32>
    %298 = tpu.matmul %276, %297, %cst_183 {dimension_numbers = #tpu.dot_dimension_numbers<[1], [0], [0], [1], [0, 0, 1, 1], [], []>} : vector<32x64xf32>, vector<64x64xf32>, vector<32x64xf32> -> vector<32x64xf32>
    %299 = vector.broadcast %295 : vector<32x1xf32> to vector<32x64xf32>
    %300 = arith.mulf %299, %298 : vector<32x64xf32>
    %301 = arith.addf %293, %300 : vector<32x64xf32>
    %c3_184 = arith.constant 3 : index
    %c0_185 = arith.constant 0 : index
    %c0_186 = arith.constant 0 : index
    %302 = vector.load %arg15[%c3_184, %c0_185, %c0_186] : memref<9x32x1xf32, #tpu.memory_space<vmem>>, vector<1x32x1xf32>
    %303 = vector.shape_cast %302 : vector<1x32x1xf32> to vector<32x1xf32>
    %c3_187 = arith.constant 3 : index
    %c0_188 = arith.constant 0 : index
    %c0_189 = arith.constant 0 : index
    %304 = vector.load %arg10[%c3_187, %c0_188, %c0_189] : memref<9x64x64xf32, #tpu.memory_space<vmem>>, vector<1x64x64xf32>
    %305 = vector.shape_cast %304 : vector<1x64x64xf32> to vector<64x64xf32>
    %cst_190 = arith.constant dense<0.000000e+00> : vector<32x64xf32>
    %306 = tpu.matmul %276, %305, %cst_190 {dimension_numbers = #tpu.dot_dimension_numbers<[1], [0], [0], [1], [0, 0, 1, 1], [], []>} : vector<32x64xf32>, vector<64x64xf32>, vector<32x64xf32> -> vector<32x64xf32>
    %307 = vector.broadcast %303 : vector<32x1xf32> to vector<32x64xf32>
    %308 = arith.mulf %307, %306 : vector<32x64xf32>
    %309 = arith.addf %301, %308 : vector<32x64xf32>
    %c4_191 = arith.constant 4 : index
    %c0_192 = arith.constant 0 : index
    %c0_193 = arith.constant 0 : index
    %310 = vector.load %arg15[%c4_191, %c0_192, %c0_193] : memref<9x32x1xf32, #tpu.memory_space<vmem>>, vector<1x32x1xf32>
    %311 = vector.shape_cast %310 : vector<1x32x1xf32> to vector<32x1xf32>
    %c4_194 = arith.constant 4 : index
    %c0_195 = arith.constant 0 : index
    %c0_196 = arith.constant 0 : index
    %312 = vector.load %arg10[%c4_194, %c0_195, %c0_196] : memref<9x64x64xf32, #tpu.memory_space<vmem>>, vector<1x64x64xf32>
    %313 = vector.shape_cast %312 : vector<1x64x64xf32> to vector<64x64xf32>
    %cst_197 = arith.constant dense<0.000000e+00> : vector<32x64xf32>
    %314 = tpu.matmul %276, %313, %cst_197 {dimension_numbers = #tpu.dot_dimension_numbers<[1], [0], [0], [1], [0, 0, 1, 1], [], []>} : vector<32x64xf32>, vector<64x64xf32>, vector<32x64xf32> -> vector<32x64xf32>
    %315 = vector.broadcast %311 : vector<32x1xf32> to vector<32x64xf32>
    %316 = arith.mulf %315, %314 : vector<32x64xf32>
    %317 = arith.addf %309, %316 : vector<32x64xf32>
    %c5_198 = arith.constant 5 : index
    %c0_199 = arith.constant 0 : index
    %c0_200 = arith.constant 0 : index
    %318 = vector.load %arg15[%c5_198, %c0_199, %c0_200] : memref<9x32x1xf32, #tpu.memory_space<vmem>>, vector<1x32x1xf32>
    %319 = vector.shape_cast %318 : vector<1x32x1xf32> to vector<32x1xf32>
    %c5_201 = arith.constant 5 : index
    %c0_202 = arith.constant 0 : index
    %c0_203 = arith.constant 0 : index
    %320 = vector.load %arg10[%c5_201, %c0_202, %c0_203] : memref<9x64x64xf32, #tpu.memory_space<vmem>>, vector<1x64x64xf32>
    %321 = vector.shape_cast %320 : vector<1x64x64xf32> to vector<64x64xf32>
    %cst_204 = arith.constant dense<0.000000e+00> : vector<32x64xf32>
    %322 = tpu.matmul %276, %321, %cst_204 {dimension_numbers = #tpu.dot_dimension_numbers<[1], [0], [0], [1], [0, 0, 1, 1], [], []>} : vector<32x64xf32>, vector<64x64xf32>, vector<32x64xf32> -> vector<32x64xf32>
    %323 = vector.broadcast %319 : vector<32x1xf32> to vector<32x64xf32>
    %324 = arith.mulf %323, %322 : vector<32x64xf32>
    %325 = arith.addf %317, %324 : vector<32x64xf32>
    %c6_205 = arith.constant 6 : index
    %c0_206 = arith.constant 0 : index
    %c0_207 = arith.constant 0 : index
    %326 = vector.load %arg15[%c6_205, %c0_206, %c0_207] : memref<9x32x1xf32, #tpu.memory_space<vmem>>, vector<1x32x1xf32>
    %327 = vector.shape_cast %326 : vector<1x32x1xf32> to vector<32x1xf32>
    %c6_208 = arith.constant 6 : index
    %c0_209 = arith.constant 0 : index
    %c0_210 = arith.constant 0 : index
    %328 = vector.load %arg10[%c6_208, %c0_209, %c0_210] : memref<9x64x64xf32, #tpu.memory_space<vmem>>, vector<1x64x64xf32>
    %329 = vector.shape_cast %328 : vector<1x64x64xf32> to vector<64x64xf32>
    %cst_211 = arith.constant dense<0.000000e+00> : vector<32x64xf32>
    %330 = tpu.matmul %276, %329, %cst_211 {dimension_numbers = #tpu.dot_dimension_numbers<[1], [0], [0], [1], [0, 0, 1, 1], [], []>} : vector<32x64xf32>, vector<64x64xf32>, vector<32x64xf32> -> vector<32x64xf32>
    %331 = vector.broadcast %327 : vector<32x1xf32> to vector<32x64xf32>
    %332 = arith.mulf %331, %330 : vector<32x64xf32>
    %333 = arith.addf %325, %332 : vector<32x64xf32>
    %c7_212 = arith.constant 7 : index
    %c0_213 = arith.constant 0 : index
    %c0_214 = arith.constant 0 : index
    %334 = vector.load %arg15[%c7_212, %c0_213, %c0_214] : memref<9x32x1xf32, #tpu.memory_space<vmem>>, vector<1x32x1xf32>
    %335 = vector.shape_cast %334 : vector<1x32x1xf32> to vector<32x1xf32>
    %c7_215 = arith.constant 7 : index
    %c0_216 = arith.constant 0 : index
    %c0_217 = arith.constant 0 : index
    %336 = vector.load %arg10[%c7_215, %c0_216, %c0_217] : memref<9x64x64xf32, #tpu.memory_space<vmem>>, vector<1x64x64xf32>
    %337 = vector.shape_cast %336 : vector<1x64x64xf32> to vector<64x64xf32>
    %cst_218 = arith.constant dense<0.000000e+00> : vector<32x64xf32>
    %338 = tpu.matmul %276, %337, %cst_218 {dimension_numbers = #tpu.dot_dimension_numbers<[1], [0], [0], [1], [0, 0, 1, 1], [], []>} : vector<32x64xf32>, vector<64x64xf32>, vector<32x64xf32> -> vector<32x64xf32>
    %339 = vector.broadcast %335 : vector<32x1xf32> to vector<32x64xf32>
    %340 = arith.mulf %339, %338 : vector<32x64xf32>
    %341 = arith.addf %333, %340 : vector<32x64xf32>
    %c8_219 = arith.constant 8 : index
    %c0_220 = arith.constant 0 : index
    %c0_221 = arith.constant 0 : index
    %342 = vector.load %arg15[%c8_219, %c0_220, %c0_221] : memref<9x32x1xf32, #tpu.memory_space<vmem>>, vector<1x32x1xf32>
    %343 = vector.shape_cast %342 : vector<1x32x1xf32> to vector<32x1xf32>
    %c8_222 = arith.constant 8 : index
    %c0_223 = arith.constant 0 : index
    %c0_224 = arith.constant 0 : index
    %344 = vector.load %arg10[%c8_222, %c0_223, %c0_224] : memref<9x64x64xf32, #tpu.memory_space<vmem>>, vector<1x64x64xf32>
    %345 = vector.shape_cast %344 : vector<1x64x64xf32> to vector<64x64xf32>
    %cst_225 = arith.constant dense<0.000000e+00> : vector<32x64xf32>
    %346 = tpu.matmul %276, %345, %cst_225 {dimension_numbers = #tpu.dot_dimension_numbers<[1], [0], [0], [1], [0, 0, 1, 1], [], []>} : vector<32x64xf32>, vector<64x64xf32>, vector<32x64xf32> -> vector<32x64xf32>
    %347 = vector.broadcast %343 : vector<32x1xf32> to vector<32x64xf32>
    %348 = arith.mulf %347, %346 : vector<32x64xf32>
    %349 = arith.addf %341, %348 : vector<32x64xf32>
    %cst_226 = arith.constant 0.000000e+00 : f32
    %350 = vector.broadcast %cst_226 : f32 to vector<32x64xf32>
    %351 = arith.maximumf %349, %350 : vector<32x64xf32>
    %352 = arith.addf %351, %1 : vector<32x64xf32>
    %c0_227 = arith.constant 0 : index
    %c0_228 = arith.constant 0 : index
    %353 = vector.load %arg16[%c0_227, %c0_228] : memref<32x1xf32, #tpu.memory_space<vmem>>, vector<32x1xf32>
    %354 = vector.broadcast %353 : vector<32x1xf32> to vector<32x64xf32>
    %355 = arith.mulf %352, %354 : vector<32x64xf32>
    %c0_229 = arith.constant 0 : index
    %c0_230 = arith.constant 0 : index
    %356 = vector.load %arg17[%c0_229, %c0_230] : memref<32x1xf32, #tpu.memory_space<vmem>>, vector<32x1xf32>
    %357 = vector.broadcast %356 : vector<32x1xf32> to vector<32x64xf32>
    %358 = arith.addf %355, %357 : vector<32x64xf32>
    %cst_231 = arith.constant 0.000000e+00 : f32
    %359 = vector.broadcast %cst_231 : f32 to vector<32x64xf32>
    %360 = arith.maximumf %358, %359 : vector<32x64xf32>
    %c0_232 = arith.constant 0 : index
    %c0_233 = arith.constant 0 : index
    %c0_234 = arith.constant 0 : index
    %361 = vector.load %arg18[%c0_232, %c0_233, %c0_234] : memref<1x32x64xf32, #tpu.memory_space<vmem>>, vector<1x32x64xf32>
    %362 = vector.shape_cast %361 : vector<1x32x64xf32> to vector<32x64xf32>
    %363 = vector.shape_cast %360 : vector<32x64xf32> to vector<1x32x64xf32>
    tpu.vector_store %arg18[%c0_232, %c0_233, %c0_234], %363 {strides = array<i32>} : memref<1x32x64xf32, #tpu.memory_space<vmem>>, vector<1x32x64xf32>,
    return
  }
  func.func @transform_0(%arg0: i32) -> (i32, i32, i32) {
    %c0_i32 = arith.constant 0 : i32
    %c0_i32_0 = arith.constant 0 : i32
    %c0_i32_1 = arith.constant 0 : i32
    return %arg0, %c0_i32, %c0_i32_0 : i32, i32, i32
  }
  func.func @transform_1(%arg0: i32) -> (i32, i32, i32) {
    %c0_i32 = arith.constant 0 : i32
    %c0_i32_0 = arith.constant 0 : i32
    %c0_i32_1 = arith.constant 0 : i32
    return %arg0, %c0_i32, %c0_i32_0 : i32, i32, i32
  }
  func.func @transform_2(%arg0: i32) -> (i32, i32) {
    %c0_i32 = arith.constant 0 : i32
    %c0_i32_0 = arith.constant 0 : i32
    %c0_i32_1 = arith.constant 0 : i32
    return %c0_i32, %c0_i32_0 : i32, i32
  }
  func.func @transform_3(%arg0: i32) -> (i32, i32) {
    %c0_i32 = arith.constant 0 : i32
    %c0_i32_0 = arith.constant 0 : i32
    %c0_i32_1 = arith.constant 0 : i32
    return %c0_i32, %c0_i32_0 : i32, i32
  }
  func.func @transform_4(%arg0: i32) -> (i32, i32) {
    %c0_i32 = arith.constant 0 : i32
    %c0_i32_0 = arith.constant 0 : i32
    %c0_i32_1 = arith.constant 0 : i32
    return %c0_i32, %c0_i32_0 : i32, i32
  }
  func.func @transform_5(%arg0: i32) -> (i32, i32) {
    %c0_i32 = arith.constant 0 : i32
    %c0_i32_0 = arith.constant 0 : i32
    %c0_i32_1 = arith.constant 0 : i32
    return %c0_i32, %c0_i32_0 : i32, i32
  }
  func.func @transform_6(%arg0: i32) -> (i32, i32) {
    %c0_i32 = arith.constant 0 : i32
    %c0_i32_0 = arith.constant 0 : i32
    %c0_i32_1 = arith.constant 0 : i32
    return %c0_i32, %c0_i32_0 : i32, i32
  }
  func.func @transform_7(%arg0: i32) -> (i32, i32) {
    %c0_i32 = arith.constant 0 : i32
    %c0_i32_0 = arith.constant 0 : i32
    %c0_i32_1 = arith.constant 0 : i32
    return %c0_i32, %c0_i32_0 : i32, i32
  }
  func.func @transform_8(%arg0: i32) -> (i32, i32, i32) {
    %c0_i32 = arith.constant 0 : i32
    %c0_i32_0 = arith.constant 0 : i32
    %c0_i32_1 = arith.constant 0 : i32
    %c0_i32_2 = arith.constant 0 : i32
    return %c0_i32, %c0_i32_0, %c0_i32_1 : i32, i32, i32
  }
  func.func @transform_9(%arg0: i32) -> (i32, i32, i32) {
    %c0_i32 = arith.constant 0 : i32
    %c0_i32_0 = arith.constant 0 : i32
    %c0_i32_1 = arith.constant 0 : i32
    %c0_i32_2 = arith.constant 0 : i32
    return %c0_i32, %c0_i32_0, %c0_i32_1 : i32, i32, i32
  }
  func.func @transform_10(%arg0: i32) -> (i32, i32) {
    %c0_i32 = arith.constant 0 : i32
    %c0_i32_0 = arith.constant 0 : i32
    %c0_i32_1 = arith.constant 0 : i32
    return %c0_i32, %c0_i32_0 : i32, i32
  }
  func.func @transform_11(%arg0: i32) -> (i32, i32) {
    %c0_i32 = arith.constant 0 : i32
    %c0_i32_0 = arith.constant 0 : i32
    %c0_i32_1 = arith.constant 0 : i32
    return %c0_i32, %c0_i32_0 : i32, i32
  }
  func.func @transform_12(%arg0: i32) -> (i32, i32) {
    %c0_i32 = arith.constant 0 : i32
    %c0_i32_0 = arith.constant 0 : i32
    %c0_i32_1 = arith.constant 0 : i32
    return %c0_i32, %c0_i32_0 : i32, i32
  }
  func.func @transform_13(%arg0: i32) -> (i32, i32) {
    %c0_i32 = arith.constant 0 : i32
    %c0_i32_0 = arith.constant 0 : i32
    %c0_i32_1 = arith.constant 0 : i32
    return %c0_i32, %c0_i32_0 : i32, i32
  }
  func.func @transform_14(%arg0: i32) -> (i32, i32, i32) {
    %c0_i32 = arith.constant 0 : i32
    %c0_i32_0 = arith.constant 0 : i32
    %c0_i32_1 = arith.constant 0 : i32
    %c0_i32_2 = arith.constant 0 : i32
    return %c0_i32, %c0_i32_0, %c0_i32_1 : i32, i32, i32
  }
  func.func @transform_15(%arg0: i32) -> (i32, i32) {
    %c0_i32 = arith.constant 0 : i32
    %c0_i32_0 = arith.constant 0 : i32
    %c0_i32_1 = arith.constant 0 : i32
    return %c0_i32, %c0_i32_0 : i32, i32
  }
  func.func @transform_16(%arg0: i32) -> (i32, i32) {
    %c0_i32 = arith.constant 0 : i32
    %c0_i32_0 = arith.constant 0 : i32
    %c0_i32_1 = arith.constant 0 : i32
    return %c0_i32, %c0_i32_0 : i32, i32
  }
  func.func @transform_17(%arg0: i32) -> (i32, i32, i32) {
    %c0_i32 = arith.constant 0 : i32
    %c0_i32_0 = arith.constant 0 : i32
    %c0_i32_1 = arith.constant 0 : i32
    return %arg0, %c0_i32, %c0_i32_0 : i32, i32, i32
  }
  func.func @transform_18(%arg0: i32) -> (i32, i32, i32) {
    %c0_i32 = arith.constant 0 : i32
    %c0_i32_0 = arith.constant 0 : i32
    %c0_i32_1 = arith.constant 0 : i32
    return %arg0, %c0_i32, %c0_i32_0 : i32, i32, i32
  }
}

</mosaic_0001>

<bundles_post_ra>
// kernel: double_multifreq_forward.1
= control target key start
LH: loop header
LB: loop body
LE: loop exit
PB: predicated region body
PF: predicated region fallthrough
CT: control target
= control target key end

     0   :  { %s9887_s27 = smov 0   ;;  %s12547_s0 = inlined_call_operand.vmem [shape: f32[2,32,64], index: 0, kind: input, shape index: {}]   ;;  %s12548_s1 = inlined_call_operand.vmem [shape: f32[2,32,16], index: 1, kind: input, shape index: {}]   ;;  %s12549_s2 = inlined_call_operand.vmem [shape: bf16[64,32], index: 2, kind: input, shape index: {}]   ;;  %s12550_s3 = inlined_call_operand.vmem [shape: f32[64,1], index: 3, kind: input, shape index: {}]   ;;  %s12551_s4 = inlined_call_operand.vmem [shape: bf16[32,32], index: 4, kind: input, shape index: {}]   ;;  %s12552_s5 = inlined_call_operand.vmem [shape: f32[32,1], index: 5, kind: input, shape index: {}]   ;;  %s12553_s6 = inlined_call_operand.vmem [shape: bf16[64,32], index: 6, kind: input, shape index: {}]   ;;  %s12554_s7 = inlined_call_operand.vmem [shape: f32[64,1], index: 7, kind: input, shape index: {}]   ;;  %s12555_s8 = inlined_call_operand.vmem [shape: f32[9,64,1], index: 8, kind: input, shape index: {}]   ;;  %s12556_s9 = inlined_call_operand.vmem [shape: f32[9,64,64], index: 9, kind: input, shape index: {}]   ;;  %s12557_s10 = inlined_call_operand.vmem [shape: bf16[32,32], index: 10, kind: input, shape index: {}]   ;;  %s12558_s11 = inlined_call_operand.vmem [shape: f32[32,1], index: 11, kind: input, shape index: {}]   ;;  %s12559_s12 = inlined_call_operand.vmem [shape: f32[32,1], index: 12, kind: input, shape index: {}]   ;;  %s12560_s13 = inlined_call_operand.vmem [shape: f32[32,1], index: 13, kind: input, shape index: {}]   ;;  %s12561_s14 = inlined_call_operand.vmem [shape: f32[9,32,1], index: 14, kind: input, shape index: {}]   ;;  %s12562_s15 = inlined_call_operand.vmem [shape: f32[32,1], index: 15, kind: input, shape index: {}]   ;;  %s12563_s16 = inlined_call_operand.vmem [shape: f32[32,1], index: 16, kind: input, shape index: {}]   ;;  %s12564_s17 = inlined_call_operand.vmem [shape: f32[2,32,64], index: 17, kind: output, shape index: {0}]   ;;  %s12565_s18 = inlined_call_operand.vmem [shape: f32[2,32,16], index: 18, kind: output, shape index: {1}]  }
   0x1   :  { %12569 = sst [smem:[#allocation35_spill]] %s12547_s0 }
   0x2   :  { %12570 = sst [smem:[#allocation36_spill]] %s12548_s1 }
   0x3   :  { %12571 = sst [smem:[#allocation37_spill]] %s12549_s2 }
   0x4 LB: > { %s7571_s28 = sadd.s32 4294967295, %s9787_s27   ;;  %p7575_p0 = scmp.ge.s32.totalorder %s9787_s27, 1  ;;  %s9787_s27 = sphi %s9887_s27, %s29_s27  }
   0x5   : > { %p525_p1 = scmp.lt.s32.totalorder %s9787_s27, 3 }
   0x7   : > { %p526_p2 = pnand %p7575_p0, %p525_p1 }
   0x9   : > { %529 = sbr.rel (%p526_p2) target bundleno = 4606 (0x11fe), region = 88 }
   0xe   : > { %p589_p3 = scmp.lt.s32.totalorder %s7571_s28, 1  ;;  %s12572_s0 = sld [smem:[#allocation37_spill]]  ;;  %vm696_vm0 = vcmask 261120   ;;  %v9506_v1 = vld [vmem:[%s12551_s4] sm:$0xff]   ;;  %v9789_v2 = vmov 0   ;;  %v790_v14 = vld [vmem:[%s12552_s5 + $0x10] sm:$0xff] }
   0xf   : > { %8602 = vmatprep.mubr.msk.bf16.mxu1 %vm696_vm0, %v9506_v1  ;;  %9503 = vset.pattern.permute.xlu0 %v9789_v2  ;;  %s12573_s2 = sld [smem:[#allocation35_spill]]  ;;  %v788_v16 = vld [vmem:[%s12552_s5] sm:$0xff]  ;;  %v791_v17 = vld [vmem:[%s12552_s5 + $0x18] sm:$0xff]  ;;  %v789_v19 = vld [vmem:[%s12552_s5 + $0x8] sm:$0xff]  ;;  %vm1052_vm1 = vcmask 523264   ;;  %vm2727_vm2 = vcmask 1043456  }
  0x10   : > { %s12643_s28 = smov (!%p589_p3, %s7571_s28), 1  ;;  %9504 = vset.pattern.permute.xlu1 %v9789_v2  ;;  %s12574_s26 = sld [smem:[#allocation36_spill]]  ;;  %804 = vperm.xlu0 %9503, %v790_v14   ;;  %v9508_v20 = vld [vmem:[%s12551_s4 + $0x8] sm:$0xff]   ;;  %v628_v22 = vld [vmem:[%s12550_s3] sm:$0xff]  ;;  %v630_v24 = vld [vmem:[%s12550_s3 + $0x10] sm:$0xff]  ;;  %vm2702_vm3 = vcmask 31744  }
  0x11   : > { %s9903_s20 = sshll.u32 %s12643_s28, 5  ;;  %794 = vperm.xlu1 %9504, %v788_v16   ;;  %v629_v23 = vld [vmem:[%s12550_s3 + $0x8] sm:$0xff]  ;;  %v631_v26 = vld [vmem:[%s12550_s3 + $0x18] sm:$0xff]  ;;  %v632_v27 = vld [vmem:[%s12550_s3 + $0x20] sm:$0xff]  ;;  %vm2836_vm4 = vcmask 130048   ;;  %vm9791_vm5 = vmmov 0  }
  0x12   : > { %v633_v28 = vld [vmem:[%s12550_s3 + $0x28] sm:$0xff]  ;;  %v634_v29 = vld [vmem:[%s12550_s3 + $0x30] sm:$0xff]  ;;  %v635_v30 = vld [vmem:[%s12550_s3 + $0x38] sm:$0xff]  ;;  %vm2998_vm6 = vcmask 125952   ;;  %vm3097_vm7 = vcmask 519168   ;;  %s603_s25 = scalar_lea.vmem %s12564_s17, %s9903_s20 }
  0x13   : > { %v1036_v31 = vld [vmem:[%s12555_s8] sm:$0xff]  ;;  %v1051_v34 = vld [vmem:[%s12556_s9 + $0x38] sm:$0xff]  ;;  %v1050_v37 = vld [vmem:[%s12556_s9 + $0x30] sm:$0xff] }
  0x14   : > { %v9505_v0 = vld [vmem:[%s12572_s0] sm:$0xff]   ;;  %v9507_v18 = vld [vmem:[%s12572_s0 + $0x8] sm:$0xff]   ;;  %809 = vperm.xlu0 %9503, %v791_v17   ;;  %v9509_v21 = vld [vmem:[%s12572_s0 + $0x10] sm:$0xff]  }
  0x15   : > { %8590 = vmatprep.mubr.msk.bf16.mxu0 %vm696_vm0, %v9505_v0  ;;  %s9909_s23 = scalar_lea.vmem %s12573_s2, %s9903_s20  ;;  %799 = vperm.xlu1 %9504, %v789_v19   ;;  %v9510_v25 = vld [vmem:[%s12572_s0 + $0x18] sm:$0xff]   ;;  %v7612_v32 = vld [vmem:[%s12555_s8 + $0x40] sm:$0xff]  ;;  %v1049_v38 = vld [vmem:[%s12556_s9 + $0x28] sm:$0xff]  ;;  %s608_s2 = scalar_lea.vmem %s12565_s18, %s9903_s20 }
  0x16   : > { %v612_v3 = vld [vmem:[%s9909_s23 + $0x10] sm:$0xff]  ;;  %v613_v4 = vld [vmem:[%s9909_s23 + $0x18] sm:$0xff]  ;;  %s9917_s28 = scalar_lea.vmem %s12574_s26, %s9903_s20  ;;  %v610_v5 = vld [vmem:[%s9909_s23] sm:$0xff] }
  0x17   : > { %v627_v6 = vpack.c.bf16 %v613_v4, %v612_v3  ;;  %v616_v7 = vld [vmem:[%s9917_s28 + $0x10] sm:$0xff]  ;;  %v617_v8 = vld [vmem:[%s9917_s28 + $0x18] sm:$0xff]  ;;  %v611_v9 = vld [vmem:[%s9909_s23 + $0x8] sm:$0xff] }
  0x18   : > { %v787_v10 = vpack.c.bf16 %v617_v8, %v616_v7  ;;  %v626_v11 = vpack.c.bf16 %v611_v9, %v610_v5  ;;  %v614_v12 = vld [vmem:[%s9917_s28] sm:$0xff]  ;;  %v615_v13 = vld [vmem:[%s9917_s28 + $0x8] sm:$0xff]  ;;  %638 = vperm.xlu0 %9503, %v628_v22   ;;  %v1047_v45 = vld [vmem:[%s12556_s9 + $0x18] sm:$0xff] }
  0x19   : > { %8586 = vmatprep.subr.bf16.mxu0 %v627_v6  ;;  %v786_v15 = vpack.c.bf16 %v615_v13, %v614_v12  ;;  %643 = vperm.xlu1 %9504, %v629_v23   ;;  %v7636_v33 = vld [vmem:[%s12555_s8 + $0x80] sm:$0xff]  ;;  %v1046_v46 = vld [vmem:[%s12556_s9 + $0x10] sm:$0xff]  ;;  %v1045_v47 = vld [vmem:[%s12556_s9 + $0x8] sm:$0xff] }
  0x1a   : > { %8598 = vmatprep.subr.bf16.mxu1 %v787_v10  ;;  %8587 = vmatpush3.bf16.msra.mxu0 %v627_v6  ;;  %v7660_v35 = vld [vmem:[%s12555_s8 + $0xc0] sm:$0xff]  ;;  %v7651_v49 = vld [vmem:[%s12556_s9 + $0xb8] sm:$0xff]  ;;  %v7650_v23 = vld [vmem:[%s12556_s9 + $0xb0] sm:$0xff] }
  0x1b   : > { %8599 = vmatpush3.bf16.msra.mxu1 %v787_v10  ;;  %8588 = vmatprep.subr.bf16.mxu0 %v626_v11  ;;  %v7684_v36 = vld [vmem:[%s12555_s8 + $0x100] sm:$0xff] }
  0x1c   : > { %8600 = vmatprep.subr.bf16.mxu1 %v786_v15  ;;  %648 = vperm.xlu0 %9503, %v630_v24   ;;  %v7708_v39 = vld [vmem:[%s12555_s8 + $0x140] sm:$0xff] }
  0x1d   : > { %653 = vperm.xlu1 %9504, %v631_v26   ;;  %v7732_v40 = vld [vmem:[%s12555_s8 + $0x180] sm:$0xff] }
  0x1e   : > { %8589 = vmatpush3.bf16.msra.mxu0 %v626_v11  ;;  %v7756_v41 = vld [vmem:[%s12555_s8 + $0x1c0] sm:$0xff] }
  0x1f   : > { %8601 = vmatpush3.bf16.msra.mxu1 %v786_v15  ;;  %8618 = vmatprep.subr.mxu0 %v1051_v34  ;;  %v7780_v42 = vld [vmem:[%s12555_s8 + $0x200] sm:$0xff] }
  0x20   : > { %658 = vperm.xlu0 %9503, %v632_v27   ;;  %v891_v43 = vld [vmem:[%s12554_s7] sm:$0xff] }
  0x21   : > { %8591 = vmatmul.mubr.msk.bf16.vlgmr.msra.gmra.mxu0 %vm696_vm0, %v9507_v18  ;;  %663 = vperm.xlu1 %9504, %v633_v28   ;;  %v1048_v44 = vld [vmem:[%s12556_s9 + $0x20] sm:$0xff]  ;;  %v7649_v28 = vld [vmem:[%s12556_s9 + $0xa8] sm:$0xff] }
  0x22   : > { %8603 = vmatmul.mubr.msk.bf16.vlgmr.msra.gmra.mxu1 %vm696_vm0, %v9508_v20  ;;  %8594 = vmatprep.mubr.msk.bf16.mxu0 %vm696_vm0, %v9509_v21  ;;  %v1044_v48 = vld [vmem:[%s12556_s9] sm:$0xff] }
  0x23   : > { %8619 = vmatpush3.msra.mxu0 %v1051_v34  ;;  %v9511_v50 = vld [vmem:[%s12553_s6] sm:$0xff]  }
  0x24   : > { %668 = vperm.xlu0 %9503, %v634_v29   ;;  %8620 = vmatprep.subr.mxu0 %v1050_v37 }
  0x25   : > { %673 = vperm.xlu1 %9504, %v635_v30   ;;  %8621 = vmatpush3.msra.mxu0 %v1050_v37 }
  0x26   : > { %8622 = vmatprep.subr.mxu0 %v1049_v38  ;;  %8610 = vmatprep.mubr.msk.bf16.mxu1 %vm696_vm0, %v9511_v50  ;;  %v9514_v50 = vld [vmem:[%s12553_s6 + $0x18] sm:$0xff]  }
  0x27   : > { %8623 = vmatpush3.msra.mxu0 %v1049_v38  ;;  %v7647_v38 = vld [vmem:[%s12556_s9 + $0x98] sm:$0xff] }
  0x28   : > { %1184 = vperm.xlu0 %9503, %v1036_v31   ;;  %8624 = vmatprep.subr.mxu0 %v1048_v44 }
  0x29   : > { %8595 = vmatmul.mubr.msk.bf16.gmra.mxu0 %vm696_vm0, %v9510_v25  ;;  %1363 = vperm.xlu1 %9504, %v7612_v32  }
  0x2a   : > { %8625 = vmatpush3.msra.mxu0 %v1048_v44  ;;  %v7625_v44 = vld [vmem:[%s12556_s9 + $0x68] sm:$0xff] }
  0x2b   : > { %8626 = vmatprep.subr.mxu0 %v1047_v45 }
  0x2c   : > { %1542 = vperm.xlu0 %9503, %v7636_v33   ;;  %8627 = vmatpush3.msra.mxu0 %v1047_v45  ;;  %v7627_v33 = vld [vmem:[%s12556_s9 + $0x78] sm:$0xff]  ;;  %v7645_v45 = vld [vmem:[%s12556_s9 + $0x88] sm:$0xff] }
  0x2d   : > { %1721 = vperm.xlu1 %9504, %v7660_v35   ;;  %8628 = vmatprep.subr.mxu0 %v1046_v46  ;;  %v7648_v35 = vld [vmem:[%s12556_s9 + $0xa0] sm:$0xff] }
  0x2e   : > { %8629 = vmatpush3.msra.mxu0 %v1046_v46 }
  0x2f   : > { %8630 = vmatprep.subr.mxu0 %v1045_v47 }
  0x30   : > { %1900 = vperm.xlu0 %9503, %v7684_v36   ;;  %8631 = vmatpush3.msra.mxu0 %v1045_v47  ;;  %v9512_v36 = vld [vmem:[%s12553_s6 + $0x8] sm:$0xff]   ;;  %v7624_v47 = vld [vmem:[%s12556_s9 + $0x60] sm:$0xff] }
  0x31   : > { %2079 = vperm.xlu1 %9504, %v7708_v39   ;;  %8632 = vmatprep.subr.mxu0 %v1044_v48 }
  0x32   : > { %8633 = vmatpush3.msra.mxu0 %v1044_v48  ;;  %v9513_v48 = vld [vmem:[%s12553_s6 + $0x10] sm:$0xff]  }
  0x33   : > { %8674 = vmatprep.subr.mxu0 %v7651_v49 }
  0x34   : > { %2258 = vperm.xlu0 %9503, %v7732_v40  }
  0x35   : > { %2437 = vperm.xlu1 %9504, %v7756_v41  }
  0x38   : > { %2616 = vperm.xlu0 %9503, %v7780_v42   ;;  %v7626_v42 = vld [vmem:[%s12556_s9 + $0x70] sm:$0xff] }
  0x39   : > { %901 = vperm.xlu1 %9504, %v891_v43   ;;  %v7646_v43 = vld [vmem:[%s12556_s9 + $0x90] sm:$0xff] }
  0x8b   : > { %v805_v51 = vpop.permute.xlu0 %804 }
  0x8c   : > { %v795_v52 = vpop.permute.xlu1 %794 }
  0x8f   : > { %v810_v53 = vpop.permute.xlu0 %809 }
  0x90   : > { %v800_v54 = vpop.permute.xlu1 %799 }
  0x93   : > { %v639_v55 = vpop.permute.xlu0 %638 }
  0x94   : > { %v644_v57 = vpop.permute.xlu1 %643 }
  0x97   : > { %v649_v60 = vpop.permute.xlu0 %648 }
  0x98   : > { %v654_v7 = vpop.permute.xlu1 %653 }
  0x9b   : > { %v659_v14 = vpop.permute.xlu0 %658 }
  0x9c   : > { %v664_v26 = vpop.permute.xlu1 %663 }
  0x9f   : > { %v669_v31 = vpop.permute.xlu0 %668 }
  0xa0   : > { %v674_v39 = vpop.permute.xlu1 %673 }
  0xe1   : > { %v8592_v56 = vpop.f32.mrf.mxu0 }
  0xe2   : > { %v8604_v58 = vpop.f32.mrf.mxu1  ;;  %v752_v1 = vadd.f32 %v8592_v56, %v649_v60  ;;  %v7697_v56 = vld [vmem:[%s12556_s9 + $0x128] sm:$0xff]  ;;  %v7695_v60 = vld [vmem:[%s12556_s9 + $0x118] sm:$0xff] }
  0xe3   : > { %v743_v59 = vpop.f32.mrf.mxu0  ;;  %v871_v63 = vadd.f32 %v8604_v58, %v805_v51  ;;  %v7623_v51 = vld [vmem:[%s12556_s9 + $0x58] sm:$0xff]  ;;  %v7696_v58 = vld [vmem:[%s12556_s9 + $0x120] sm:$0xff] }
  0xe4   : > { %v744_v61 = vadd.f32 %v743_v59, %v639_v55  ;;  %v862_v62 = vpop.f32.mrf.mxu1  ;;  %v10042_v15 = vmax.f32 %v752_v1, 0.0  ;;  %v7621_v55 = vld [vmem:[%s12556_s9 + $0x48] sm:$0xff]  ;;  %v7675_v59 = vld [vmem:[%s12556_s9 + $0xf8] sm:$0xff]  ;;  %v7672_v1 = vld [vmem:[%s12556_s9 + $0xe0] sm:$0xff] }
  0xe5   : > { %v8593_v0 = vpop.f32.mrf.mxu0  ;;  %v863_v4 = vadd.f32 %v862_v62, %v795_v52  ;;  %v879_v10 = vmax.f32 %v871_v63, 0.0  ;;  %v7699_v52 = vld [vmem:[%s12556_s9 + $0x138] sm:$0xff]  ;;  %v7694_v62 = vld [vmem:[%s12556_s9 + $0x110] sm:$0xff]  ;;  %v7673_v63 = vld [vmem:[%s12556_s9 + $0xe8] sm:$0xff] }
  0xe6   : > { %v10038_v2 = vmax.f32 %v744_v61, 0.0  ;;  %v8605_v3 = vpop.f32.mrf.mxu1  ;;  %v755_v18 = vadd.f32 %v8593_v0, %v654_v7  ;;  %v7674_v61 = vld [vmem:[%s12556_s9 + $0xf0] sm:$0xff]  ;;  %v7693_v0 = vld [vmem:[%s12556_s9 + $0x108] sm:$0xff] }
  0xe7   : > { %v874_v5 = vadd.f32 %v8605_v3, %v810_v53  ;;  %v746_v6 = vpop.f32.mrf.mxu0  ;;  %v877_v17 = vmax.f32 %v863_v4, 0.0  ;;  %v7622_v53 = vld [vmem:[%s12556_s9 + $0x50] sm:$0xff]  ;;  %v7692_v3 = vld [vmem:[%s12556_s9 + $0x100] sm:$0xff]  ;;  %v7671_v4 = vld [vmem:[%s12556_s9 + $0xd8] sm:$0xff] }
  0xe8   : > { %v747_v8 = vadd.f32 %v746_v6, %v644_v57  ;;  %v865_v9 = vpop.f32.mrf.mxu1  ;;  %8634 = vmatprep.mubr.msk.f32.mxu0 %vm1052_vm1, %v10038_v2  ;;  %v10058_v29 = vmax.f32 %v755_v18, 0.0  ;;  %v7620_v57 = vld [vmem:[%s12556_s9 + $0x40] sm:$0xff]  ;;  %v7670_v6 = vld [vmem:[%s12556_s9 + $0xd0] sm:$0xff]  ;;  %v7721_v18 = vld [vmem:[%s12556_s9 + $0x168] sm:$0xff] }
  0xe9   : > { %v880_v11 = vmax.f32 %v874_v5, 0.0  ;;  %v866_v12 = vadd.f32 %v865_v9, %v800_v54  ;;  %v8596_v13 = vpop.f32.mrf.mxu0  ;;  %v7698_v54 = vld [vmem:[%s12556_s9 + $0x130] sm:$0xff]  ;;  %v7747_v5 = vld [vmem:[%s12556_s9 + $0x1b8] sm:$0xff]  ;;  %v7745_v9 = vld [vmem:[%s12556_s9 + $0x1a8] sm:$0xff] }
  0xea   : > { %v10044_v16 = vmax.f32 %v747_v8, 0.0  ;;  %v768_v34 = vadd.f32 %v8596_v13, %v669_v31  ;;  %v7746_v7 = vld [vmem:[%s12556_s9 + $0x1b0] sm:$0xff]  ;;  %v7669_v8 = vld [vmem:[%s12556_s9 + $0xc8] sm:$0xff]  ;;  %v7743_v13 = vld [vmem:[%s12556_s9 + $0x198] sm:$0xff] }
  0xeb   : > { %v890_v19 = vpack.c.bf16 %v880_v11, %v879_v10  ;;  %v878_v20 = vmax.f32 %v866_v12, 0.0  ;;  %v759_v21 = vpop.f32.mrf.mxu0  ;;  %v7668_v10 = vld [vmem:[%s12556_s9 + $0xc0] sm:$0xff]  ;;  %v7723_v12 = vld [vmem:[%s12556_s9 + $0x178] sm:$0xff] }
  0xec   : > { %v760_v22 = vadd.f32 %v759_v21, %v659_v14  ;;  %8635 = vmatmul.mubr.msk.f32.vlgmr.msra.gmra.mxu0 %vm1052_vm1, %v10044_v16  ;;  %v10078_v40 = vmax.f32 %v768_v34, 0.0  ;;  %v7744_v11 = vld [vmem:[%s12556_s9 + $0x1a0] sm:$0xff]  ;;  %v7722_v14 = vld [vmem:[%s12556_s9 + $0x170] sm:$0xff] }
  0xed   : > { %v889_v24 = vpack.c.bf16 %v878_v20, %v877_v17  ;;  %8606 = vmatprep.subr.bf16.mxu1 %v890_v19  ;;  %v8597_v25 = vpop.f32.mrf.mxu0  ;;  %8637 = vmatprep.mubr.msk.f32.mxu0 %vm1052_vm1, %v10042_v15  ;;  %v7742_v17 = vld [vmem:[%s12556_s9 + $0x190] sm:$0xff]  ;;  %v7720_v20 = vld [vmem:[%s12556_s9 + $0x160] sm:$0xff] }
  0xee   : > { %v10053_v27 = vmax.f32 %v760_v22, 0.0  ;;  %8607 = vmatpush3.bf16.msra.mxu1 %v890_v19  ;;  %8675 = vmatpush3.msra.mxu0 %v7651_v49  ;;  %v771_v41 = vadd.f32 %v8597_v25, %v674_v39  ;;  %v7644_v49 = vld [vmem:[%s12556_s9 + $0x80] sm:$0xff]  ;;  %v7741_v19 = vld [vmem:[%s12556_s9 + $0x188] sm:$0xff]  ;;  %v7719_v22 = vld [vmem:[%s12556_s9 + $0x158] sm:$0xff] }
  0xef   : > { %8608 = vmatprep.subr.bf16.mxu1 %v889_v24  ;;  %8676 = vmatprep.subr.mxu0 %v7650_v23  ;;  %v762_v30 = vpop.f32.mrf.mxu0  ;;  %v7740_v21 = vld [vmem:[%s12556_s9 + $0x180] sm:$0xff]  ;;  %v7794_v25 = vld [vmem:[%s12556_s9 + $0x230] sm:$0xff] }
  0xf0   : > { %v763_v32 = vadd.f32 %v762_v30, %v664_v26  ;;  %8677 = vmatpush3.msra.mxu0 %v7650_v23  ;;  %v10097_v46 = vmax.f32 %v771_v41, 0.0  ;;  %v7795_v23 = vld [vmem:[%s12556_s9 + $0x238] sm:$0xff]  ;;  %v7717_v26 = vld [vmem:[%s12556_s9 + $0x148] sm:$0xff]  ;;  %v7716_v30 = vld [vmem:[%s12556_s9 + $0x140] sm:$0xff] }
  0xf1   : > { %8638 = vmatmul.mubr.msk.f32.gmra.mxu0 %vm1052_vm1, %v10058_v29  ;;  %8678 = vmatprep.subr.mxu0 %v7649_v28  ;;  %v7792_v31 = vld [vmem:[%s12556_s9 + $0x220] sm:$0xff]  ;;  %v7770_v34 = vld [vmem:[%s12556_s9 + $0x1f0] sm:$0xff] }
  0xf2   : > { %v10071_v37 = vmax.f32 %v763_v32, 0.0  ;;  %8609 = vmatpush3.bf16.msra.mxu1 %v889_v24  ;;  %8640 = vmatprep.mubr.msk.f32.mxu0 %vm1052_vm1, %v10053_v27  ;;  %v7718_v24 = vld [vmem:[%s12556_s9 + $0x150] sm:$0xff]  ;;  %v7771_v32 = vld [vmem:[%s12556_s9 + $0x1f8] sm:$0xff]  ;;  %v7768_v39 = vld [vmem:[%s12556_s9 + $0x1e0] sm:$0xff] }
  0xf3   : > { %8679 = vmatpush3.msra.mxu0 %v7649_v28  ;;  %8646 = vmatprep.subr.mxu1 %v7627_v33  ;;  %v7793_v28 = vld [vmem:[%s12556_s9 + $0x228] sm:$0xff]  ;;  %v7788_v41 = vld [vmem:[%s12556_s9 + $0x200] sm:$0xff] }
  0xf4   : > { %8680 = vmatprep.subr.mxu0 %v7648_v35 }
  0xf5   : > { %8681 = vmatpush3.msra.mxu0 %v7648_v35  ;;  %8611 = vmatmul.mubr.msk.bf16.vlgmr.msra.gmra.mxu1 %vm696_vm0, %v9512_v36  ;;  %v7790_v35 = vld [vmem:[%s12556_s9 + $0x210] sm:$0xff]  ;;  %v7769_v36 = vld [vmem:[%s12556_s9 + $0x1e8] sm:$0xff] }
  0xf6   : > { %8641 = vmatmul.mubr.msk.f32.gmra.mxu0 %vm1052_vm1, %v10071_v37  ;;  %8682 = vmatprep.subr.mxu0 %v7647_v38 }
  0xf7   : > { %8643 = vmatprep.mubr.msk.f32.mxu0 %vm1052_vm1, %v10078_v40  ;;  %8647 = vmatpush3.msra.mxu1 %v7627_v33  ;;  %v7791_v33 = vld [vmem:[%s12556_s9 + $0x218] sm:$0xff] }
  0xf8   : > { %8683 = vmatpush3.msra.mxu0 %v7647_v38  ;;  %8648 = vmatprep.subr.mxu1 %v7626_v42  ;;  %v7789_v38 = vld [vmem:[%s12556_s9 + $0x208] sm:$0xff] }
  0xf9   : > { %8684 = vmatprep.subr.mxu0 %v7646_v43  ;;  %8649 = vmatpush3.msra.mxu1 %v7626_v42  ;;  %v7767_v42 = vld [vmem:[%s12556_s9 + $0x1d8] sm:$0xff] }
  0xfa   : > { %8685 = vmatpush3.msra.mxu0 %v7646_v43  ;;  %8650 = vmatprep.subr.mxu1 %v7625_v44  ;;  %v7766_v43 = vld [vmem:[%s12556_s9 + $0x1d0] sm:$0xff] }
  0xfb   : > { %8644 = vmatmul.mubr.msk.f32.gmra.mxu0 %vm1052_vm1, %v10097_v46  ;;  %8686 = vmatprep.subr.mxu0 %v7645_v45 }
  0xfc   : > { %8651 = vmatpush3.msra.mxu1 %v7625_v44  ;;  %8687 = vmatpush3.msra.mxu0 %v7645_v45  ;;  %v7765_v44 = vld [vmem:[%s12556_s9 + $0x1c8] sm:$0xff]  ;;  %v7764_v45 = vld [vmem:[%s12556_s9 + $0x1c0] sm:$0xff] }
  0xfd   : > { %8690 = vmatprep.mubr.msk.f32.mxu0 %vm1052_vm1, %v10038_v2  ;;  %8652 = vmatprep.subr.mxu1 %v7624_v47 }
  0xfe   : > { %8688 = vmatprep.subr.mxu0 %v7644_v49  ;;  %8614 = vmatprep.mubr.msk.bf16.mxu1 %vm696_vm0, %v9513_v48 }
  0xff   : > { %8653 = vmatpush3.msra.mxu1 %v7624_v47  ;;  %8689 = vmatpush3.msra.mxu0 %v7644_v49 }
 0x100   : > { %8615 = vmatmul.mubr.msk.bf16.gmra.mxu1 %vm696_vm0, %v9514_v50  ;;  %8654 = vmatprep.subr.mxu1 %v7623_v51 }
 0x101   : > { %8691 = vmatmul.mubr.msk.f32.vlgmr.msra.gmra.mxu0 %vm1052_vm1, %v10044_v16  ;;  %8730 = vmatprep.subr.mxu0 %v7699_v52 }
 0x102   : > { %8655 = vmatpush3.msra.mxu1 %v7623_v51  ;;  %8662 = vmatprep.mubr.msk.f32.mxu1 %vm1052_vm1, %v10038_v2 }
 0x103   : > { %8693 = vmatprep.mubr.msk.f32.mxu0 %vm1052_vm1, %v10042_v15  ;;  %8731 = vmatpush3.msra.mxu0 %v7699_v52 }
 0x104   : > { %8656 = vmatprep.subr.mxu1 %v7622_v53  ;;  %8732 = vmatprep.subr.mxu0 %v7698_v54 }
 0x105   : > { %8657 = vmatpush3.msra.mxu1 %v7622_v53  ;;  %8733 = vmatpush3.msra.mxu0 %v7698_v54 }
 0x106   : > { %8658 = vmatprep.subr.mxu1 %v7621_v55  ;;  %8694 = vmatmul.mubr.msk.f32.gmra.mxu0 %vm1052_vm1, %v10058_v29 }
 0x107   : > { %8734 = vmatprep.subr.mxu0 %v7697_v56  ;;  %8659 = vmatpush3.msra.mxu1 %v7621_v55 }
 0x108   : > { %8696 = vmatprep.mubr.msk.f32.mxu0 %vm1052_vm1, %v10053_v27  ;;  %8735 = vmatpush3.msra.mxu0 %v7697_v56 }
 0x109   : > { %8660 = vmatprep.subr.mxu1 %v7620_v57  ;;  %8736 = vmatprep.subr.mxu0 %v7696_v58 }
 0x10a   : > { %8661 = vmatpush3.msra.mxu1 %v7620_v57  ;;  %8737 = vmatpush3.msra.mxu0 %v7696_v58 }
 0x10b   : > { %8663 = vmatmul.mubr.msk.f32.vlgmr.msra.gmra.mxu1 %vm1052_vm1, %v10044_v16  ;;  %8697 = vmatmul.mubr.msk.f32.gmra.mxu0 %vm1052_vm1, %v10071_v37 }
 0x10c   : > { %8702 = vmatprep.subr.mxu1 %v7675_v59  ;;  %8738 = vmatprep.subr.mxu0 %v7695_v60 }
 0x10d   : > { %8665 = vmatprep.mubr.msk.f32.mxu1 %vm1052_vm1, %v10042_v15  ;;  %8699 = vmatprep.mubr.msk.f32.mxu0 %vm1052_vm1, %v10078_v40 }
 0x10e   : > { %8703 = vmatpush3.msra.mxu1 %v7675_v59  ;;  %8739 = vmatpush3.msra.mxu0 %v7695_v60 }
 0x10f   : > { %8704 = vmatprep.subr.mxu1 %v7674_v61  ;;  %8740 = vmatprep.subr.mxu0 %v7694_v62 }
 0x110   : > { %8705 = vmatpush3.msra.mxu1 %v7674_v61  ;;  %8741 = vmatpush3.msra.mxu0 %v7694_v62 }
 0x111   : > { %8666 = vmatmul.mubr.msk.f32.gmra.mxu1 %vm1052_vm1, %v10058_v29  ;;  %8700 = vmatmul.mubr.msk.f32.gmra.mxu0 %vm1052_vm1, %v10097_v46 }
 0x112   : > { %8706 = vmatprep.subr.mxu1 %v7673_v63  ;;  %8742 = vmatprep.subr.mxu0 %v7693_v0 }
 0x113   : > { %8668 = vmatprep.mubr.msk.f32.mxu1 %vm1052_vm1, %v10053_v27  ;;  %8707 = vmatpush3.msra.mxu1 %v7673_v63 }
 0x114   : > { %8743 = vmatpush3.msra.mxu0 %v7693_v0  ;;  %8746 = vmatprep.mubr.msk.f32.mxu0 %vm1052_vm1, %v10038_v2 }
 0x115   : > { %8708 = vmatprep.subr.mxu1 %v7672_v1  ;;  %8744 = vmatprep.subr.mxu0 %v7692_v3 }
 0x116   : > { %8709 = vmatpush3.msra.mxu1 %v7672_v1  ;;  %8745 = vmatpush3.msra.mxu0 %v7692_v3 }
 0x117   : > { %8669 = vmatmul.mubr.msk.f32.gmra.mxu1 %vm1052_vm1, %v10071_v37  ;;  %8710 = vmatprep.subr.mxu1 %v7671_v4 }
 0x118   : > { %8747 = vmatmul.mubr.msk.f32.vlgmr.msra.gmra.mxu0 %vm1052_vm1, %v10044_v16  ;;  %8786 = vmatprep.subr.mxu0 %v7747_v5 }
 0x119   : > { %8671 = vmatprep.mubr.msk.f32.mxu1 %vm1052_vm1, %v10078_v40  ;;  %8711 = vmatpush3.msra.mxu1 %v7671_v4 }
 0x11a   : > { %8749 = vmatprep.mubr.msk.f32.mxu0 %vm1052_vm1, %v10042_v15  ;;  %8787 = vmatpush3.msra.mxu0 %v7747_v5 }
 0x11b   : > { %8712 = vmatprep.subr.mxu1 %v7670_v6  ;;  %8788 = vmatprep.subr.mxu0 %v7746_v7 }
 0x11c   : > { %8713 = vmatpush3.msra.mxu1 %v7670_v6  ;;  %8789 = vmatpush3.msra.mxu0 %v7746_v7 }
 0x11d   : > { %8672 = vmatmul.mubr.msk.f32.gmra.mxu1 %vm1052_vm1, %v10097_v46  ;;  %8714 = vmatprep.subr.mxu1 %v7669_v8 }
 0x11e   : > { %8750 = vmatmul.mubr.msk.f32.gmra.mxu0 %vm1052_vm1, %v10058_v29  ;;  %8790 = vmatprep.subr.mxu0 %v7745_v9 }
 0x11f   : > { %8715 = vmatpush3.msra.mxu1 %v7669_v8  ;;  %8718 = vmatprep.mubr.msk.f32.mxu1 %vm1052_vm1, %v10038_v2 }
 0x120   : > { %8752 = vmatprep.mubr.msk.f32.mxu0 %vm1052_vm1, %v10053_v27  ;;  %8791 = vmatpush3.msra.mxu0 %v7745_v9 }
 0x121   : > { %8716 = vmatprep.subr.mxu1 %v7668_v10  ;;  %8792 = vmatprep.subr.mxu0 %v7744_v11 }
 0x122   : > { %8717 = vmatpush3.msra.mxu1 %v7668_v10  ;;  %8793 = vmatpush3.msra.mxu0 %v7744_v11 }
 0x123   : > { %8719 = vmatmul.mubr.msk.f32.vlgmr.msra.gmra.mxu1 %vm1052_vm1, %v10044_v16  ;;  %8753 = vmatmul.mubr.msk.f32.gmra.mxu0 %vm1052_vm1, %v10071_v37 }
 0x124   : > { %8758 = vmatprep.subr.mxu1 %v7723_v12  ;;  %8794 = vmatprep.subr.mxu0 %v7743_v13 }
 0x125   : > { %8721 = vmatprep.mubr.msk.f32.mxu1 %vm1052_vm1, %v10042_v15  ;;  %8755 = vmatprep.mubr.msk.f32.mxu0 %vm1052_vm1, %v10078_v40 }
 0x126   : > { %8759 = vmatpush3.msra.mxu1 %v7723_v12  ;;  %8795 = vmatpush3.msra.mxu0 %v7743_v13 }
 0x127   : > { %8760 = vmatprep.subr.mxu1 %v7722_v14  ;;  %8796 = vmatprep.subr.mxu0 %v7742_v17 }
 0x128   : > { %8761 = vmatpush3.msra.mxu1 %v7722_v14  ;;  %8797 = vmatpush3.msra.mxu0 %v7742_v17 }
 0x129   : > { %8722 = vmatmul.mubr.msk.f32.gmra.mxu1 %vm1052_vm1, %v10058_v29  ;;  %8756 = vmatmul.mubr.msk.f32.gmra.mxu0 %vm1052_vm1, %v10097_v46 }
 0x12a   : > { %8762 = vmatprep.subr.mxu1 %v7721_v18  ;;  %8798 = vmatprep.subr.mxu0 %v7741_v19 }
 0x12b   : > { %8724 = vmatprep.mubr.msk.f32.mxu1 %vm1052_vm1, %v10053_v27  ;;  %8763 = vmatpush3.msra.mxu1 %v7721_v18 }
 0x12c   : > { %8799 = vmatpush3.msra.mxu0 %v7741_v19  ;;  %8802 = vmatprep.mubr.msk.f32.mxu0 %vm1052_vm1, %v10038_v2 }
 0x12d   : > { %8764 = vmatprep.subr.mxu1 %v7720_v20  ;;  %8800 = vmatprep.subr.mxu0 %v7740_v21 }
 0x12e   : > { %8765 = vmatpush3.msra.mxu1 %v7720_v20  ;;  %8801 = vmatpush3.msra.mxu0 %v7740_v21 }
 0x12f   : > { %8725 = vmatmul.mubr.msk.f32.gmra.mxu1 %vm1052_vm1, %v10071_v37  ;;  %8766 = vmatprep.subr.mxu1 %v7719_v22 }
 0x130   : > { %8803 = vmatmul.mubr.msk.f32.vlgmr.msra.gmra.mxu0 %vm1052_vm1, %v10044_v16  ;;  %8842 = vmatprep.subr.mxu0 %v7795_v23 }
 0x131   : > { %8727 = vmatprep.mubr.msk.f32.mxu1 %vm1052_vm1, %v10078_v40  ;;  %8767 = vmatpush3.msra.mxu1 %v7719_v22 }
 0x132   : > { %8805 = vmatprep.mubr.msk.f32.mxu0 %vm1052_vm1, %v10042_v15  ;;  %8843 = vmatpush3.msra.mxu0 %v7795_v23 }
 0x133   : > { %8768 = vmatprep.subr.mxu1 %v7718_v24  ;;  %8844 = vmatprep.subr.mxu0 %v7794_v25 }
 0x134   : > { %8769 = vmatpush3.msra.mxu1 %v7718_v24  ;;  %8845 = vmatpush3.msra.mxu0 %v7794_v25 }
 0x135   : > { %8728 = vmatmul.mubr.msk.f32.gmra.mxu1 %vm1052_vm1, %v10097_v46  ;;  %8770 = vmatprep.subr.mxu1 %v7717_v26 }
 0x136   : > { %8806 = vmatmul.mubr.msk.f32.gmra.mxu0 %vm1052_vm1, %v10058_v29  ;;  %8846 = vmatprep.subr.mxu0 %v7793_v28 }
 0x137   : > { %8771 = vmatpush3.msra.mxu1 %v7717_v26  ;;  %8774 = vmatprep.mubr.msk.f32.mxu1 %vm1052_vm1, %v10038_v2 }
 0x138   : > { %8808 = vmatprep.mubr.msk.f32.mxu0 %vm1052_vm1, %v10053_v27  ;;  %8847 = vmatpush3.msra.mxu0 %v7793_v28 }
 0x139   : > { %8772 = vmatprep.subr.mxu1 %v7716_v30  ;;  %8848 = vmatprep.subr.mxu0 %v7792_v31 }
 0x13a   : > { %8773 = vmatpush3.msra.mxu1 %v7716_v30  ;;  %8849 = vmatpush3.msra.mxu0 %v7792_v31 }
 0x13b   : > { %8775 = vmatmul.mubr.msk.f32.vlgmr.msra.gmra.mxu1 %vm1052_vm1, %v10044_v16  ;;  %8809 = vmatmul.mubr.msk.f32.gmra.mxu0 %vm1052_vm1, %v10071_v37 }
 0x13c   : > { %8814 = vmatprep.subr.mxu1 %v7771_v32  ;;  %8850 = vmatprep.subr.mxu0 %v7791_v33 }
 0x13d   : > { %8777 = vmatprep.mubr.msk.f32.mxu1 %vm1052_vm1, %v10042_v15  ;;  %8811 = vmatprep.mubr.msk.f32.mxu0 %vm1052_vm1, %v10078_v40 }
 0x13e   : > { %8815 = vmatpush3.msra.mxu1 %v7771_v32  ;;  %8851 = vmatpush3.msra.mxu0 %v7791_v33 }
 0x13f   : > { %8816 = vmatprep.subr.mxu1 %v7770_v34  ;;  %8852 = vmatprep.subr.mxu0 %v7790_v35 }
 0x140   : > { %8817 = vmatpush3.msra.mxu1 %v7770_v34  ;;  %8853 = vmatpush3.msra.mxu0 %v7790_v35 }
 0x141   : > { %8778 = vmatmul.mubr.msk.f32.gmra.mxu1 %vm1052_vm1, %v10058_v29  ;;  %8812 = vmatmul.mubr.msk.f32.gmra.mxu0 %vm1052_vm1, %v10097_v46 }
 0x142   : > { %8818 = vmatprep.subr.mxu1 %v7769_v36  ;;  %8854 = vmatprep.subr.mxu0 %v7789_v38 }
 0x143   : > { %8780 = vmatprep.mubr.msk.f32.mxu1 %vm1052_vm1, %v10053_v27  ;;  %8819 = vmatpush3.msra.mxu1 %v7769_v36 }
 0x144   : > { %8855 = vmatpush3.msra.mxu0 %v7789_v38  ;;  %8858 = vmatprep.mubr.msk.f32.mxu0 %vm1052_vm1, %v10038_v2 }
 0x145   : > { %8820 = vmatprep.subr.mxu1 %v7768_v39  ;;  %8856 = vmatprep.subr.mxu0 %v7788_v41 }
 0x146   : > { %8821 = vmatpush3.msra.mxu1 %v7768_v39  ;;  %8857 = vmatpush3.msra.mxu0 %v7788_v41  ;;  %v1185_v41 = vpop.permute.xlu0 %1184 }
 0x147   : > { %8781 = vmatmul.mubr.msk.f32.gmra.mxu1 %vm1052_vm1, %v10071_v37  ;;  %8822 = vmatprep.subr.mxu1 %v7767_v42 }
 0x148   : > { %8859 = vmatmul.mubr.msk.f32.vlgmr.msra.gmra.mxu0 %vm1052_vm1, %v10044_v16  ;;  %8783 = vmatprep.mubr.msk.f32.mxu1 %vm1052_vm1, %v10078_v40 }
 0x149   : > { %8823 = vmatpush3.msra.mxu1 %v7767_v42  ;;  %8861 = vmatprep.mubr.msk.f32.mxu0 %vm1052_vm1, %v10042_v15 }
 0x14a   : > { %8824 = vmatprep.subr.mxu1 %v7766_v43 }
 0x14b   : > { %8825 = vmatpush3.msra.mxu1 %v7766_v43 }
 0x14c   : > { %8784 = vmatmul.mubr.msk.f32.gmra.mxu1 %vm1052_vm1, %v10097_v46  ;;  %8826 = vmatprep.subr.mxu1 %v7765_v44 }
 0x14d   : > { %8862 = vmatmul.mubr.msk.f32.gmra.mxu0 %vm1052_vm1, %v10058_v29  ;;  %8827 = vmatpush3.msra.mxu1 %v7765_v44 }
 0x14e   : > { %8830 = vmatprep.mubr.msk.f32.mxu1 %vm1052_vm1, %v10038_v2  ;;  %8864 = vmatprep.mubr.msk.f32.mxu0 %vm1052_vm1, %v10053_v27  ;;  %v10399_v2 = vpop.permute.xlu1 %1363 }
 0x14f   : > { %8828 = vmatprep.subr.mxu1 %v7764_v45 }
 0x150   : > { %8829 = vmatpush3.msra.mxu1 %v7764_v45 }
 0x151   : > { %8831 = vmatmul.mubr.msk.f32.vlgmr.msra.gmra.mxu1 %vm1052_vm1, %v10044_v16  ;;  %8865 = vmatmul.mubr.msk.f32.gmra.mxu0 %vm1052_vm1, %v10071_v37 }
 0x152   : > { %8833 = vmatprep.mubr.msk.f32.mxu1 %vm1052_vm1, %v10042_v15  ;;  %8867 = vmatprep.mubr.msk.f32.mxu0 %vm1052_vm1, %v10078_v40  ;;  %v10401_v15 = vpop.permute.xlu1 %1721 }
 0x155   : > { %8834 = vmatmul.mubr.msk.f32.gmra.mxu1 %vm1052_vm1, %v10058_v29  ;;  %8868 = vmatmul.mubr.msk.f32.gmra.mxu0 %vm1052_vm1, %v10097_v46 }
 0x156   : > { %8836 = vmatprep.mubr.msk.f32.mxu1 %vm1052_vm1, %v10053_v27  ;;  %v10403_v16 = vpop.permute.xlu1 %2079 }
 0x159   : > { %8837 = vmatmul.mubr.msk.f32.gmra.mxu1 %vm1052_vm1, %v10071_v37 }
 0x15a   : > { %8839 = vmatprep.mubr.msk.f32.mxu1 %vm1052_vm1, %v10078_v40  ;;  %v10409_v27 = vpop.permute.xlu1 %2437 }
 0x15d   : > { %8840 = vmatmul.mubr.msk.f32.gmra.mxu1 %vm1052_vm1, %v10097_v46 }
 0x15e   : > { %v902_v46 = vpop.permute.xlu1 %901 }
 0x1ac   : > { %v10405_v29 = vpop.f32.mrf.mxu0 }
 0x1ae   : > { %v10407_v47 = vpop.f32.mrf.mxu0 }
 0x1b1   : > { %v10411_v48 = vpop.f32.mrf.mxu0 }
 0x1b2   : > { %12575 = vst [vmem:[#allocation4_spill] sm:$0xff] %v10411_v48 }
 0x1b3   : > { %v10413_v37 = vpop.f32.mrf.mxu0 }
 0x1b5   : > { %v10415_v40 = vpop.f32.mrf.mxu1 }
 0x1b6   : > { %12576 = vst [vmem:[#allocation5_spill] sm:$0xff] %v10415_v40  ;;  %v10417_v49 = vpop.f32.mrf.mxu0 }
 0x1b7   : > { %v1005_v50 = vpop.f32.mrf.mxu1 }
 0x1b8   : > { %v10419_v51 = vadd.f32 %v1005_v50, %v902_v46  ;;  %v10421_v52 = vpop.f32.mrf.mxu0  ;;  %v1543_v46 = vpop.permute.xlu0 %1542  ;;  %v1222_v50 = vmul.f32 %v1185_v41, %v10407_v47 }
 0x1b9   : > { %v10423_v53 = vpop.f32.mrf.mxu1 }
 0x1ba   : > { %12577 = vst [vmem:[#allocation6_spill] sm:$0xff] %v10423_v53  ;;  %8870 = vmatprep.subr.msk.mxu1 %vm2727_vm2, %v10419_v51 }
 0x1bb   : > { %v10427_v54 = vpop.f32.mrf.mxu0  ;;  %8871 = vmatpush3.msk.msra.mxu1 %vm2727_vm2, %v10419_v51  ;;  %v10431_v55 = vpop.f32.mrf.mxu1 }
 0x1bc   : > { %12578 = vst [vmem:[#allocation7_spill] sm:$0xff] %v10427_v54 }
 0x1bd   : > { %v10433_v56 = vpop.f32.mrf.mxu0 }
 0x1be   : > { %12579 = vst [vmem:[#allocation8_spill] sm:$0xff] %v10433_v56 }
 0x1c0   : > { %v10435_v57 = vpop.f32.mrf.mxu1 }
 0x1c1   : > { %12580 = vst [vmem:[#allocation9_spill] sm:$0xff] %v10435_v57  ;;  %v10437_v58 = vpop.f32.mrf.mxu0 }
 0x1c2   : > { %v10439_v59 = vpop.f32.mrf.mxu1 }
 0x1c3   : > { %v1501_v60 = vpop.f32.mrf.mxu0 }
 0x1c4   : > { %v10441_v61 = vpop.f32.mrf.mxu1 }
 0x1c5   : > { %12581 = vst [vmem:[#allocation10_spill] sm:$0xff] %v10441_v61 }
 0x1c6   : > { %v10443_v62 = vpop.f32.mrf.mxu0  ;;  %v10445_v63 = vpop.f32.mrf.mxu1 }
 0x1c7   : > { %12582 = vst [vmem:[#allocation11_spill] sm:$0xff] %v10443_v62  ;;  %12583 = vst [vmem:[#allocation12_spill] sm:$0xff] %v10445_v63  ;;  %v7616_v62 = vld [vmem:[%s12555_s8 + $0x60] sm:$0xff] }
 0x1c8   : > { %v10447_v0 = vpop.f32.mrf.mxu0 }
 0x1cb   : > { %v10449_v1 = vpop.f32.mrf.mxu1  ;;  %v10451_v3 = vpop.f32.mrf.mxu0 }
 0x1cd   : > { %v1322_v4 = vpop.f32.mrf.mxu1  ;;  %v10453_v5 = vpop.f32.mrf.mxu0 }
 0x1ce   : > { %v1401_v44 = vmul.f32 %v10399_v2, %v1322_v4 }
 0x1d1   : > { %v10455_v6 = vpop.f32.mrf.mxu1  ;;  %v10457_v7 = vpop.f32.mrf.mxu0 }
 0x1d2   : > { %12584 = vst [vmem:[#allocation13_spill] sm:$0xff] %v10455_v6  ;;  %12585 = vst [vmem:[#allocation14_spill] sm:$0xff] %v10457_v7  ;;  %v1580_v7 = vmul.f32 %v1543_v46, %v1501_v60 }
 0x1d3   : > { %v10459_v8 = vpop.f32.mrf.mxu1  ;;  %v10461_v9 = vpop.f32.mrf.mxu0 }
 0x1d4   : > { %12586 = vst [vmem:[#allocation15_spill] sm:$0xff] %v10461_v9 }
 0x1d7   : > { %v10463_v10 = vpop.f32.mrf.mxu1 }
 0x1d8   : > { %v10465_v11 = vpop.f32.mrf.mxu0 }
 0x1d9   : > { %v10467_v12 = vpop.f32.mrf.mxu1 }
 0x1da   : > { %v1859_v13 = vpop.f32.mrf.mxu0 }
 0x1dd   : > { %v10469_v14 = vpop.f32.mrf.mxu1 }
 0x1de   : > { %12587 = vst [vmem:[#allocation16_spill] sm:$0xff] %v10469_v14  ;;  %v10471_v17 = vpop.f32.mrf.mxu0 }
 0x1df   : > { %12588 = vst [vmem:[#allocation17_spill] sm:$0xff] %v10471_v17  ;;  %v10473_v18 = vpop.f32.mrf.mxu1 }
 0x1e0   : > { %12589 = vst [vmem:[#allocation18_spill] sm:$0xff] %v10473_v18  ;;  %v10475_v19 = vpop.f32.mrf.mxu0 }
 0x1e3   : > { %v10477_v20 = vpop.f32.mrf.mxu1  ;;  %v10479_v21 = vpop.f32.mrf.mxu0 }
 0x1e5   : > { %v1680_v22 = vpop.f32.mrf.mxu1  ;;  %v10481_v23 = vpop.f32.mrf.mxu0 }
 0x1e6   : > { %v1759_v14 = vmul.f32 %v10401_v15, %v1680_v22 }
 0x1e9   : > { %v10483_v24 = vpop.f32.mrf.mxu1  ;;  %v10485_v25 = vpop.f32.mrf.mxu0 }
 0x1ea   : > { %12590 = vst [vmem:[#allocation19_spill] sm:$0xff] %v10483_v24  ;;  %12591 = vst [vmem:[#allocation20_spill] sm:$0xff] %v10485_v25 }
 0x1eb   : > { %v10487_v26 = vpop.f32.mrf.mxu1  ;;  %v10489_v28 = vpop.f32.mrf.mxu0 }
 0x1ec   : > { %12592 = vst [vmem:[#allocation21_spill] sm:$0xff] %v10489_v28 }
 0x1ef   : > { %v10491_v30 = vpop.f32.mrf.mxu1 }
 0x1f0   : > { %v10493_v31 = vpop.f32.mrf.mxu0 }
 0x1f1   : > { %v10495_v32 = vpop.f32.mrf.mxu1 }
 0x1f2   : > { %v2217_v33 = vpop.f32.mrf.mxu0 }
 0x1f5   : > { %v10497_v34 = vpop.f32.mrf.mxu1 }
 0x1f6   : > { %12593 = vst [vmem:[#allocation22_spill] sm:$0xff] %v10497_v34  ;;  %v10499_v35 = vpop.f32.mrf.mxu0  ;;  %v1409_v34 = vadd.f32 %v1401_v44, %v1222_v50 }
 0x1f7   : > { %12594 = vst [vmem:[#allocation23_spill] sm:$0xff] %v10499_v35  ;;  %v10501_v36 = vpop.f32.mrf.mxu1  ;;  %v1901_v35 = vpop.permute.xlu0 %1900 }
 0x1f8   : > { %12595 = vst [vmem:[#allocation24_spill] sm:$0xff] %v10501_v36  ;;  %v10503_v38 = vpop.f32.mrf.mxu0  ;;  %v1588_v53 = vadd.f32 %v1580_v7, %v1409_v34  ;;  %v1938_v47 = vmul.f32 %v1901_v35, %v1859_v13 }
 0x1fa   : > { %v1767_v4 = vadd.f32 %v1759_v14, %v1588_v53 }
 0x1fb   : > { %v10505_v39 = vpop.f32.mrf.mxu1  ;;  %v10507_v43 = vpop.f32.mrf.mxu0 }
 0x1fc   : > { %v1946_v44 = vadd.f32 %v1938_v47, %v1767_v4  ;;  %v2259_v15 = vpop.permute.xlu0 %2258 }
 0x1fd   : > { %v2038_v42 = vpop.f32.mrf.mxu1  ;;  %v10513_v61 = vpop.f32.mrf.mxu0  ;;  %v2296_v7 = vmul.f32 %v2259_v15, %v2217_v33 }
 0x1fe   : > { %v2117_v41 = vmul.f32 %v10403_v16, %v2038_v42 }
 0x200   : > { %v2125_v46 = vadd.f32 %v2117_v41, %v1946_v44  ;;  %v2617_v13 = vpop.permute.xlu0 %2616 }
 0x201   : > { %v10510_v45 = vpop.f32.mrf.mxu1  ;;  %v10518_v54 = vpop.f32.mrf.mxu0 }
 0x202   : > { %12596 = vst [vmem:[#allocation25_spill] sm:$0xff] %v10510_v45  ;;  %12597 = vst [vmem:[#allocation26_spill] sm:$0xff] %v10518_v54  ;;  %v2304_v53 = vadd.f32 %v2296_v7, %v2125_v46 }
 0x203   : > { %v10515_v25 = vpop.f32.mrf.mxu1  ;;  %v10524_v45 = vpop.f32.mrf.mxu0 }
 0x204   : > { %12598 = vst [vmem:[#allocation27_spill] sm:$0xff] %v10524_v45 }
 0x207   : > { %v10520_v57 = vpop.f32.mrf.mxu1 }
 0x208   : > { %v10531_v22 = vpop.f32.mrf.mxu0 }
 0x209   : > { %v10522_v2 = vpop.f32.mrf.mxu1 }
 0x20a   : > { %v2575_v34 = vpop.f32.mrf.mxu0 }
 0x20b   : > { %v2654_v35 = vmul.f32 %v2617_v13, %v2575_v34 }
 0x20c   : > { %v10527_v17 = vpop.f32.mrf.mxu1 }
 0x20d   : > { %12599 = vst [vmem:[#allocation28_spill] sm:$0xff] %v10527_v17 }
 0x20e   : > { %v10529_v60 = vpop.f32.mrf.mxu1 }
 0x20f   : > { %12600 = vst [vmem:[#allocation29_spill] sm:$0xff] %v10529_v60 }
 0x211   : > { %v10533_v50 = vpop.f32.mrf.mxu1 }
 0x213   : > { %v2396_v54 = vpop.f32.mrf.mxu1 }
 0x214   : > { %v2475_v14 = vmul.f32 %v10409_v27, %v2396_v54 }
 0x215   : > { %v10547_v46 = vpop.f32.mrf.mxu1 }
 0x216   : > { %v2483_v16 = vadd.f32 %v2475_v14, %v2304_v53  ;;  %12601 = vst [vmem:[#allocation30_spill] sm:$0xff] %v10547_v46 }
 0x217   : > { %v10549_v7 = vpop.f32.mrf.mxu1 }
 0x218   : > { %v10536_v42 = vadd.f32 %v2654_v35, %v2483_v16  ;;  %12602 = vst [vmem:[#allocation31_spill] sm:$0xff] %v10549_v7 }
 0x219   : > { %v10551_v34 = vpop.f32.mrf.mxu1 }
 0x21a   : > { %2670 = vxpose.xlu0.b32.start.end [1/1] (short) (narrow) %v10536_v42, 64 }
 0x21b   : > { %v10553_v53 = vpop.f32.mrf.mxu1 }
 0x21d   : > { %v10555_v14 = vpop.f32.mrf.mxu1 }
 0x21e   : > { %12603 = vst [vmem:[#allocation32_spill] sm:$0xff] %v10555_v14 }
 0x21f   : > { %v10557_v13 = vpop.f32.mrf.mxu1 }
 0x220   : > { %12604 = vst [vmem:[#allocation33_spill] sm:$0xff] %v10557_v13 }
 0x296   : > { %v2686_v4 = vpop.trf.xlu0 }
 0x297   : > { %8872 = vmatprep.mubr.msk.f32.mxu1 %vm2702_vm3, %v2686_v4 }
 0x29a   : > { %v2687_v47 = vpop.trf.xlu0 }
 0x29b   : > { %8873 = vmatmul.mubr.msk.f32.vlgmr.msra.gmra.mxu1 %vm2702_vm3, %v2687_v47 }
 0x29e   : > { %v2688_v33 = vpop.trf.xlu0 }
 0x29f   : > { %8875 = vmatprep.mubr.msk.f32.mxu1 %vm2702_vm3, %v2688_v33 }
 0x2a2   : > { %v2689_v41 = vpop.trf.xlu0 }
 0x2a3   : > { %8876 = vmatmul.mubr.msk.f32.gmra.mxu1 %vm2702_vm3, %v2689_v41 }
 0x2a6   : > { %v2690_v27 = vpop.trf.xlu0 }
 0x2a7   : > { %8878 = vmatprep.mubr.msk.f32.mxu1 %vm2702_vm3, %v2690_v27 }
 0x2aa   : > { %v2691_v54 = vpop.trf.xlu0 }
 0x2ab   : > { %8879 = vmatmul.mubr.msk.f32.gmra.mxu1 %vm2702_vm3, %v2691_v54 }
 0x2ae   : > { %v2692_v44 = vpop.trf.xlu0 }
 0x2af   : > { %8881 = vmatprep.mubr.msk.f32.mxu1 %vm2702_vm3, %v2692_v44 }
 0x2b2   : > { %v2693_v15 = vpop.trf.xlu0 }
 0x2b3   : > { %8882 = vmatmul.mubr.msk.f32.gmra.mxu1 %vm2702_vm3, %v2693_v15 }
 0x35b   : > { %v8874_v35 = vpop.f32.mrf.mxu1 }
 0x35d   : > { %v2797_v16 = vpop.f32.mrf.mxu1 }
 0x363   : > { %v8877_v4 = vpop.f32.mrf.mxu1 }
 0x364   : > { %v2846_v46 = vsel %vm2836_vm4, %v8877_v4, -inf }
 0x365   : > { %v2807_v47 = vpop.f32.mrf.mxu1 }
 0x366   : > { %v2843_v24 = vsel %vm2836_vm4, %v2807_v47, -inf }
 0x36b   : > { %v8880_v33 = vpop.f32.mrf.mxu1 }
 0x36c   : > { %v2852_v14 = vsel %vm2836_vm4, %v8880_v33, -inf }
 0x36d   : > { %v2817_v41 = vpop.f32.mrf.mxu1 }
 0x36e   : > { %v2849_v17 = vsel %vm2836_vm4, %v2817_v41, -inf }
 0x373   : > { %v10559_v27 = vpop.f32.mrf.mxu1 }
 0x374   : > { %v2858_v54 = vsel %vm2836_vm4, %v10559_v27, -inf }
 0x375   : > { %2859 = vmax.xlane.f32.xlu1 %v2858_v54  ;;  %v10563_v44 = vpop.f32.mrf.mxu1  ;;  %v2840_v54 = vsel %vm2836_vm4, %v8874_v35, -inf }
 0x376   : > { %v2855_v15 = vsel %vm2836_vm4, %v10563_v44, -inf }
 0x377   : > { %2856 = vmax.xlane.f32.xlu0 %v2855_v15  ;;  %v2837_v15 = vsel %vm2836_vm4, %v2797_v16, -inf }
 0x379   : > { %2853 = vmax.xlane.f32.xlu1 %v2852_v14  ;;  %v7640_v14 = vld [vmem:[%s12555_s8 + $0xa0] sm:$0xff] }
 0x37d   : > { %2850 = vmax.xlane.f32.xlu1 %v2849_v17  ;;  %v7736_v17 = vld [vmem:[%s12555_s8 + $0x1a0] sm:$0xff] }
 0x381   : > { %2847 = vmax.xlane.f32.xlu1 %v2846_v46  ;;  %v1040_v46 = vld [vmem:[%s12555_s8 + $0x20] sm:$0xff] }
 0x385   : > { %2844 = vmax.xlane.f32.xlu1 %v2843_v24  ;;  %v7784_v24 = vld [vmem:[%s12555_s8 + $0x220] sm:$0xff] }
 0x389   : > { %2841 = vmax.xlane.f32.xlu1 %v2840_v54  ;;  %v7688_v54 = vld [vmem:[%s12555_s8 + $0x120] sm:$0xff] }
 0x38d   : > { %2838 = vmax.xlane.f32.xlu1 %v2837_v15  ;;  %1383 = vperm.xlu0 %9503, %v7616_v62   ;;  %v7664_v62 = vld [vmem:[%s12555_s8 + $0xe0] sm:$0xff] }
 0x38e   : > { %v7712_v15 = vld [vmem:[%s12555_s8 + $0x160] sm:$0xff] }
 0x391   : > { %2278 = vperm.xlu0 %9503, %v7736_v17  }
 0x395   : > { %2636 = vperm.xlu0 %9503, %v7784_v24  }
 0x39e   : > { %1204 = vperm.xlu1 %9504, %v1040_v46  }
 0x3a2   : > { %1562 = vperm.xlu1 %9504, %v7640_v14  }
 0x3a6   : > { %1741 = vperm.xlu1 %9504, %v7664_v62  }
 0x3aa   : > { %1920 = vperm.xlu1 %9504, %v7688_v54  }
 0x3ae   : > { %2099 = vperm.xlu1 %9504, %v7712_v15  }
 0x3fe   : > { %v2860_v17 = vpop.xlane.xlu1 %2859 }
 0x3ff   : > { %v2868_v7 = vsub.f32 %v10559_v27, %v2860_v17  ;;  %v7760_v17 = vld [vmem:[%s12555_s8 + $0x1e0] sm:$0xff] }
 0x402   : > { %v2854_v24 = vpop.xlane.xlu1 %2853 }
 0x403   : > { %v2866_v56 = vsub.f32 %v8880_v33, %v2854_v24  ;;  %v12567_v24 = vmov 0.0  }
 0x404   : > { %8884 = vmatprep.subr.mxu0 %v12567_v24  ;;  %8903 = vmatprep.subr.mxu1 %v12567_v24 }
 0x405   : > { %v2879_v15 = vmul.f32 1.442695, %v2866_v56  ;;  %8900 = vmatprep.mubr.msk.f32.mxu0 %vm9791_vm5, %v12567_v24  ;;  %8919 = vmatprep.mubr.msk.f32.mxu1 %vm9791_vm5, %v12567_v24 }
 0x406   : > { %v2851_v46 = vpop.xlane.xlu1 %2850 }
 0x407   : > { %v2865_v63 = vsub.f32 %v2817_v41, %v2851_v46  ;;  %v3100_v46 = vrot.slane %v10536_v42, 4 }
 0x40a   : > { %v2848_v48 = vpop.xlane.xlu1 %2847 }
 0x40b   : > { %v2864_v45 = vsub.f32 %v8877_v4, %v2848_v48  ;;  %v2877_v48 = vmul.f32 1.442695, %v2865_v63 }
 0x40d   : > { %v2875_v36 = vmul.f32 1.442695, %v2864_v45 }
 0x40e   : > { %v2845_v14 = vpop.xlane.xlu1 %2844 }
 0x40f   : > { %v2863_v9 = vsub.f32 %v2807_v47, %v2845_v14 }
 0x411   : > { %v2873_v18 = vmul.f32 1.442695, %v2863_v9 }
 0x412   : > { %v2842_v6 = vpop.xlane.xlu1 %2841 }
 0x413   : > { %v2862_v13 = vsub.f32 %v8874_v35, %v2842_v6 }
 0x415   : > { %v2871_v60 = vmul.f32 1.442695, %v2862_v13 }
 0x416   : > { %v2839_v62 = vpop.xlane.xlu1 %2838 }
 0x417   : > { %9517 = vpow2.f32 %v2871_v60  ;;  %v2861_v28 = vsub.f32 %v2797_v16, %v2839_v62  ;;  %v2857_v60 = vpop.xlane.xlu0 %2856 }
 0x419   : > { %v2869_v54 = vmul.f32 1.442695, %v2861_v28  ;;  %v2883_v28 = vmul.f32 1.442695, %v2868_v7 }
 0x41a   : > { %v1205_v14 = vpop.permute.xlu1 %1204 }
 0x41b   : > { %9519 = vpow2.f32 %v2869_v54  ;;  %v1226_v42 = vmul.f32 %v1205_v14, %v10421_v52 }
 0x41c   : > { %9521 = vpow2.f32 %v2875_v36  ;;  %v2867_v36 = vsub.f32 %v10563_v44, %v2857_v60 }
 0x41d   : > { %9523 = vpow2.f32 %v2873_v18 }
 0x41e   : > { %9525 = vpow2.f32 %v2879_v15  ;;  %v2881_v18 = vmul.f32 1.442695, %v2867_v36  ;;  %v1563_v62 = vpop.permute.xlu1 %1562 }
 0x41f   : > { %9527 = vpow2.f32 %v2877_v48 }
 0x420   : > { %9529 = vpow2.f32 %v2883_v28 }
 0x421   : > { %9531 = vpow2.f32 %v2881_v18 }
 0x422   : > { %v1742_v54 = vpop.permute.xlu1 %1741 }
 0x424   : > { %v10597_v40 = vpop.eup %9517 }
 0x425   : > { %v2888_v6 = vsel %vm2836_vm4, %v10597_v40, 0.0 }
 0x426   : > { %2889 = vadd.xlane.f32.xlu1 %v2888_v6  ;;  %v1921_v15 = vpop.permute.xlu1 %1920 }
 0x428   : > { %v10602_v45 = vpop.eup %9519 }
 0x429   : > { %v2885_v56 = vsel %vm2836_vm4, %v10602_v45, 0.0  ;;  %v10607_v9 = vpop.eup %9521 }
 0x42a   : > { %2886 = vadd.xlane.f32.xlu1 %v2885_v56  ;;  %v2894_v63 = vsel %vm2836_vm4, %v10607_v9, 0.0  ;;  %v10611_v13 = vpop.eup %9523  ;;  %v2100_v48 = vpop.permute.xlu1 %2099 }
 0x42b   : > { %v2891_v7 = vsel %vm2836_vm4, %v10611_v13, 0.0  ;;  %v10615_v35 = vpop.eup %9525 }
 0x42c   : > { %v2900_v16 = vsel %vm2836_vm4, %v10615_v35, 0.0  ;;  %v10619_v4 = vpop.eup %9527 }
 0x42d   : > { %v2897_v47 = vsel %vm2836_vm4, %v10619_v4, 0.0  ;;  %v9530_v33 = vpop.eup %9529 }
 0x42e   : > { %2895 = vadd.xlane.f32.xlu1 %v2894_v63  ;;  %v2906_v41 = vsel %vm2836_vm4, %v9530_v33, 0.0  ;;  %v9532_v27 = vpop.eup %9531 }
 0x42f   : > { %v2903_v44 = vsel %vm2836_vm4, %v9532_v27, 0.0 }
 0x432   : > { %2892 = vadd.xlane.f32.xlu1 %v2891_v7 }
 0x436   : > { %2901 = vadd.xlane.f32.xlu1 %v2900_v16  ;;  %v1384_v16 = vpop.permute.xlu0 %1383 }
 0x43a   : > { %2898 = vadd.xlane.f32.xlu1 %v2897_v47  ;;  %v1405_v47 = vmul.f32 %v1384_v16, %v10467_v12 }
 0x43e   : > { %2907 = vadd.xlane.f32.xlu1 %v2906_v41  ;;  %v1584_v41 = vmul.f32 %v1563_v62, %v10453_v5  ;;  %v2121_v5 = vmul.f32 %v2100_v48, %v10522_v2 }
 0x442   : > { %2904 = vadd.xlane.f32.xlu1 %v2903_v44 }
 0x453   : > { %2457 = vperm.xlu1 %9504, %v7760_v17   ;;  %v1413_v17 = vadd.f32 %v1405_v47, %v1226_v42 }
 0x47c   : > { %3102 = vxpose.xlu1.b32.start.end [1/1] (short) (narrow) %v3100_v46, 64  ;;  %v1763_v46 = vmul.f32 %v1742_v54, %v10495_v32  ;;  %v2279_v54 = vpop.permute.xlu0 %2278 }
 0x47d   : > { %v2300_v48 = vmul.f32 %v2279_v54, %v10513_v61 }
 0x4af   : > { %v2890_v6 = vpop.xlane.xlu1 %2889 }
 0x4b3   : > { %v2887_v60 = vpop.xlane.xlu1 %2886 }
 0x4b7   : > { %v2896_v28 = vpop.xlane.xlu1 %2895 }
 0x4bb   : > { %v2893_v36 = vpop.xlane.xlu1 %2892 }
 0x4bf   : > { %v2902_v56 = vpop.xlane.xlu1 %2901 }
 0x4c3   : > { %v2899_v18 = vpop.xlane.xlu1 %2898 }
 0x4c7   : > { %v2908_v63 = vpop.xlane.xlu1 %2907 }
 0x4c8   : > { %9533 = vrcp.f32 %v2908_v63 }
 0x4c9   : > { %9535 = vrcp.f32 %v2902_v56  ;;  %v10639_v56 = vpop.f32.mrf.mxu0 }
 0x4cb   : > { %v2905_v7 = vpop.xlane.xlu1 %2904 }
 0x4cc   : > { %9537 = vrcp.f32 %v2905_v7  ;;  %v1592_v7 = vadd.f32 %v1584_v41, %v1413_v17 }
 0x4cd   : > { %9539 = vrcp.f32 %v2899_v18  ;;  %v1942_v18 = vmul.f32 %v1921_v15, %v10481_v23 }
 0x4ce   : > { %9541 = vrcp.f32 %v2896_v28  ;;  %v1771_v12 = vadd.f32 %v1763_v46, %v1592_v7 }
 0x4cf   : > { %9543 = vrcp.f32 %v2893_v36 }
 0x4d0   : > { %9545 = vrcp.f32 %v2890_v6  ;;  %v1950_v62 = vadd.f32 %v1942_v18, %v1771_v12  ;;  %v2458_v6 = vpop.permute.xlu1 %2457 }
 0x4d1   : > { %9547 = vrcp.f32 %v2887_v60  ;;  %v2479_v36 = vmul.f32 %v2458_v6, %v10553_v53 }
 0x4d2   : > { %v2129_v60 = vadd.f32 %v2121_v5, %v1950_v62 }
 0x4d4   : > { %v2308_v47 = vadd.f32 %v2300_v48, %v2129_v60 }
 0x4d5   : > { %v9534_v44 = vpop.eup %9533 }
 0x4d6   : > { %v2924_v63 = vmul.f32 %v9534_v44, %v9530_v33  ;;  %v9536_v28 = vpop.eup %9535  ;;  %v10646_v33 = vpop.f32.mrf.mxu0  ;;  %v2487_v41 = vadd.f32 %v2479_v36, %v2308_v47 }
 0x4d7   : > { %v2922_v23 = vmul.f32 %v9536_v28, %v10615_v35 }
 0x4d8   : > { %8885 = vmatpush3.msra.mxu0 %v2924_v63  ;;  %8904 = vmatpush3.xpose.msk.msra.mxu1 %vm2836_vm4, %v2924_v63  ;;  %v10656_v16 = vpop.f32.mrf.mxu0 }
 0x4d9   : > { %v9538_v52 = vpop.eup %9537  ;;  %8886 = vmatprep.subr.mxu0 %v12567_v24  ;;  %8905 = vmatprep.subr.mxu1 %v12567_v24 }
 0x4da   : > { %v2923_v32 = vmul.f32 %v9538_v52, %v9532_v27  ;;  %v9540_v14 = vpop.eup %9539  ;;  %v2595_v44 = vpop.f32.mrf.mxu0 }
 0x4db   : > { %v9542_v15 = vpop.eup %9541  ;;  %v2921_v2 = vmul.f32 %v9540_v14, %v10619_v4  ;;  %v2637_v4 = vpop.permute.xlu0 %2636 }
 0x4dc   : > { %8887 = vmatpush3.msra.mxu0 %v2923_v32  ;;  %8906 = vmatpush3.xpose.msk.msra.mxu1 %vm2836_vm4, %v2923_v32  ;;  %v9544_v27 = vpop.eup %9543  ;;  %v2920_v35 = vmul.f32 %v9542_v15, %v10607_v9  ;;  %v2658_v17 = vmul.f32 %v2637_v4, %v2595_v44  ;;  %v10695_v5 = vpop.f32.mrf.mxu0  ;;  %v7613_v4 = vld [vmem:[%s12555_s8 + $0x48] sm:$0xff] }
 0x4dd   : > { %8888 = vmatprep.subr.mxu0 %v12567_v24  ;;  %8907 = vmatprep.subr.mxu1 %v12567_v24  ;;  %v9546_v42 = vpop.eup %9545  ;;  %v2919_v61 = vmul.f32 %v9544_v27, %v10611_v13  ;;  %v3134_v13 = vrot.slane %v10419_v51, 4  ;;  %12605 = vst [vmem:[#allocation34_spill] sm:$0xff] %v10695_v5  ;;  %v1037_v44 = vld [vmem:[%s12555_s8 + $0x8] sm:$0xff] }
 0x4de   : > { %8889 = vmatpush3.msra.mxu0 %v2922_v23  ;;  %v9548_v53 = vpop.eup %9547  ;;  %v2918_v9 = vmul.f32 %v9546_v42, %v10597_v40  ;;  %v10670_v63 = vadd.f32 %v2658_v17, %v2487_v41  ;;  %v10697_v32 = vpop.f32.mrf.mxu0  ;;  %v892_v41 = vld [vmem:[%s12554_s7 + $0x8] sm:$0xff] }
 0x4df   : > { %8890 = vmatprep.subr.mxu0 %v12567_v24  ;;  %v2917_v46 = vmul.f32 %v9548_v53, %v10602_v45  ;;  %v7781_v53 = vld [vmem:[%s12555_s8 + $0x208] sm:$0xff] }
 0x4e0   : > { %8891 = vmatpush3.msra.mxu0 %v2921_v2  ;;  %8908 = vmatpush3.xpose.msk.msra.mxu1 %vm2836_vm4, %v2922_v23 }
 0x4e1   : > { %8892 = vmatprep.subr.mxu0 %v12567_v24  ;;  %8909 = vmatprep.subr.mxu1 %v12567_v24 }
 0x4e2   : > { %8893 = vmatpush3.msra.mxu0 %v2920_v35 }
 0x4e3   : > { %8894 = vmatprep.subr.mxu0 %v12567_v24 }
 0x4e4   : > { %8895 = vmatpush3.msra.mxu0 %v2919_v61  ;;  %8910 = vmatpush3.xpose.msk.msra.mxu1 %vm2836_vm4, %v2921_v2 }
 0x4e5   : > { %8896 = vmatprep.subr.mxu0 %v12567_v24  ;;  %8911 = vmatprep.subr.mxu1 %v12567_v24 }
 0x4e6   : > { %8897 = vmatpush3.msra.mxu0 %v2918_v9 }
 0x4e7   : > { %8898 = vmatprep.subr.mxu0 %v12567_v24 }
 0x4e8   : > { %8899 = vmatpush3.msra.mxu0 %v2917_v46  ;;  %8912 = vmatpush3.xpose.msk.msra.mxu1 %vm2836_vm4, %v2920_v35 }
 0x4e9   : > { %8901 = vmatmul.mubr.msk.f32.vlgmr.msra.gmra.mxu0 %vm1052_vm1, %v10670_v63  ;;  %8922 = vmatprep.subr.msk.mxu0 %vm2727_vm2, %v3134_v13 }
 0x4ea   : > { %8923 = vmatpush3.msk.msra.mxu0 %vm2727_vm2, %v3134_v13  ;;  %8913 = vmatprep.subr.mxu1 %v12567_v24 }
 0x4eb   : > { %8936 = vmatprep.subr.mxu0 %v12567_v24 }
 0x4ec   : > { %8914 = vmatpush3.xpose.msk.msra.mxu1 %vm2836_vm4, %v2919_v61  ;;  %v7733_v61 = vld [vmem:[%s12555_s8 + $0x188] sm:$0xff] }
 0x4ed   : > { %8915 = vmatprep.subr.mxu1 %v12567_v24 }
 0x4f0   : > { %8916 = vmatpush3.xpose.msk.msra.mxu1 %vm2836_vm4, %v2918_v9  ;;  %v7637_v9 = vld [vmem:[%s12555_s8 + $0x88] sm:$0xff] }
 0x4f1   : > { %8917 = vmatprep.subr.mxu1 %v12567_v24 }
 0x4f4   : > { %8918 = vmatpush3.xpose.msk.msra.mxu1 %vm2836_vm4, %v2917_v46 }
 0x4f8   : > { %v3118_v40 = vpop.trf.xlu1 }
 0x4f9   : > { %8924 = vmatprep.mubr.msk.f32.mxu0 %vm2702_vm3, %v3118_v40 }
 0x4fc   : > { %v3119_v51 = vpop.trf.xlu1 }
 0x4fd   : > { %8925 = vmatmul.mubr.msk.f32.vlgmr.msra.gmra.mxu0 %vm2702_vm3, %v3119_v51  ;;  %v7661_v51 = vld [vmem:[%s12555_s8 + $0xc8] sm:$0xff] }
 0x500   : > { %v3120_v45 = vpop.trf.xlu1 }
 0x501   : > { %8927 = vmatprep.mubr.msk.f32.mxu0 %vm2702_vm3, %v3120_v45  ;;  %v7685_v45 = vld [vmem:[%s12555_s8 + $0x108] sm:$0xff] }
 0x504   : > { %v3121_v7 = vpop.trf.xlu1 }
 0x505   : > { %8928 = vmatmul.mubr.msk.f32.gmra.mxu0 %vm2702_vm3, %v3121_v7  ;;  %v7709_v7 = vld [vmem:[%s12555_s8 + $0x148] sm:$0xff] }
 0x508   : > { %v3122_v18 = vpop.trf.xlu1 }
 0x509   : > { %8930 = vmatprep.mubr.msk.f32.mxu0 %vm2702_vm3, %v3122_v18 }
 0x50c   : > { %v3123_v28 = vpop.trf.xlu1 }
 0x50d   : > { %8931 = vmatmul.mubr.msk.f32.gmra.mxu0 %vm2702_vm3, %v3123_v28 }
 0x510   : > { %v3124_v52 = vpop.trf.xlu1 }
 0x511   : > { %8933 = vmatprep.mubr.msk.f32.mxu0 %vm2702_vm3, %v3124_v52 }
 0x514   : > { %v3125_v12 = vpop.trf.xlu1 }
 0x515   : > { %8934 = vmatmul.mubr.msk.f32.gmra.mxu0 %vm2702_vm3, %v3125_v12 }
 0x516   : > { %8952 = vmatprep.mubr.msk.f32.mxu0 %vm9791_vm5, %v12567_v24 }
 0x5a9   : > { %v2994_v14 = vpop.f32.mrf.mxu0 }
 0x5aa   : > { %2999 = vst.msk [vmem:[#allocation3] sm:$0xf] %vm2998_vm6, %v2994_v14 }
 0x5ab   : > { %v8902_v62 = vpop.f32.mrf.mxu0 }
 0x5bd   : > { %v8926_v54 = vpop.f32.mrf.mxu0 }
 0x5be   : > { %v3269_v42 = vsel %vm2836_vm4, %v8926_v54, -inf }
 0x5bf   : > { %v3227_v6 = vpop.f32.mrf.mxu0 }
 0x5c0   : > { %v3266_v47 = vsel %vm2836_vm4, %v3227_v6, -inf }
 0x5c5   : > { %v8929_v23 = vpop.f32.mrf.mxu0 }
 0x5c6   : > { %v3275_v36 = vsel %vm2836_vm4, %v8929_v23, -inf }
 0x5c7   : > { %v3237_v15 = vpop.f32.mrf.mxu0 }
 0x5c8   : > { %v3272_v35 = vsel %vm2836_vm4, %v3237_v15, -inf }
 0x5cd   : > { %v8932_v60 = vpop.f32.mrf.mxu0 }
 0x5ce   : > { %v3281_v2 = vsel %vm2836_vm4, %v8932_v60, -inf }
 0x5cf   : > { %3282 = vmax.xlane.f32.xlu0 %v3281_v2  ;;  %v10701_v27 = vpop.f32.mrf.mxu0 }
 0x5d0   : > { %v3278_v48 = vsel %vm2836_vm4, %v10701_v27, -inf }
 0x5d1   : > { %3279 = vmax.xlane.f32.xlu1 %v3278_v48 }
 0x5d3   : > { %3276 = vmax.xlane.f32.xlu0 %v3275_v36 }
 0x5d5   : > { %v10727_v17 = vpop.f32.mrf.mxu0 }
 0x5d6   : > { %v3287_v46 = vsel %vm2836_vm4, %v10727_v17, -inf }
 0x5d7   : > { %3273 = vmax.xlane.f32.xlu0 %v3272_v35  ;;  %v10731_v13 = vpop.f32.mrf.mxu0 }
 0x5d8   : > { %v3284_v40 = vsel %vm2836_vm4, %v10731_v13, -inf }
 0x5db   : > { %3270 = vmax.xlane.f32.xlu0 %v3269_v42 }
 0x5df   : > { %3267 = vmax.xlane.f32.xlu0 %v3266_v47 }
 0x5e2   : > { %1368 = vperm.xlu1 %9504, %v7613_v4  }
 0x5e6   : > { %2263 = vperm.xlu1 %9504, %v7733_v61  }
 0x5ea   : > { %2621 = vperm.xlu1 %9504, %v7781_v53  }
 0x5ee   : > { %906 = vperm.xlu1 %9504, %v892_v41  }
 0x5f5   : > { %1189 = vperm.xlu0 %9503, %v1037_v44  }
 0x5f9   : > { %1547 = vperm.xlu0 %9503, %v7637_v9  }
 0x618   : > { %3288 = vmax.xlane.f32.xlu0 %v3287_v46 }
 0x61c   : > { %3285 = vmax.xlane.f32.xlu0 %v3284_v40 }
 0x632   : > { %1726 = vperm.xlu0 %9503, %v7661_v51  }
 0x636   : > { %1905 = vperm.xlu0 %9503, %v7685_v45  }
 0x63a   : > { %2084 = vperm.xlu0 %9503, %v7709_v7  }
 0x658   : > { %v3283_v18 = vpop.xlane.xlu0 %3282 }
 0x659   : > { %v3295_v46 = vsub.f32 %v8932_v60, %v3283_v18 }
 0x65a   : > { %v3280_v28 = vpop.xlane.xlu1 %3279 }
 0x65b   : > { %v3308_v40 = vmul.f32 1.442695, %v3295_v46 }
 0x65c   : > { %v3277_v52 = vpop.xlane.xlu0 %3276 }
 0x65d   : > { %v3293_v35 = vsub.f32 %v8929_v23, %v3277_v52  ;;  %v3294_v23 = vsub.f32 %v10701_v27, %v3280_v28 }
 0x65e   : > { %v10744_v12 = vpop.permute.xlu1 %1368 }
 0x65f   : > { %v3304_v53 = vmul.f32 1.442695, %v3293_v35 }
 0x660   : > { %v3274_v14 = vpop.xlane.xlu0 %3273 }
 0x661   : > { %v3292_v41 = vsub.f32 %v3237_v15, %v3274_v14 }
 0x662   : > { %v10746_v62 = vpop.permute.xlu1 %2263 }
 0x664   : > { %v3271_v2 = vpop.xlane.xlu0 %3270 }
 0x665   : > { %v3291_v48 = vsub.f32 %v8926_v54, %v3271_v2  ;;  %v3302_v54 = vmul.f32 1.442695, %v3292_v41 }
 0x666   : > { %v10748_v36 = vpop.permute.xlu1 %2621 }
 0x667   : > { %v3300_v42 = vmul.f32 1.442695, %v3291_v48 }
 0x668   : > { %v3268_v47 = vpop.xlane.xlu0 %3267 }
 0x669   : > { %9549 = vpow2.f32 %v3300_v42  ;;  %v3290_v4 = vsub.f32 %v3227_v6, %v3268_v47  ;;  %v3306_v6 = vmul.f32 1.442695, %v3294_v23  ;;  %v7757_v23 = vld [vmem:[%s12555_s8 + $0x1c8] sm:$0xff] }
 0x66a   : > { %v907_v61 = vpop.permute.xlu1 %906 }
 0x66b   : > { %v3298_v44 = vmul.f32 1.442695, %v3290_v4  ;;  %v10751_v9 = vadd.f32 %v10431_v55, %v907_v61 }
 0x66d   : > { %9551 = vpow2.f32 %v3298_v44  ;;  %8974 = vmatprep.subr.msk.mxu1 %vm2727_vm2, %v10751_v9 }
 0x66e   : > { %9553 = vpow2.f32 %v3304_v53 }
 0x66f   : > { %9555 = vpow2.f32 %v3302_v54 }
 0x670   : > { %9557 = vpow2.f32 %v3308_v40  ;;  %v1190_v48 = vpop.permute.xlu0 %1189 }
 0x671   : > { %9559 = vpow2.f32 %v3306_v6 }
 0x674   : > { %v1548_v35 = vpop.permute.xlu0 %1547 }
 0x676   : > { %v10756_v51 = vpop.eup %9549 }
 0x677   : > { %v3317_v15 = vsel %vm2836_vm4, %v10756_v51, 0.0 }
 0x678   : > { %3318 = vadd.xlane.f32.xlu0 %v3317_v15 }
 0x67a   : > { %v10760_v55 = vpop.eup %9551 }
 0x67b   : > { %v3314_v60 = vsel %vm2836_vm4, %v10760_v55, 0.0  ;;  %v10764_v45 = vpop.eup %9553 }
 0x67c   : > { %3315 = vadd.xlane.f32.xlu0 %v3314_v60  ;;  %v3323_v27 = vsel %vm2836_vm4, %v10764_v45, 0.0  ;;  %v10768_v7 = vpop.eup %9555 }
 0x67d   : > { %v3320_v18 = vsel %vm2836_vm4, %v10768_v7, 0.0  ;;  %v10772_v28 = vpop.eup %9557 }
 0x67e   : > { %v3329_v52 = vsel %vm2836_vm4, %v10772_v28, 0.0  ;;  %v10776_v14 = vpop.eup %9559 }
 0x67f   : > { %v3326_v2 = vsel %vm2836_vm4, %v10776_v14, 0.0 }
 0x680   : > { %3324 = vadd.xlane.f32.xlu0 %v3323_v27 }
 0x684   : > { %3321 = vadd.xlane.f32.xlu0 %v3320_v18 }
 0x688   : > { %3330 = vadd.xlane.f32.xlu0 %v3329_v52 }
 0x68c   : > { %3327 = vadd.xlane.f32.xlu0 %v3326_v2 }
 0x6a1   : > { %v3289_v42 = vpop.xlane.xlu0 %3288 }
 0x6a2   : > { %v3297_v47 = vsub.f32 %v10727_v17, %v3289_v42  ;;  %v895_v17 = vld [vmem:[%s12554_s7 + $0x20] sm:$0xff] }
 0x6a4   : > { %v3312_v4 = vmul.f32 1.442695, %v3297_v47  ;;  %v1223_v47 = vmul.f32 %v10405_v29, %v1190_v48 }
 0x6a5   : > { %v3286_v61 = vpop.xlane.xlu0 %3285 }
 0x6a6   : > { %9561 = vpow2.f32 %v3312_v4  ;;  %v3296_v53 = vsub.f32 %v10731_v13, %v3286_v61  ;;  %v1402_v4 = vmul.f32 %v10449_v1, %v10744_v12  ;;  %v1581_v61 = vmul.f32 %v10437_v58, %v1548_v35 }
 0x6a7   : > { %v2297_v58 = vmul.f32 %v10493_v31, %v10746_v62  ;;  %v2655_v35 = vmul.f32 %v10531_v22, %v10748_v36  ;;  %v12606_v62 = vmov 0.0  }
 0x6a8   : > { %v3310_v41 = vmul.f32 1.442695, %v3296_v53 }
 0x6aa   : > { %9563 = vpow2.f32 %v3310_v41  ;;  %v1410_v41 = vadd.f32 %v1402_v4, %v1223_v47 }
 0x6ad   : > { %v1727_v13 = vpop.permute.xlu0 %1726 }
 0x6b1   : > { %v1906_v6 = vpop.permute.xlu0 %1905 }
 0x6b3   : > { %v9562_v44 = vpop.eup %9561 }
 0x6b4   : > { %v3335_v46 = vsel %vm2836_vm4, %v9562_v44, 0.0 }
 0x6b5   : > { %3336 = vadd.xlane.f32.xlu0 %v3335_v46  ;;  %v2085_v15 = vpop.permute.xlu0 %2084  ;;  %v1760_v46 = vmul.f32 %v10477_v20, %v1727_v13 }
 0x6b6   : > { %v2118_v5 = vmul.f32 %v10505_v39, %v2085_v15 }
 0x6b7   : > { %v9564_v54 = vpop.eup %9563 }
 0x6b8   : > { %v3332_v40 = vsel %vm2836_vm4, %v9564_v54, 0.0 }
 0x6b9   : > { %3333 = vadd.xlane.f32.xlu0 %v3332_v40  ;;  %v1589_v40 = vadd.f32 %v1581_v61, %v1410_v41 }
 0x6bb   : > { %v1768_v24 = vadd.f32 %v1760_v46, %v1589_v40 }
 0x6cf   : > { %2442 = vperm.xlu0 %9503, %v7757_v23   ;;  %v1939_v23 = vmul.f32 %v10465_v11, %v1906_v6 }
 0x6d1   : > { %v1947_v29 = vadd.f32 %v1939_v23, %v1768_v24 }
 0x6d3   : > { %921 = vperm.xlu0 %9503, %v895_v17   ;;  %v2126_v48 = vadd.f32 %v2118_v5, %v1947_v29 }
 0x6d5   : > { %v2305_v20 = vadd.f32 %v2297_v58, %v2126_v48 }
 0x701   : > { %v3319_v60 = vpop.xlane.xlu0 %3318 }
 0x705   : > { %v3316_v27 = vpop.xlane.xlu0 %3315 }
 0x709   : > { %v3325_v18 = vpop.xlane.xlu0 %3324 }
 0x70d   : > { %v3322_v52 = vpop.xlane.xlu0 %3321 }
 0x711   : > { %v3331_v2 = vpop.xlane.xlu0 %3330 }
 0x715   : > { %v3328_v42 = vpop.xlane.xlu0 %3327 }
 0x73e   : > { %v3337_v53 = vpop.xlane.xlu0 %3336 }
 0x73f   : > { %9565 = vrcp.f32 %v3337_v53 }
 0x740   : > { %9567 = vrcp.f32 %v3331_v2 }
 0x742   : > { %v3334_v17 = vpop.xlane.xlu0 %3333 }
 0x743   : > { %9569 = vrcp.f32 %v3334_v17 }
 0x744   : > { %9571 = vrcp.f32 %v3328_v42  ;;  %v3354_v42 = vrot.slane %v10670_v63, 4  ;;  %v3985_v63 = vrot.slane %v10751_v9, 4 }
 0x745   : > { %9573 = vrcp.f32 %v3325_v18 }
 0x746   : > { %9575 = vrcp.f32 %v3322_v52 }
 0x747   : > { %9577 = vrcp.f32 %v3319_v60 }
 0x748   : > { %9579 = vrcp.f32 %v3316_v27 }
 0x74a   : > { %v2443_v1 = vpop.permute.xlu0 %2442 }
 0x74b   : > { %v2476_v12 = vmul.f32 %v10533_v50, %v2443_v1 }
 0x74c   : > { %v9566_v11 = vpop.eup %9565 }
 0x74d   : > { %v2484_v39 = vadd.f32 %v2476_v12, %v2305_v20  ;;  %v3353_v13 = vmul.f32 %v9566_v11, %v9562_v44  ;;  %v9568_v6 = vpop.eup %9567 }
 0x74e   : > { %v922_v24 = vpop.permute.xlu0 %921  ;;  %v3351_v22 = vmul.f32 %v9568_v6, %v10772_v28 }
 0x74f   : > { %v2663_v5 = vadd.f32 %v2655_v35, %v2484_v39  ;;  %v1022_v15 = vadd.f32 %v10439_v59, %v922_v24  ;;  %8937 = vmatpush3.msra.mxu0 %v3353_v13 }
 0x750   : > { %v9570_v31 = vpop.eup %9569  ;;  %8938 = vmatprep.subr.mxu0 %v12606_v62 }
 0x751   : > { %v3951_v18 = vrot.slane %v2663_v5, 4  ;;  %3526 = vxpose.xlu0.b32.start.end [1/1] (short) (narrow) %v2663_v5, 64  ;;  %8920 = vmatmul.mubr.msk.f32.vlgmr.msra.gmra.mxu1 %vm2836_vm4, %v1022_v15  ;;  %v3352_v50 = vmul.f32 %v9570_v31, %v9564_v54  ;;  %v9572_v60 = vpop.eup %9571 }
 0x752   : > { %8975 = vmatpush3.msk.msra.mxu1 %vm2727_vm2, %v10751_v9  ;;  %v9574_v36 = vpop.eup %9573  ;;  %v3350_v59 = vmul.f32 %v9572_v60, %v10776_v14 }
 0x753   : > { %8939 = vmatpush3.msra.mxu0 %v3352_v50  ;;  %3953 = vxpose.xlu1.b32.start.end [1/1] (short) (narrow) %v3951_v18, 64  ;;  %v9576_v44 = vpop.eup %9575  ;;  %v3349_v54 = vmul.f32 %v9574_v36, %v10764_v45 }
 0x754   : > { %8940 = vmatprep.subr.mxu0 %v12606_v62  ;;  %8988 = vmatprep.subr.mxu1 %v12606_v62  ;;  %v9578_v27 = vpop.eup %9577  ;;  %v3348_v28 = vmul.f32 %v9576_v44, %v10768_v7 }
 0x755   : > { %8941 = vmatpush3.msra.mxu0 %v3351_v22  ;;  %v9580_v52 = vpop.eup %9579  ;;  %v3347_v2 = vmul.f32 %v9578_v27, %v10756_v51  ;;  %v3428_v51 = vrot.slane %v1022_v15, 4 }
 0x756   : > { %8942 = vmatprep.subr.mxu0 %v12606_v62  ;;  %v3346_v14 = vmul.f32 %v9580_v52, %v10760_v55 }
 0x757   : > { %8943 = vmatpush3.msra.mxu0 %v3350_v59 }
 0x758   : > { %8944 = vmatprep.subr.mxu0 %v12606_v62 }
 0x759   : > { %8945 = vmatpush3.msra.mxu0 %v3349_v54 }
 0x75a   : > { %8946 = vmatprep.subr.mxu0 %v12606_v62 }
 0x75b   : > { %8947 = vmatpush3.msra.mxu0 %v3348_v28 }
 0x75c   : > { %8948 = vmatprep.subr.mxu0 %v12606_v62 }
 0x75d   : > { %8949 = vmatpush3.msra.mxu0 %v3347_v2 }
 0x75e   : > { %8950 = vmatprep.subr.mxu0 %v12606_v62 }
 0x75f   : > { %8951 = vmatpush3.msra.mxu0 %v3346_v14 }
 0x760   : > { %8953 = vmatmul.mubr.msk.f32.vlgmr.msra.gmra.mxu0 %vm1052_vm1, %v3354_v42  ;;  %8955 = vmatprep.subr.mxu0 %v12606_v62 }
 0x761   : > { %8956 = vmatpush3.xpose.msk.msra.mxu0 %vm2836_vm4, %v3353_v13  ;;  %8971 = vmatprep.mubr.msk.f32.mxu0 %vm9791_vm5, %v12606_v62 }
 0x762   : > { %8957 = vmatprep.subr.mxu0 %v12606_v62 }
 0x765   : > { %8958 = vmatpush3.xpose.msk.msra.mxu0 %vm2836_vm4, %v3352_v50 }
 0x766   : > { %8959 = vmatprep.subr.mxu0 %v12606_v62 }
 0x769   : > { %8960 = vmatpush3.xpose.msk.msra.mxu0 %vm2836_vm4, %v3351_v22 }
 0x76a   : > { %8961 = vmatprep.subr.mxu0 %v12606_v62 }
 0x76d   : > { %8962 = vmatpush3.xpose.msk.msra.mxu0 %vm2836_vm4, %v3350_v59 }
 0x76e   : > { %8963 = vmatprep.subr.mxu0 %v12606_v62 }
 0x771   : > { %8964 = vmatpush3.xpose.msk.msra.mxu0 %vm2836_vm4, %v3349_v54 }
 0x772   : > { %8965 = vmatprep.subr.mxu0 %v12606_v62 }
 0x775   : > { %8966 = vmatpush3.xpose.msk.msra.mxu0 %vm2836_vm4, %v3348_v28 }
 0x776   : > { %8967 = vmatprep.subr.mxu0 %v12606_v62 }
 0x779   : > { %8968 = vmatpush3.xpose.msk.msra.mxu0 %vm2836_vm4, %v3347_v2 }
 0x77a   : > { %8969 = vmatprep.subr.mxu0 %v12606_v62 }
 0x77d   : > { %8970 = vmatpush3.xpose.msk.msra.mxu0 %vm2836_vm4, %v3346_v14 }
 0x77e   : > { %9026 = vmatprep.subr.msk.mxu0 %vm2727_vm2, %v3985_v63 }
 0x780   : > { %8972 = vmatmul.mubr.msk.f32.vlgmr.msra.gmra.mxu0 %vm2836_vm4, %v3428_v51 }
 0x781   : > { %9027 = vmatpush3.msk.msra.mxu0 %vm2727_vm2, %v3985_v63 }
 0x782   : > { %9040 = vmatprep.subr.mxu0 %v12606_v62 }
 0x7cd   : > { %v3542_v55 = vpop.trf.xlu0 }
 0x7ce   : > { %8976 = vmatprep.mubr.msk.f32.mxu1 %vm2702_vm3, %v3542_v55 }
 0x7cf   : > { %v3969_v45 = vpop.trf.xlu1 }
 0x7d0   : > { %9028 = vmatprep.mubr.msk.f32.mxu0 %vm2702_vm3, %v3969_v45 }
 0x7d1   : > { %v3543_v7 = vpop.trf.xlu0 }
 0x7d2   : > { %8977 = vmatmul.mubr.msk.f32.vlgmr.msra.gmra.mxu1 %vm2702_vm3, %v3543_v7 }
 0x7d3   : > { %v3970_v9 = vpop.trf.xlu1 }
 0x7d4   : > { %9029 = vmatmul.mubr.msk.f32.vlgmr.msra.gmra.mxu0 %vm2702_vm3, %v3970_v9 }
 0x7d5   : > { %v3544_v47 = vpop.trf.xlu0 }
 0x7d6   : > { %8979 = vmatprep.mubr.msk.f32.mxu1 %vm2702_vm3, %v3544_v47 }
 0x7d7   : > { %v3971_v4 = vpop.trf.xlu1 }
 0x7d8   : > { %9031 = vmatprep.mubr.msk.f32.mxu0 %vm2702_vm3, %v3971_v4 }
 0x7d9   : > { %v3545_v61 = vpop.trf.xlu0 }
 0x7da   : > { %8980 = vmatmul.mubr.msk.f32.gmra.mxu1 %vm2702_vm3, %v3545_v61 }
 0x7db   : > { %v3972_v53 = vpop.trf.xlu1 }
 0x7dc   : > { %9032 = vmatmul.mubr.msk.f32.gmra.mxu0 %vm2702_vm3, %v3972_v53 }
 0x7dd   : > { %v3546_v41 = vpop.trf.xlu0 }
 0x7de   : > { %8982 = vmatprep.mubr.msk.f32.mxu1 %vm2702_vm3, %v3546_v41  ;;  %v1041_v41 = vld [vmem:[%s12555_s8 + $0x28] sm:$0xff] }
 0x7df   : > { %v3973_v46 = vpop.trf.xlu1 }
 0x7e0   : > { %9034 = vmatprep.mubr.msk.f32.mxu0 %vm2702_vm3, %v3973_v46  ;;  %v7638_v46 = vld [vmem:[%s12555_s8 + $0x90] sm:$0xff] }
 0x7e1   : > { %v3547_v40 = vpop.trf.xlu0 }
 0x7e2   : > { %8983 = vmatmul.mubr.msk.f32.gmra.mxu1 %vm2702_vm3, %v3547_v40  ;;  %v7662_v40 = vld [vmem:[%s12555_s8 + $0xd0] sm:$0xff] }
 0x7e3   : > { %v3974_v23 = vpop.trf.xlu1 }
 0x7e4   : > { %9035 = vmatmul.mubr.msk.f32.gmra.mxu0 %vm2702_vm3, %v3974_v23  ;;  %v7686_v23 = vld [vmem:[%s12555_s8 + $0x110] sm:$0xff] }
 0x7e5   : > { %v3548_v17 = vpop.trf.xlu0 }
 0x7e6   : > { %8985 = vmatprep.mubr.msk.f32.mxu1 %vm2702_vm3, %v3548_v17 }
 0x7e7   : > { %v3975_v29 = vpop.trf.xlu1 }
 0x7e8   : > { %9037 = vmatprep.mubr.msk.f32.mxu0 %vm2702_vm3, %v3975_v29 }
 0x7e9   : > { %v3549_v48 = vpop.trf.xlu0 }
 0x7ea   : > { %8986 = vmatmul.mubr.msk.f32.gmra.mxu1 %vm2702_vm3, %v3549_v48  ;;  %v7710_v48 = vld [vmem:[%s12555_s8 + $0x150] sm:$0xff] }
 0x7eb   : > { %v3976_v58 = vpop.trf.xlu1  ;;  %9004 = vmatprep.mubr.msk.f32.mxu1 %vm9791_vm5, %v12606_v62 }
 0x7ec   : > { %9038 = vmatmul.mubr.msk.f32.gmra.mxu0 %vm2702_vm3, %v3976_v58  ;;  %v7734_v58 = vld [vmem:[%s12555_s8 + $0x190] sm:$0xff] }
 0x7ed   : > { %9056 = vmatprep.mubr.msk.f32.mxu0 %vm9791_vm5, %v12606_v62 }
 0x811   : > { %v3093_v1 = vpop.f32.mrf.mxu1 }
 0x812   : > { %3098 = vst.msk [vmem:[#allocation2] sm:$0xf] %vm3097_vm7, %v3093_v1  ;;  %v7758_v1 = vld [vmem:[%s12555_s8 + $0x1d0] sm:$0xff] }
 0x813   : > { %v8921_v20 = vpop.f32.mrf.mxu1 }
 0x820   : > { %v3423_v12 = vpop.f32.mrf.mxu0 }
 0x821   : > { %3427 = vst.msk [vmem:[#allocation3 + $0x4] sm:$0xf] %vm2998_vm6, %v3423_v12 }
 0x822   : > { %v8954_v11 = vpop.f32.mrf.mxu0 }
 0x840   : > { %v3521_v35 = vpop.f32.mrf.mxu0 }
 0x841   : > { %3525 = vst.msk [vmem:[#allocation2 + $0x4] sm:$0xf] %vm3097_vm7, %v3521_v35 }
 0x842   : > { %v8973_v39 = vpop.f32.mrf.mxu0 }
 0x892   : > { %v10870_v24 = vpop.f32.mrf.mxu1 }
 0x893   : > { %v3693_v7 = vsel %vm2836_vm4, %v10870_v24, -inf }
 0x894   : > { %v10868_v13 = vpop.f32.mrf.mxu0  ;;  %v10874_v5 = vpop.f32.mrf.mxu1 }
 0x895   : > { %v3690_v47 = vsel %vm2836_vm4, %v10874_v5, -inf  ;;  %v4120_v61 = vsel %vm2836_vm4, %v10868_v13, -inf }
 0x896   : > { %v10872_v6 = vpop.f32.mrf.mxu0 }
 0x897   : > { %v4117_v53 = vsel %vm2836_vm4, %v10872_v6, -inf }
 0x89a   : > { %v10876_v15 = vpop.f32.mrf.mxu1 }
 0x89b   : > { %v3699_v63 = vsel %vm2836_vm4, %v10876_v15, -inf }
 0x89c   : > { %v10878_v31 = vpop.f32.mrf.mxu0  ;;  %v10880_v18 = vpop.f32.mrf.mxu1 }
 0x89d   : > { %v3696_v55 = vsel %vm2836_vm4, %v10880_v18, -inf  ;;  %v4126_v9 = vsel %vm2836_vm4, %v10878_v31, -inf }
 0x89e   : > { %v10882_v50 = vpop.f32.mrf.mxu0 }
 0x89f   : > { %v4123_v4 = vsel %vm2836_vm4, %v10882_v50, -inf }
 0x8a2   : > { %v10884_v60 = vpop.f32.mrf.mxu1 }
 0x8a3   : > { %v3705_v22 = vsel %vm2836_vm4, %v10884_v60, -inf }
 0x8a4   : > { %3706 = vmax.xlane.f32.xlu1 %v3705_v22  ;;  %v10888_v36 = vpop.f32.mrf.mxu1  ;;  %v10890_v59 = vpop.f32.mrf.mxu0 }
 0x8a5   : > { %v3702_v44 = vsel %vm2836_vm4, %v10888_v36, -inf  ;;  %v4132_v51 = vsel %vm2836_vm4, %v10890_v59, -inf }
 0x8a6   : > { %v10894_v54 = vpop.f32.mrf.mxu0 }
 0x8a7   : > { %v4129_v45 = vsel %vm2836_vm4, %v10894_v54, -inf }
 0x8a8   : > { %3703 = vmax.xlane.f32.xlu1 %v3702_v44 }
 0x8aa   : > { %v8987_v27 = vpop.f32.mrf.mxu1 }
 0x8ab   : > { %v3711_v28 = vsel %vm2836_vm4, %v8987_v27, -inf }
 0x8ac   : > { %v10897_v52 = vpop.f32.mrf.mxu0  ;;  %3712 = vmax.xlane.f32.xlu0 %v3711_v28  ;;  %v3681_v2 = vpop.f32.mrf.mxu1 }
 0x8ad   : > { %v4138_v14 = vsel %vm2836_vm4, %v10897_v52, -inf  ;;  %v3708_v42 = vsel %vm2836_vm4, %v3681_v2, -inf }
 0x8ae   : > { %4139 = vmax.xlane.f32.xlu1 %v4138_v14  ;;  %v10934_v17 = vpop.f32.mrf.mxu0 }
 0x8af   : > { %v4135_v29 = vsel %vm2836_vm4, %v10934_v17, -inf }
 0x8b0   : > { %3709 = vmax.xlane.f32.xlu0 %v3708_v42 }
 0x8b2   : > { %3700 = vmax.xlane.f32.xlu1 %v3699_v63 }
 0x8b4   : > { %4133 = vmax.xlane.f32.xlu0 %v4132_v51 }
 0x8b6   : > { %3697 = vmax.xlane.f32.xlu1 %v3696_v55 }
 0x8b8   : > { %4130 = vmax.xlane.f32.xlu0 %v4129_v45 }
 0x8ba   : > { %3694 = vmax.xlane.f32.xlu1 %v3693_v7 }
 0x8bc   : > { %4127 = vmax.xlane.f32.xlu0 %v4126_v9 }
 0x8be   : > { %3691 = vmax.xlane.f32.xlu1 %v3690_v47 }
 0x8c0   : > { %4124 = vmax.xlane.f32.xlu0 %v4123_v4 }
 0x8c4   : > { %4121 = vmax.xlane.f32.xlu0 %v4120_v61 }
 0x8c8   : > { %4118 = vmax.xlane.f32.xlu0 %v4117_v53 }
 0x8de   : > { %1209 = vperm.xlu0 %9503, %v1041_v41  }
 0x8e2   : > { %1552 = vperm.xlu0 %9503, %v7638_v46  }
 0x8e6   : > { %1731 = vperm.xlu0 %9503, %v7662_v40  }
 0x8ea   : > { %1910 = vperm.xlu0 %9503, %v7686_v23  }
 0x909   : > { %4136 = vmax.xlane.f32.xlu0 %v4135_v29 }
 0x91f   : > { %2089 = vperm.xlu0 %9503, %v7710_v48  }
 0x923   : > { %2268 = vperm.xlu0 %9503, %v7734_v58  }
 0x927   : > { %2447 = vperm.xlu0 %9503, %v7758_v1  }
 0x92d   : > { %v3707_v20 = vpop.xlane.xlu1 %3706 }
 0x92e   : > { %v3719_v39 = vsub.f32 %v10884_v60, %v3707_v20 }
 0x930   : > { %v3732_v42 = vmul.f32 1.442695, %v3719_v39 }
 0x931   : > { %v3704_v12 = vpop.xlane.xlu1 %3703 }
 0x932   : > { %v3718_v63 = vsub.f32 %v10888_v36, %v3704_v12 }
 0x934   : > { %v3730_v7 = vmul.f32 1.442695, %v3718_v63 }
 0x935   : > { %v3713_v11 = vpop.xlane.xlu0 %3712 }
 0x936   : > { %v3721_v35 = vsub.f32 %v8987_v27, %v3713_v11 }
 0x937   : > { %v10948_v22 = vpop.xlane.xlu1 %4139 }
 0x938   : > { %v3736_v44 = vmul.f32 1.442695, %v3721_v35 }
 0x939   : > { %v3710_v28 = vpop.xlane.xlu0 %3709 }
 0x93a   : > { %9581 = vpow2.f32 %v3736_v44  ;;  %v3720_v14 = vsub.f32 %v3681_v2, %v3710_v28 }
 0x93b   : > { %v3701_v51 = vpop.xlane.xlu1 %3700 }
 0x93c   : > { %v3734_v55 = vmul.f32 1.442695, %v3720_v14  ;;  %v3717_v27 = vsub.f32 %v10876_v15, %v3701_v51 }
 0x93d   : > { %v4134_v45 = vpop.xlane.xlu0 %4133 }
 0x93e   : > { %9583 = vpow2.f32 %v3734_v55  ;;  %v3728_v4 = vmul.f32 1.442695, %v3717_v27 }
 0x93f   : > { %9585 = vpow2.f32 %v3732_v42  ;;  %v3698_v9 = vpop.xlane.xlu1 %3697 }
 0x940   : > { %9587 = vpow2.f32 %v3730_v7  ;;  %v3716_v61 = vsub.f32 %v10880_v18, %v3698_v9 }
 0x941   : > { %v4131_v47 = vpop.xlane.xlu0 %4130  ;;  %9589 = vpow2.f32 %v3728_v4 }
 0x942   : > { %v3726_v36 = vmul.f32 1.442695, %v3716_v61  ;;  %v4145_v9 = vsub.f32 %v10894_v54, %v4131_v47 }
 0x943   : > { %v3695_v60 = vpop.xlane.xlu1 %3694 }
 0x944   : > { %v3715_v41 = vsub.f32 %v10870_v24, %v3695_v60  ;;  %9591 = vpow2.f32 %v3726_v36 }
 0x945   : > { %v4128_v53 = vpop.xlane.xlu0 %4127 }
 0x946   : > { %v3724_v48 = vmul.f32 1.442695, %v3715_v41  ;;  %v4144_v11 = vsub.f32 %v10878_v31, %v4128_v53  ;;  %v4146_v31 = vsub.f32 %v10890_v59, %v4134_v45  ;;  %v4148_v59 = vsub.f32 %v10897_v52, %v10948_v22 }
 0x947   : > { %v10953_v2 = vpop.eup %9581  ;;  %v3692_v40 = vpop.xlane.xlu1 %3691  ;;  %v4157_v45 = vmul.f32 1.442695, %v4145_v9  ;;  %v7761_v9 = vld [vmem:[%s12555_s8 + $0x1e8] sm:$0xff] }
 0x948   : > { %v3759_v46 = vsel %vm2836_vm4, %v10953_v2, 0.0  ;;  %v3714_v18 = vsub.f32 %v10874_v5, %v3692_v40  ;;  %9593 = vpow2.f32 %v3724_v48  ;;  %v4155_v14 = vmul.f32 1.442695, %v4144_v11 }
 0x949   : > { %3760 = vadd.xlane.f32.xlu1 %v3759_v46  ;;  %v4125_v23 = vpop.xlane.xlu0 %4124  ;;  %v4159_v7 = vmul.f32 1.442695, %v4146_v31  ;;  %v4163_v53 = vmul.f32 1.442695, %v4148_v59  ;;  %v7785_v59 = vld [vmem:[%s12555_s8 + $0x228] sm:$0xff] }
 0x94a   : > { %v3722_v35 = vmul.f32 1.442695, %v3714_v18 }
 0x94b   : > { %v10958_v15 = vpop.eup %9583 }
 0x94c   : > { %v10960_v29 = vpop.eup %9585  ;;  %v3756_v58 = vsel %vm2836_vm4, %v10958_v15, 0.0 }
 0x94d   : > { %3757 = vadd.xlane.f32.xlu1 %v3756_v58  ;;  %v4122_v1 = vpop.xlane.xlu0 %4121  ;;  %v3753_v20 = vsel %vm2836_vm4, %v10960_v29, 0.0  ;;  %v10968_v12 = vpop.eup %9587  ;;  %v1038_v58 = vld [vmem:[%s12555_s8 + $0x10] sm:$0xff] }
 0x94e   : > { %v4142_v24 = vsub.f32 %v10868_v13, %v4122_v1  ;;  %v3750_v28 = vsel %vm2836_vm4, %v10968_v12, 0.0  ;;  %v4143_v13 = vsub.f32 %v10882_v50, %v4125_v23  ;;  %v10975_v63 = vpop.eup %9589 }
 0x94f   : > { %v3747_v55 = vsel %vm2836_vm4, %v10975_v63, 0.0 }
 0x950   : > { %v4151_v39 = vmul.f32 1.442695, %v4142_v24  ;;  %v4153_v51 = vmul.f32 1.442695, %v4143_v13 }
 0x951   : > { %3754 = vadd.xlane.f32.xlu1 %v3753_v20  ;;  %v4119_v44 = vpop.xlane.xlu0 %4118  ;;  %v7614_v20 = vld [vmem:[%s12555_s8 + $0x50] sm:$0xff] }
 0x952   : > { %9595 = vpow2.f32 %v4151_v39  ;;  %v4141_v5 = vsub.f32 %v10872_v6, %v4119_v44  ;;  %v10980_v6 = vpop.eup %9591  ;;  %v7641_v44 = vld [vmem:[%s12555_s8 + $0xa8] sm:$0xff] }
 0x953   : > { %9597 = vpow2.f32 %v3722_v35  ;;  %v3744_v50 = vsel %vm2836_vm4, %v10980_v6, 0.0  ;;  %v7617_v35 = vld [vmem:[%s12555_s8 + $0x68] sm:$0xff] }
 0x954   : > { %v4149_v42 = vmul.f32 1.442695, %v4141_v5 }
 0x955   : > { %3751 = vadd.xlane.f32.xlu1 %v3750_v28  ;;  %v10985_v27 = vpop.eup %9593  ;;  %v7665_v28 = vld [vmem:[%s12555_s8 + $0xe8] sm:$0xff] }
 0x956   : > { %9599 = vpow2.f32 %v4149_v42  ;;  %v3741_v4 = vsel %vm2836_vm4, %v10985_v27, 0.0  ;;  %v7713_v42 = vld [vmem:[%s12555_s8 + $0x168] sm:$0xff] }
 0x957   : > { %9601 = vpow2.f32 %v4155_v14  ;;  %v7689_v14 = vld [vmem:[%s12555_s8 + $0x128] sm:$0xff] }
 0x958   : > { %9603 = vpow2.f32 %v4153_v51  ;;  %v7737_v51 = vld [vmem:[%s12555_s8 + $0x1a8] sm:$0xff] }
 0x959   : > { %3748 = vadd.xlane.f32.xlu1 %v3747_v55  ;;  %9605 = vpow2.f32 %v4159_v7  ;;  %v11032_v39 = vpop.permute.xlu0 %1209 }
 0x95a   : > { %9607 = vpow2.f32 %v4157_v45  ;;  %v893_v45 = vld [vmem:[%s12554_s7 + $0x10] sm:$0xff] }
 0x95b   : > { %9609 = vpow2.f32 %v4163_v53  ;;  %v896_v53 = vld [vmem:[%s12554_s7 + $0x28] sm:$0xff] }
 0x95d   : > { %3745 = vadd.xlane.f32.xlu1 %v3744_v50  ;;  %v11037_v5 = vpop.permute.xlu0 %1552 }
 0x95f   : > { %v10987_v60 = vpop.eup %9595 }
 0x960   : > { %v4168_v54 = vsel %vm2836_vm4, %v10987_v60, 0.0  ;;  %v10995_v47 = vpop.eup %9597 }
 0x961   : > { %3742 = vadd.xlane.f32.xlu1 %v3741_v4  ;;  %4169 = vadd.xlane.f32.xlu0 %v4168_v54  ;;  %v3738_v36 = vsel %vm2836_vm4, %v10995_v47, 0.0  ;;  %v11045_v13 = vpop.permute.xlu0 %1731  ;;  %v7782_v54 = vld [vmem:[%s12555_s8 + $0x210] sm:$0xff] }
 0x963   : > { %v10997_v61 = vpop.eup %9599 }
 0x964   : > { %v4165_v52 = vsel %vm2836_vm4, %v10997_v61, 0.0  ;;  %v11003_v22 = vpop.eup %9601 }
 0x965   : > { %3739 = vadd.xlane.f32.xlu1 %v3738_v36  ;;  %4166 = vadd.xlane.f32.xlu0 %v4165_v52  ;;  %v4174_v41 = vsel %vm2836_vm4, %v11003_v22, 0.0  ;;  %v11007_v46 = vpop.eup %9603  ;;  %v11050_v31 = vpop.permute.xlu0 %1910 }
 0x966   : > { %v4171_v40 = vsel %vm2836_vm4, %v11007_v46, 0.0  ;;  %v11011_v23 = vpop.eup %9605 }
 0x967   : > { %v4180_v48 = vsel %vm2836_vm4, %v11011_v23, 0.0  ;;  %v11015_v18 = vpop.eup %9607 }
 0x968   : > { %v4177_v1 = vsel %vm2836_vm4, %v11015_v18, 0.0  ;;  %v11022_v24 = vpop.eup %9609 }
 0x969   : > { %4175 = vadd.xlane.f32.xlu0 %v4174_v41  ;;  %v4186_v11 = vsel %vm2836_vm4, %v11022_v24, 0.0 }
 0x96d   : > { %4172 = vadd.xlane.f32.xlu0 %v4171_v40 }
 0x971   : > { %4181 = vadd.xlane.f32.xlu0 %v4180_v48 }
 0x975   : > { %4178 = vadd.xlane.f32.xlu0 %v4177_v1 }
 0x976   : > { %1194 = vperm.xlu1 %9504, %v1038_v58  }
 0x979   : > { %4187 = vadd.xlane.f32.xlu0 %v4186_v11 }
 0x97a   : > { %1373 = vperm.xlu1 %9504, %v7614_v20  }
 0x97e   : > { %1388 = vperm.xlu1 %9504, %v7617_v35  }
 0x982   : > { %1567 = vperm.xlu1 %9504, %v7641_v44  }
 0x986   : > { %1746 = vperm.xlu1 %9504, %v7665_v28  }
 0x98a   : > { %1925 = vperm.xlu1 %9504, %v7689_v14  }
 0x98e   : > { %2104 = vperm.xlu1 %9504, %v7713_v42  }
 0x992   : > { %2283 = vperm.xlu1 %9504, %v7737_v51   ;;  %v4137_v55 = vpop.xlane.xlu0 %4136 }
 0x993   : > { %v4147_v7 = vsub.f32 %v10934_v17, %v4137_v55 }
 0x995   : > { %v4161_v50 = vmul.f32 1.442695, %v4147_v7 }
 0x996   : > { %2462 = vperm.xlu1 %9504, %v7761_v9  }
 0x997   : > { %9611 = vpow2.f32 %v4161_v50 }
 0x99a   : > { %2641 = vperm.xlu1 %9504, %v7785_v59   ;;  %v11075_v41 = vpop.permute.xlu0 %2089 }
 0x99e   : > { %911 = vperm.xlu1 %9504, %v893_v45   ;;  %v2269_v1 = vpop.permute.xlu0 %2268 }
 0x9a2   : > { %v11085_v28 = vpop.permute.xlu0 %2447 }
 0x9a4   : > { %v11065_v4 = vpop.eup %9611 }
 0x9a5   : > { %v4183_v17 = vsel %vm2836_vm4, %v11065_v4, 0.0 }
 0x9a6   : > { %4184 = vadd.xlane.f32.xlu0 %v4183_v17 }
 0x9bc   : > { %2626 = vperm.xlu0 %9503, %v7782_v54  }
 0x9c0   : > { %926 = vperm.xlu0 %9503, %v896_v53  }
 0x9d2   : > { %v3761_v36 = vpop.xlane.xlu1 %3760 }
 0x9d3   : > { %9613 = vrcp.f32 %v3761_v36 }
 0x9d6   : > { %v3758_v52 = vpop.xlane.xlu1 %3757 }
 0x9d7   : > { %9615 = vrcp.f32 %v3758_v52 }
 0x9da   : > { %v3755_v40 = vpop.xlane.xlu1 %3754 }
 0x9db   : > { %9617 = vrcp.f32 %v3755_v40 }
 0x9de   : > { %v3752_v48 = vpop.xlane.xlu1 %3751 }
 0x9df   : > { %9619 = vrcp.f32 %v3752_v48  ;;  %v1582_v48 = vmul.f32 %v11037_v5, %v10447_v0 }
 0x9e0   : > { %v9614_v58 = vpop.eup %9613 }
 0x9e1   : > { %v11078_v20 = vmul.f32 %v9614_v58, %v10953_v2 }
 0x9e2   : > { %v3749_v11 = vpop.xlane.xlu1 %3748 }
 0x9e3   : > { %9621 = vrcp.f32 %v3749_v11  ;;  %8989 = vmatpush3.msra.mxu1 %v11078_v20 }
 0x9e4   : > { %v9616_v35 = vpop.eup %9615  ;;  %8990 = vmatprep.subr.mxu1 %v12606_v62 }
 0x9e5   : > { %v11083_v44 = vmul.f32 %v9616_v35, %v10958_v15 }
 0x9e6   : > { %v3746_v14 = vpop.xlane.xlu1 %3745 }
 0x9e7   : > { %9623 = vrcp.f32 %v3746_v14  ;;  %8991 = vmatpush3.msra.mxu1 %v11083_v44  ;;  %v1761_v14 = vmul.f32 %v11045_v13, %v10487_v26  ;;  %v2298_v26 = vmul.f32 %v2269_v1, %v10503_v38 }
 0x9e8   : > { %v9618_v42 = vpop.eup %9617  ;;  %8992 = vmatprep.subr.mxu1 %v12606_v62 }
 0x9e9   : > { %v11090_v2 = vmul.f32 %v9618_v42, %v10960_v29  ;;  %v1940_v42 = vmul.f32 %v11050_v31, %v10475_v19 }
 0x9ea   : > { %v3743_v51 = vpop.xlane.xlu1 %3742  ;;  %v11092_v55 = vpop.xlane.xlu0 %4169 }
 0x9eb   : > { %9625 = vrcp.f32 %v3743_v51  ;;  %8993 = vmatpush3.msra.mxu1 %v11090_v2 }
 0x9ec   : > { %v9620_v15 = vpop.eup %9619  ;;  %8994 = vmatprep.subr.mxu1 %v12606_v62 }
 0x9ed   : > { %v11097_v7 = vmul.f32 %v9620_v15, %v10968_v12  ;;  %v2119_v15 = vmul.f32 %v11075_v41, %v10515_v25 }
 0x9ee   : > { %v3740_v9 = vpop.xlane.xlu1 %3739  ;;  %v11099_v50 = vpop.xlane.xlu0 %4166 }
 0x9ef   : > { %9627 = vrcp.f32 %v3740_v9  ;;  %8995 = vmatpush3.msra.mxu1 %v11097_v7 }
 0x9f0   : > { %v9622_v29 = vpop.eup %9621  ;;  %8996 = vmatprep.subr.mxu1 %v12606_v62 }
 0x9f1   : > { %v11104_v59 = vmul.f32 %v9622_v29, %v10975_v63 }
 0x9f2   : > { %v1195_v45 = vpop.permute.xlu1 %1194  ;;  %v11106_v17 = vpop.xlane.xlu0 %4175 }
 0x9f3   : > { %8997 = vmatpush3.msra.mxu1 %v11104_v59  ;;  %v1224_v52 = vmul.f32 %v1195_v45, %v10413_v37 }
 0x9f4   : > { %v9624_v54 = vpop.eup %9623  ;;  %8998 = vmatprep.subr.mxu1 %v12606_v62 }
 0x9f5   : > { %v11111_v12 = vmul.f32 %v9624_v54, %v10980_v6  ;;  %v1227_v54 = vmul.f32 %v10417_v49, %v11032_v39 }
 0x9f6   : > { %v1374_v53 = vpop.permute.xlu1 %1373  ;;  %v11113_v36 = vpop.xlane.xlu0 %4172 }
 0x9f7   : > { %v1403_v40 = vmul.f32 %v1374_v53, %v10459_v8  ;;  %8999 = vmatpush3.msra.mxu1 %v11111_v12 }
 0x9f8   : > { %v9626_v63 = vpop.eup %9625  ;;  %9000 = vmatprep.subr.mxu1 %v12606_v62 }
 0x9f9   : > { %v1411_v58 = vadd.f32 %v1403_v40, %v1224_v52  ;;  %v11122_v11 = vmul.f32 %v9626_v63, %v10985_v27 }
 0x9fa   : > { %v1389_v6 = vpop.permute.xlu1 %1388  ;;  %v4182_v35 = vpop.xlane.xlu0 %4181 }
 0x9fb   : > { %v1590_v37 = vadd.f32 %v1582_v48, %v1411_v58  ;;  %9001 = vmatpush3.msra.mxu1 %v11122_v11 }
 0x9fc   : > { %v9628_v8 = vpop.eup %9627  ;;  %9002 = vmatprep.subr.mxu1 %v12606_v62 }
 0x9fd   : > { %v1769_v51 = vadd.f32 %v1761_v14, %v1590_v37  ;;  %v11131_v0 = vmul.f32 %v9628_v8, %v10995_v47  ;;  %v1406_v47 = vmul.f32 %v10463_v10, %v1389_v6 }
 0x9fe   : > { %v1568_v27 = vpop.permute.xlu1 %1567  ;;  %v4179_v5 = vpop.xlane.xlu0 %4178 }
 0x9ff   : > { %v1948_v9 = vadd.f32 %v1940_v42, %v1769_v51  ;;  %9003 = vmatpush3.msra.mxu1 %v11131_v0  ;;  %v1585_v25 = vmul.f32 %v10451_v3, %v1568_v27  ;;  %v1414_v53 = vadd.f32 %v1406_v47, %v1227_v54 }
 0xa00   : > { %9007 = vmatprep.subr.mxu1 %v12606_v62 }
 0xa01   : > { %v2127_v13 = vadd.f32 %v2119_v15, %v1948_v9  ;;  %v1593_v40 = vadd.f32 %v1585_v25, %v1414_v53 }
 0xa02   : > { %v1747_v29 = vpop.permute.xlu1 %1746  ;;  %v4188_v45 = vpop.xlane.xlu0 %4187 }
 0xa03   : > { %9629 = vrcp.f32 %v4188_v45  ;;  %v2306_v19 = vadd.f32 %v2298_v26, %v2127_v13  ;;  %v1764_v52 = vmul.f32 %v10491_v30, %v1747_v29 }
 0xa04   : > { %9631 = vrcp.f32 %v4182_v35 }
 0xa05   : > { %v1772_v63 = vadd.f32 %v1764_v52, %v1593_v40 }
 0xa06   : > { %v1926_v31 = vpop.permute.xlu1 %1925 }
 0xa07   : > { %v1943_v38 = vmul.f32 %v10479_v21, %v1926_v31 }
 0xa09   : > { %v1951_v14 = vadd.f32 %v1943_v38, %v1772_v63 }
 0xa0a   : > { %v2105_v41 = vpop.permute.xlu1 %2104 }
 0xa0b   : > { %v2122_v48 = vmul.f32 %v10520_v57, %v2105_v41 }
 0xa0d   : > { %v2130_v3 = vadd.f32 %v2122_v48, %v1951_v14 }
 0xa0e   : > { %v2284_v1 = vpop.permute.xlu1 %2283 }
 0xa0f   : > { %v2301_v10 = vmul.f32 %v10507_v43, %v2284_v1 }
 0xa10   : > { %v9630_v58 = vpop.eup %9629 }
 0xa11   : > { %v11147_v6 = vmul.f32 %v9630_v58, %v11022_v24  ;;  %v2309_v21 = vadd.f32 %v2301_v10, %v2130_v3 }
 0xa12   : > { %v2463_v49 = vpop.permute.xlu1 %2462 }
 0xa13   : > { %v2480_v39 = vmul.f32 %v10551_v34, %v2463_v49  ;;  %9041 = vmatpush3.msra.mxu0 %v11147_v6 }
 0xa14   : > { %9042 = vmatprep.subr.mxu0 %v12606_v62 }
 0xa15   : > { %v2488_v37 = vadd.f32 %v2480_v39, %v2309_v21 }
 0xa16   : > { %v2642_v30 = vpop.permute.xlu1 %2641 }
 0xa17   : > { %v2659_v57 = vmul.f32 %v10656_v16, %v2642_v30  ;;  %v12607_v16 = vld [vmem:[#allocation31_spill] sm:$0xff] }
 0xa18   : > { %v2477_v24 = vmul.f32 %v11085_v28, %v12607_v16 }
 0xa19   : > { %v11153_v8 = vadd.f32 %v2659_v57, %v2488_v37 }
 0xa1a   : > { %v912_v34 = vpop.permute.xlu1 %911 }
 0xa1b   : > { %9005 = vmatmul.mubr.msk.f32.vlgmr.msra.gmra.mxu1 %vm1052_vm1, %v11153_v8  ;;  %v4205_v26 = vrot.slane %v11153_v8, 4 }
 0xa1c   : > { %9008 = vmatpush3.xpose.msk.msra.mxu1 %vm2836_vm4, %v11078_v20  ;;  %9023 = vmatprep.mubr.msk.f32.mxu1 %vm9791_vm5, %v12606_v62  ;;  %v12608_v20 = vld [vmem:[#allocation5_spill] sm:$0xff] }
 0xa1d   : > { %9009 = vmatprep.subr.mxu1 %v12606_v62 }
 0xa20   : > { %9010 = vmatpush3.xpose.msk.msra.mxu1 %vm2836_vm4, %v11083_v44  ;;  %v11185_v44 = vadd.f32 %v12608_v20, %v912_v34 }
 0xa21   : > { %9011 = vmatprep.subr.mxu1 %v12606_v62 }
 0xa24   : > { %9012 = vmatpush3.xpose.msk.msra.mxu1 %vm2836_vm4, %v11090_v2 }
 0xa25   : > { %9013 = vmatprep.subr.mxu1 %v12606_v62 }
 0xa28   : > { %9014 = vmatpush3.xpose.msk.msra.mxu1 %vm2836_vm4, %v11097_v7  ;;  %v2485_v7 = vadd.f32 %v2477_v24, %v2306_v19 }
 0xa29   : > { %9015 = vmatprep.subr.mxu1 %v12606_v62 }
 0xa2c   : > { %9016 = vmatpush3.xpose.msk.msra.mxu1 %vm2836_vm4, %v11104_v59 }
 0xa2d   : > { %9017 = vmatprep.subr.mxu1 %v12606_v62 }
 0xa2f   : > { %v4185_v43 = vpop.xlane.xlu0 %4184 }
 0xa30   : > { %9018 = vmatpush3.xpose.msk.msra.mxu1 %vm2836_vm4, %v11111_v12  ;;  %9633 = vrcp.f32 %v4185_v43  ;;  %v9632_v12 = vpop.eup %9631 }
 0xa31   : > { %9019 = vmatprep.subr.mxu1 %v12606_v62  ;;  %9635 = vrcp.f32 %v4179_v5 }
 0xa32   : > { %9637 = vrcp.f32 %v11106_v17 }
 0xa33   : > { %9639 = vrcp.f32 %v11113_v36 }
 0xa34   : > { %9020 = vmatpush3.xpose.msk.msra.mxu1 %vm2836_vm4, %v11122_v11  ;;  %9641 = vrcp.f32 %v11092_v55  ;;  %v12609_v11 = vld [vmem:[#allocation12_spill] sm:$0xff] }
 0xa35   : > { %9021 = vmatprep.subr.mxu1 %v12606_v62  ;;  %9643 = vrcp.f32 %v11099_v50 }
 0xa37   : > { %v2627_v2 = vpop.permute.xlu0 %2626 }
 0xa38   : > { %9022 = vmatpush3.xpose.msk.msra.mxu1 %vm2836_vm4, %v11131_v0  ;;  %v2656_v59 = vmul.f32 %v2627_v2, %v10646_v33  ;;  %v4202_v33 = vmul.f32 %v9632_v12, %v11011_v23 }
 0xa39   : > { %9078 = vmatprep.subr.msk.mxu1 %vm2727_vm2, %v11185_v44 }
 0xa3a   : > { %v2664_v28 = vadd.f32 %v2656_v59, %v2485_v7 }
 0xa3b   : > { %v927_v17 = vpop.permute.xlu0 %926 }
 0xa3c   : > { %v4802_v36 = vrot.slane %v2664_v28, 4  ;;  %v1025_v35 = vadd.f32 %v12609_v11, %v927_v17  ;;  %4377 = vxpose.xlu0.b32.start.end [1/1] (short) (narrow) %v2664_v28, 64 }
 0xa3d   : > { %v9634_v42 = vpop.eup %9633 }
 0xa3e   : > { %4804 = vxpose.xlu1.b32.start.end [1/1] (short) (narrow) %v4802_v36, 64  ;;  %9024 = vmatmul.mubr.msk.f32.vlgmr.msra.gmra.mxu1 %vm2836_vm4, %v1025_v35  ;;  %v4203_v55 = vmul.f32 %v9634_v42, %v11065_v4  ;;  %v9636_v51 = vpop.eup %9635 }
 0xa3f   : > { %9079 = vmatpush3.msk.msra.mxu1 %vm2727_vm2, %v11185_v44  ;;  %v9638_v50 = vpop.eup %9637  ;;  %v4201_v0 = vmul.f32 %v9636_v51, %v11015_v18 }
 0xa40   : > { %9043 = vmatpush3.msra.mxu0 %v4203_v55  ;;  %9092 = vmatprep.subr.mxu1 %v12606_v62  ;;  %v9640_v27 = vpop.eup %9639  ;;  %v4200_v4 = vmul.f32 %v9638_v50, %v11003_v22 }
 0xa41   : > { %9044 = vmatprep.subr.mxu0 %v12606_v62  ;;  %v9642_v5 = vpop.eup %9641  ;;  %v4199_v23 = vmul.f32 %v9640_v27, %v11007_v46 }
 0xa42   : > { %9045 = vmatpush3.msra.mxu0 %v4202_v33  ;;  %v9644_v15 = vpop.eup %9643  ;;  %v4198_v9 = vmul.f32 %v9642_v5, %v10987_v60  ;;  %v4836_v60 = vrot.slane %v11185_v44, 4 }
 0xa43   : > { %9046 = vmatprep.subr.mxu0 %v12606_v62  ;;  %v4197_v18 = vmul.f32 %v9644_v15, %v10997_v61  ;;  %v4279_v61 = vrot.slane %v1025_v35, 4  ;;  %v7639_v15 = vld [vmem:[%s12555_s8 + $0x98] sm:$0xff] }
 0xa44   : > { %9047 = vmatpush3.msra.mxu0 %v4201_v0 }
 0xa45   : > { %9048 = vmatprep.subr.mxu0 %v12606_v62 }
 0xa46   : > { %9049 = vmatpush3.msra.mxu0 %v4200_v4 }
 0xa47   : > { %9050 = vmatprep.subr.mxu0 %v12606_v62 }
 0xa48   : > { %9051 = vmatpush3.msra.mxu0 %v4199_v23 }
 0xa49   : > { %9052 = vmatprep.subr.mxu0 %v12606_v62 }
 0xa4a   : > { %9053 = vmatpush3.msra.mxu0 %v4198_v9 }
 0xa4b   : > { %9054 = vmatprep.subr.mxu0 %v12606_v62 }
 0xa4c   : > { %9055 = vmatpush3.msra.mxu0 %v4197_v18 }
 0xa4d   : > { %9057 = vmatmul.mubr.msk.f32.vlgmr.msra.gmra.mxu0 %vm1052_vm1, %v4205_v26  ;;  %9059 = vmatprep.subr.mxu0 %v12606_v62 }
 0xa4e   : > { %9060 = vmatpush3.xpose.msk.msra.mxu0 %vm2836_vm4, %v11147_v6  ;;  %9075 = vmatprep.mubr.msk.f32.mxu0 %vm9791_vm5, %v12606_v62 }
 0xa4f   : > { %9061 = vmatprep.subr.mxu0 %v12606_v62 }
 0xa52   : > { %9062 = vmatpush3.xpose.msk.msra.mxu0 %vm2836_vm4, %v4203_v55 }
 0xa53   : > { %9063 = vmatprep.subr.mxu0 %v12606_v62 }
 0xa56   : > { %9064 = vmatpush3.xpose.msk.msra.mxu0 %vm2836_vm4, %v4202_v33 }
 0xa57   : > { %9065 = vmatprep.subr.mxu0 %v12606_v62 }
 0xa5a   : > { %9066 = vmatpush3.xpose.msk.msra.mxu0 %vm2836_vm4, %v4201_v0 }
 0xa5b   : > { %9067 = vmatprep.subr.mxu0 %v12606_v62 }
 0xa5e   : > { %9068 = vmatpush3.xpose.msk.msra.mxu0 %vm2836_vm4, %v4200_v4 }
 0xa5f   : > { %9069 = vmatprep.subr.mxu0 %v12606_v62 }
 0xa62   : > { %9070 = vmatpush3.xpose.msk.msra.mxu0 %vm2836_vm4, %v4199_v23  ;;  %v1042_v23 = vld [vmem:[%s12555_s8 + $0x30] sm:$0xff] }
 0xa63   : > { %9071 = vmatprep.subr.mxu0 %v12606_v62 }
 0xa66   : > { %9072 = vmatpush3.xpose.msk.msra.mxu0 %vm2836_vm4, %v4198_v9  ;;  %v7663_v9 = vld [vmem:[%s12555_s8 + $0xd8] sm:$0xff] }
 0xa67   : > { %9073 = vmatprep.subr.mxu0 %v12606_v62 }
 0xa6a   : > { %9074 = vmatpush3.xpose.msk.msra.mxu0 %vm2836_vm4, %v4197_v18  ;;  %v7687_v18 = vld [vmem:[%s12555_s8 + $0x118] sm:$0xff] }
 0xa6b   : > { %9130 = vmatprep.subr.msk.mxu0 %vm2727_vm2, %v4836_v60 }
 0xa6d   : > { %9076 = vmatmul.mubr.msk.f32.vlgmr.msra.gmra.mxu0 %vm2836_vm4, %v4279_v61  ;;  %v7711_v61 = vld [vmem:[%s12555_s8 + $0x158] sm:$0xff] }
 0xa6e   : > { %9131 = vmatpush3.msk.msra.mxu0 %vm2727_vm2, %v4836_v60 }
 0xa6f   : > { %9144 = vmatprep.subr.mxu0 %v12606_v62 }
 0xab8   : > { %v4393_v22 = vpop.trf.xlu0 }
 0xab9   : > { %9080 = vmatprep.mubr.msk.f32.mxu1 %vm2702_vm3, %v4393_v22  ;;  %v7735_v22 = vld [vmem:[%s12555_s8 + $0x198] sm:$0xff] }
 0xaba   : > { %v4820_v46 = vpop.trf.xlu1 }
 0xabb   : > { %9132 = vmatprep.mubr.msk.f32.mxu0 %vm2702_vm3, %v4820_v46  ;;  %v7759_v46 = vld [vmem:[%s12555_s8 + $0x1d8] sm:$0xff] }
 0xabc   : > { %v4394_v13 = vpop.trf.xlu0 }
 0xabd   : > { %9081 = vmatmul.mubr.msk.f32.vlgmr.msra.gmra.mxu1 %vm2702_vm3, %v4394_v13 }
 0xabe   : > { %v4821_v29 = vpop.trf.xlu1 }
 0xabf   : > { %9133 = vmatmul.mubr.msk.f32.vlgmr.msra.gmra.mxu0 %vm2702_vm3, %v4821_v29 }
 0xac0   : > { %v4395_v45 = vpop.trf.xlu0 }
 0xac1   : > { %9083 = vmatprep.mubr.msk.f32.mxu1 %vm2702_vm3, %v4395_v45 }
 0xac2   : > { %v4822_v19 = vpop.trf.xlu1 }
 0xac3   : > { %9135 = vmatprep.mubr.msk.f32.mxu0 %vm2702_vm3, %v4822_v19 }
 0xac4   : > { %v4396_v31 = vpop.trf.xlu0 }
 0xac5   : > { %9084 = vmatmul.mubr.msk.f32.gmra.mxu1 %vm2702_vm3, %v4396_v31 }
 0xac6   : > { %v4823_v47 = vpop.trf.xlu1 }
 0xac7   : > { %9136 = vmatmul.mubr.msk.f32.gmra.mxu0 %vm2702_vm3, %v4823_v47 }
 0xac8   : > { %v4397_v54 = vpop.trf.xlu0 }
 0xac9   : > { %9086 = vmatprep.mubr.msk.f32.mxu1 %vm2702_vm3, %v4397_v54 }
 0xaca   : > { %v4824_v25 = vpop.trf.xlu1 }
 0xacb   : > { %9138 = vmatprep.mubr.msk.f32.mxu0 %vm2702_vm3, %v4824_v25 }
 0xacc   : > { %v4398_v41 = vpop.trf.xlu0 }
 0xacd   : > { %9087 = vmatmul.mubr.msk.f32.gmra.mxu1 %vm2702_vm3, %v4398_v41 }
 0xace   : > { %v4825_v53 = vpop.trf.xlu1 }
 0xacf   : > { %9139 = vmatmul.mubr.msk.f32.gmra.mxu0 %vm2702_vm3, %v4825_v53 }
 0xad0   : > { %v4399_v52 = vpop.trf.xlu0 }
 0xad1   : > { %9089 = vmatprep.mubr.msk.f32.mxu1 %vm2702_vm3, %v4399_v52 }
 0xad2   : > { %v4826_v40 = vpop.trf.xlu1 }
 0xad3   : > { %9141 = vmatprep.mubr.msk.f32.mxu0 %vm2702_vm3, %v4826_v40 }
 0xad4   : > { %v4400_v38 = vpop.trf.xlu0 }
 0xad5   : > { %9090 = vmatmul.mubr.msk.f32.gmra.mxu1 %vm2702_vm3, %v4400_v38 }
 0xad6   : > { %v4827_v1 = vpop.trf.xlu1  ;;  %9108 = vmatprep.mubr.msk.f32.mxu1 %vm9791_vm5, %v12606_v62 }
 0xad7   : > { %9142 = vmatmul.mubr.msk.f32.gmra.mxu0 %vm2702_vm3, %v4827_v1 }
 0xad8   : > { %9160 = vmatprep.mubr.msk.f32.mxu0 %vm9791_vm5, %v12606_v62 }
 0xadb   : > { %v3847_v63 = vpop.f32.mrf.mxu1 }
 0xadc   : > { %3851 = vst.msk [vmem:[#allocation3 + $0x8] sm:$0xf] %vm2998_vm6, %v3847_v63 }
 0xadd   : > { %v9006_v48 = vpop.f32.mrf.mxu1 }
 0xafe   : > { %v3945_v58 = vpop.f32.mrf.mxu1 }
 0xaff   : > { %3949 = vst.msk [vmem:[#allocation2 + $0x8] sm:$0xf] %vm3097_vm7, %v3945_v58 }
 0xb00   : > { %v9025_v14 = vpop.f32.mrf.mxu1 }
 0xb0d   : > { %v4274_v10 = vpop.f32.mrf.mxu0 }
 0xb0e   : > { %4278 = vst.msk [vmem:[#allocation3 + $0xc] sm:$0xf] %vm2998_vm6, %v4274_v10 }
 0xb0f   : > { %v9058_v6 = vpop.f32.mrf.mxu0 }
 0xb2d   : > { %v4372_v49 = vpop.f32.mrf.mxu0 }
 0xb2e   : > { %4376 = vst.msk [vmem:[#allocation2 + $0xc] sm:$0xf] %vm3097_vm7, %v4372_v49 }
 0xb2f   : > { %v9077_v3 = vpop.f32.mrf.mxu0 }
 0xb7d   : > { %v11264_v21 = vpop.f32.mrf.mxu1 }
 0xb7e   : > { %v4544_v33 = vsel %vm2836_vm4, %v11264_v21, -inf }
 0xb7f   : > { %v11262_v39 = vpop.f32.mrf.mxu0  ;;  %v11268_v37 = vpop.f32.mrf.mxu1 }
 0xb80   : > { %v4541_v0 = vsel %vm2836_vm4, %v11268_v37, -inf  ;;  %v4971_v4 = vsel %vm2836_vm4, %v11262_v39, -inf }
 0xb81   : > { %v11266_v30 = vpop.f32.mrf.mxu0 }
 0xb82   : > { %v4968_v5 = vsel %vm2836_vm4, %v11266_v30, -inf }
 0xb85   : > { %v11270_v57 = vpop.f32.mrf.mxu1 }
 0xb86   : > { %v4550_v35 = vsel %vm2836_vm4, %v11270_v57, -inf }
 0xb87   : > { %v11272_v8 = vpop.f32.mrf.mxu0  ;;  %v11274_v43 = vpop.f32.mrf.mxu1 }
 0xb88   : > { %v4547_v55 = vsel %vm2836_vm4, %v11274_v43, -inf  ;;  %v4977_v50 = vsel %vm2836_vm4, %v11272_v8, -inf }
 0xb89   : > { %v11276_v34 = vpop.f32.mrf.mxu0 }
 0xb8a   : > { %v4974_v27 = vsel %vm2836_vm4, %v11276_v34, -inf }
 0xb8d   : > { %v11278_v16 = vpop.f32.mrf.mxu1 }
 0xb8e   : > { %v4556_v24 = vsel %vm2836_vm4, %v11278_v16, -inf }
 0xb8f   : > { %4557 = vmax.xlane.f32.xlu1 %v4556_v24  ;;  %v11282_v20 = vpop.f32.mrf.mxu1  ;;  %v11284_v44 = vpop.f32.mrf.mxu0 }
 0xb90   : > { %v4553_v2 = vsel %vm2836_vm4, %v11282_v20, -inf  ;;  %v4983_v42 = vsel %vm2836_vm4, %v11284_v44, -inf }
 0xb91   : > { %v11288_v7 = vpop.f32.mrf.mxu0 }
 0xb92   : > { %v4980_v51 = vsel %vm2836_vm4, %v11288_v7, -inf }
 0xb93   : > { %4554 = vmax.xlane.f32.xlu1 %v4553_v2 }
 0xb95   : > { %v9091_v59 = vpop.f32.mrf.mxu1 }
 0xb96   : > { %v4562_v28 = vsel %vm2836_vm4, %v9091_v59, -inf }
 0xb97   : > { %v11291_v17 = vpop.f32.mrf.mxu0  ;;  %4563 = vmax.xlane.f32.xlu0 %v4562_v28  ;;  %v4532_v12 = vpop.f32.mrf.mxu1 }
 0xb98   : > { %v4989_v36 = vsel %vm2836_vm4, %v11291_v17, -inf  ;;  %v4559_v11 = vsel %vm2836_vm4, %v4532_v12, -inf }
 0xb99   : > { %4990 = vmax.xlane.f32.xlu1 %v4989_v36  ;;  %v11328_v26 = vpop.f32.mrf.mxu0 }
 0xb9a   : > { %v4986_v60 = vsel %vm2836_vm4, %v11328_v26, -inf }
 0xb9b   : > { %4560 = vmax.xlane.f32.xlu0 %v4559_v11 }
 0xb9d   : > { %4551 = vmax.xlane.f32.xlu1 %v4550_v35 }
 0xb9f   : > { %4984 = vmax.xlane.f32.xlu0 %v4983_v42 }
 0xba1   : > { %4548 = vmax.xlane.f32.xlu1 %v4547_v55 }
 0xba3   : > { %4981 = vmax.xlane.f32.xlu0 %v4980_v51 }
 0xba5   : > { %4545 = vmax.xlane.f32.xlu1 %v4544_v33 }
 0xba7   : > { %4978 = vmax.xlane.f32.xlu0 %v4977_v50 }
 0xba9   : > { %4542 = vmax.xlane.f32.xlu1 %v4541_v0 }
 0xbab   : > { %4975 = vmax.xlane.f32.xlu0 %v4974_v27 }
 0xbaf   : > { %4972 = vmax.xlane.f32.xlu0 %v4971_v4 }
 0xbb3   : > { %4969 = vmax.xlane.f32.xlu0 %v4968_v5 }
 0xbc9   : > { %1214 = vperm.xlu0 %9503, %v1042_v23  }
 0xbcd   : > { %1557 = vperm.xlu0 %9503, %v7639_v15  }
 0xbd1   : > { %1736 = vperm.xlu0 %9503, %v7663_v9  }
 0xbd5   : > { %1915 = vperm.xlu0 %9503, %v7687_v18  }
 0xbf4   : > { %4987 = vmax.xlane.f32.xlu0 %v4986_v60 }
 0xc0a   : > { %2094 = vperm.xlu0 %9503, %v7711_v61  }
 0xc0e   : > { %2273 = vperm.xlu0 %9503, %v7735_v22  }
 0xc12   : > { %2452 = vperm.xlu0 %9503, %v7759_v46  }
 0xc18   : > { %v4558_v13 = vpop.xlane.xlu1 %4557 }
 0xc19   : > { %v4570_v31 = vsub.f32 %v11278_v16, %v4558_v13 }
 0xc1b   : > { %v4583_v53 = vmul.f32 1.442695, %v4570_v31 }
 0xc1c   : > { %v4555_v29 = vpop.xlane.xlu1 %4554 }
 0xc1d   : > { %v4569_v52 = vsub.f32 %v11282_v20, %v4555_v29 }
 0xc1f   : > { %v4581_v63 = vmul.f32 1.442695, %v4569_v52 }
 0xc20   : > { %v4564_v45 = vpop.xlane.xlu0 %4563 }
 0xc21   : > { %v4572_v19 = vsub.f32 %v9091_v59, %v4564_v45 }
 0xc22   : > { %v11342_v47 = vpop.xlane.xlu1 %4990 }
 0xc23   : > { %v4587_v54 = vmul.f32 1.442695, %v4572_v19 }
 0xc24   : > { %v4561_v25 = vpop.xlane.xlu0 %4560 }
 0xc25   : > { %9645 = vpow2.f32 %v4587_v54  ;;  %v4571_v41 = vsub.f32 %v4532_v12, %v4561_v25 }
 0xc26   : > { %v4552_v40 = vpop.xlane.xlu1 %4551 }
 0xc27   : > { %v4585_v38 = vmul.f32 1.442695, %v4571_v41  ;;  %v4568_v58 = vsub.f32 %v11270_v57, %v4552_v40 }
 0xc28   : > { %v4985_v1 = vpop.xlane.xlu0 %4984 }
 0xc29   : > { %9647 = vpow2.f32 %v4585_v38  ;;  %v4579_v6 = vmul.f32 1.442695, %v4568_v58  ;;  %v1039_v38 = vld [vmem:[%s12555_s8 + $0x18] sm:$0xff] }
 0xc2a   : > { %9649 = vpow2.f32 %v4583_v53  ;;  %v4549_v48 = vpop.xlane.xlu1 %4548 }
 0xc2b   : > { %9651 = vpow2.f32 %v4581_v63  ;;  %v4567_v49 = vsub.f32 %v11274_v43, %v4549_v48  ;;  %v7615_v48 = vld [vmem:[%s12555_s8 + $0x58] sm:$0xff] }
 0xc2c   : > { %v4982_v14 = vpop.xlane.xlu0 %4981  ;;  %9653 = vpow2.f32 %v4579_v6  ;;  %v7642_v6 = vld [vmem:[%s12555_s8 + $0xb0] sm:$0xff] }
 0xc2d   : > { %v4577_v24 = vmul.f32 1.442695, %v4567_v49  ;;  %v4996_v60 = vsub.f32 %v11288_v7, %v4982_v14  ;;  %v7618_v14 = vld [vmem:[%s12555_s8 + $0x70] sm:$0xff] }
 0xc2e   : > { %v4546_v10 = vpop.xlane.xlu1 %4545 }
 0xc2f   : > { %v4566_v20 = vsub.f32 %v11264_v21, %v4546_v10  ;;  %9655 = vpow2.f32 %v4577_v24  ;;  %v5008_v46 = vmul.f32 1.442695, %v4996_v60  ;;  %v7690_v24 = vld [vmem:[%s12555_s8 + $0x130] sm:$0xff] }
 0xc30   : > { %v4979_v3 = vpop.xlane.xlu0 %4978 }
 0xc31   : > { %v4575_v36 = vmul.f32 1.442695, %v4566_v20  ;;  %v4995_v51 = vsub.f32 %v11272_v8, %v4979_v3  ;;  %v4997_v8 = vsub.f32 %v11284_v44, %v4985_v1  ;;  %v4999_v44 = vsub.f32 %v11291_v17, %v11342_v47  ;;  %v7666_v3 = vld [vmem:[%s12555_s8 + $0xf0] sm:$0xff] }
 0xc32   : > { %v11347_v16 = vpop.eup %9645  ;;  %v4543_v59 = vpop.xlane.xlu1 %4542 }
 0xc33   : > { %v4610_v2 = vsel %vm2836_vm4, %v11347_v16, 0.0  ;;  %v4565_v43 = vsub.f32 %v11268_v37, %v4543_v59  ;;  %9657 = vpow2.f32 %v4575_v36  ;;  %v5006_v4 = vmul.f32 1.442695, %v4995_v51 }
 0xc34   : > { %4611 = vadd.xlane.f32.xlu1 %v4610_v2  ;;  %v4976_v28 = vpop.xlane.xlu0 %4975  ;;  %v5010_v18 = vmul.f32 1.442695, %v4997_v8  ;;  %v5014_v19 = vmul.f32 1.442695, %v4999_v44  ;;  %v7714_v2 = vld [vmem:[%s12555_s8 + $0x170] sm:$0xff] }
 0xc35   : > { %v4573_v33 = vmul.f32 1.442695, %v4565_v43 }
 0xc36   : > { %v11352_v57 = vpop.eup %9647 }
 0xc37   : > { %v11354_v12 = vpop.eup %9649  ;;  %v4607_v11 = vsel %vm2836_vm4, %v11352_v57, 0.0 }
 0xc38   : > { %4608 = vadd.xlane.f32.xlu1 %v4607_v11  ;;  %v4973_v35 = vpop.xlane.xlu0 %4972  ;;  %v4604_v42 = vsel %vm2836_vm4, %v11354_v12, 0.0  ;;  %v11362_v55 = vpop.eup %9651  ;;  %v7762_v11 = vld [vmem:[%s12555_s8 + $0x1f0] sm:$0xff] }
 0xc39   : > { %v4993_v21 = vsub.f32 %v11262_v39, %v4973_v35  ;;  %v4601_v27 = vsel %vm2836_vm4, %v11362_v55, 0.0  ;;  %v4994_v39 = vsub.f32 %v11276_v34, %v4976_v28  ;;  %v11369_v23 = vpop.eup %9653  ;;  %v7738_v28 = vld [vmem:[%s12555_s8 + $0x1b0] sm:$0xff] }
 0xc3a   : > { %v4598_v9 = vsel %vm2836_vm4, %v11369_v23, 0.0 }
 0xc3b   : > { %v5002_v50 = vmul.f32 1.442695, %v4993_v21  ;;  %v5004_v15 = vmul.f32 1.442695, %v4994_v39  ;;  %v7786_v21 = vld [vmem:[%s12555_s8 + $0x230] sm:$0xff] }
 0xc3c   : > { %4605 = vadd.xlane.f32.xlu1 %v4604_v42  ;;  %v4970_v0 = vpop.xlane.xlu0 %4969  ;;  %v894_v42 = vld [vmem:[%s12554_s7 + $0x18] sm:$0xff] }
 0xc3d   : > { %9659 = vpow2.f32 %v5002_v50  ;;  %v4992_v37 = vsub.f32 %v11266_v30, %v4970_v0  ;;  %v11374_v30 = vpop.eup %9655  ;;  %v897_v50 = vld [vmem:[%s12554_s7 + $0x30] sm:$0xff] }
 0xc3e   : > { %9661 = vpow2.f32 %v4573_v33  ;;  %v4595_v34 = vsel %vm2836_vm4, %v11374_v30, 0.0  ;;  %v7783_v33 = vld [vmem:[%s12555_s8 + $0x218] sm:$0xff] }
 0xc3f   : > { %v5000_v5 = vmul.f32 1.442695, %v4992_v37 }
 0xc40   : > { %4602 = vadd.xlane.f32.xlu1 %v4601_v27  ;;  %v11379_v61 = vpop.eup %9657 }
 0xc41   : > { %9663 = vpow2.f32 %v5000_v5  ;;  %v4592_v13 = vsel %vm2836_vm4, %v11379_v61, 0.0 }
 0xc42   : > { %9665 = vpow2.f32 %v5006_v4 }
 0xc43   : > { %9667 = vpow2.f32 %v5004_v15 }
 0xc44   : > { %4599 = vadd.xlane.f32.xlu1 %v4598_v9  ;;  %9669 = vpow2.f32 %v5010_v18  ;;  %v11426_v10 = vpop.permute.xlu0 %1214 }
 0xc45   : > { %9671 = vpow2.f32 %v5008_v46 }
 0xc46   : > { %9673 = vpow2.f32 %v5014_v19 }
 0xc48   : > { %4596 = vadd.xlane.f32.xlu1 %v4595_v34  ;;  %v11431_v49 = vpop.permute.xlu0 %1557 }
 0xc4a   : > { %v11381_v22 = vpop.eup %9659 }
 0xc4b   : > { %v5019_v7 = vsel %vm2836_vm4, %v11381_v22, 0.0  ;;  %v11389_v29 = vpop.eup %9661 }
 0xc4c   : > { %4593 = vadd.xlane.f32.xlu1 %v4592_v13  ;;  %5020 = vadd.xlane.f32.xlu0 %v5019_v7  ;;  %v4589_v31 = vsel %vm2836_vm4, %v11389_v29, 0.0  ;;  %v11439_v20 = vpop.permute.xlu0 %1736 }
 0xc4e   : > { %v11391_v45 = vpop.eup %9663 }
 0xc4f   : > { %v5016_v17 = vsel %vm2836_vm4, %v11391_v45, 0.0  ;;  %v11397_v47 = vpop.eup %9665 }
 0xc50   : > { %4590 = vadd.xlane.f32.xlu1 %v4589_v31  ;;  %5017 = vadd.xlane.f32.xlu0 %v5016_v17  ;;  %v5025_v54 = vsel %vm2836_vm4, %v11397_v47, 0.0  ;;  %v11401_v25 = vpop.eup %9667  ;;  %v11444_v59 = vpop.permute.xlu0 %1915 }
 0xc51   : > { %v5022_v41 = vsel %vm2836_vm4, %v11401_v25, 0.0  ;;  %v11405_v53 = vpop.eup %9669 }
 0xc52   : > { %v5031_v52 = vsel %vm2836_vm4, %v11405_v53, 0.0  ;;  %v11409_v40 = vpop.eup %9671 }
 0xc53   : > { %v5028_v1 = vsel %vm2836_vm4, %v11409_v40, 0.0  ;;  %v11416_v63 = vpop.eup %9673 }
 0xc54   : > { %5026 = vadd.xlane.f32.xlu0 %v5025_v54  ;;  %v5037_v58 = vsel %vm2836_vm4, %v11416_v63, 0.0 }
 0xc58   : > { %5023 = vadd.xlane.f32.xlu0 %v5022_v41 }
 0xc5c   : > { %5032 = vadd.xlane.f32.xlu0 %v5031_v52 }
 0xc60   : > { %5029 = vadd.xlane.f32.xlu0 %v5028_v1 }
 0xc61   : > { %1199 = vperm.xlu1 %9504, %v1039_v38  }
 0xc64   : > { %5038 = vadd.xlane.f32.xlu0 %v5037_v58 }
 0xc65   : > { %1378 = vperm.xlu1 %9504, %v7615_v48  }
 0xc69   : > { %1393 = vperm.xlu1 %9504, %v7618_v14  }
 0xc6d   : > { %1572 = vperm.xlu1 %9504, %v7642_v6  }
 0xc71   : > { %1751 = vperm.xlu1 %9504, %v7666_v3  }
 0xc75   : > { %1930 = vperm.xlu1 %9504, %v7690_v24  }
 0xc79   : > { %2109 = vperm.xlu1 %9504, %v7714_v2  }
 0xc7d   : > { %2288 = vperm.xlu1 %9504, %v7738_v28   ;;  %v4988_v36 = vpop.xlane.xlu0 %4987 }
 0xc7e   : > { %v4998_v43 = vsub.f32 %v11328_v26, %v4988_v36 }
 0xc80   : > { %v5012_v35 = vmul.f32 1.442695, %v4998_v43  ;;  %v12610_v43 = vld [vmem:[#allocation18_spill] sm:$0xff] }
 0xc81   : > { %2467 = vperm.xlu1 %9504, %v7762_v11  }
 0xc82   : > { %9675 = vpow2.f32 %v5012_v35  ;;  %v12611_v35 = vld [vmem:[#allocation8_spill] sm:$0xff] }
 0xc85   : > { %2646 = vperm.xlu1 %9504, %v7786_v21   ;;  %v11469_v27 = vpop.permute.xlu0 %2094  ;;  %v1228_v21 = vmul.f32 %v11426_v10, %v12611_v35 }
 0xc89   : > { %916 = vperm.xlu1 %9504, %v894_v42   ;;  %v11471_v8 = vpop.permute.xlu0 %2273  ;;  %v12612_v42 = vld [vmem:[#allocation15_spill] sm:$0xff] }
 0xc8d   : > { %v11481_v34 = vpop.permute.xlu0 %2452 }
 0xc8f   : > { %v11459_v51 = vpop.eup %9675 }
 0xc90   : > { %v5034_v26 = vsel %vm2836_vm4, %v11459_v51, 0.0 }
 0xc91   : > { %5035 = vadd.xlane.f32.xlu0 %v5034_v26 }
 0xca7   : > { %2631 = vperm.xlu0 %9503, %v7783_v33  }
 0xcab   : > { %931 = vperm.xlu0 %9503, %v897_v50   ;;  %v12613_v50 = vld [vmem:[#allocation24_spill] sm:$0xff] }
 0xcbd   : > { %v4612_v0 = vpop.xlane.xlu1 %4611 }
 0xcbe   : > { %9677 = vrcp.f32 %v4612_v0 }
 0xcc1   : > { %v4609_v37 = vpop.xlane.xlu1 %4608 }
 0xcc2   : > { %9679 = vrcp.f32 %v4609_v37 }
 0xcc5   : > { %v4606_v4 = vpop.xlane.xlu1 %4605 }
 0xcc6   : > { %9681 = vrcp.f32 %v4606_v4  ;;  %v12614_v4 = vld [vmem:[#allocation21_spill] sm:$0xff] }
 0xcc9   : > { %v4603_v39 = vpop.xlane.xlu1 %4602 }
 0xcca   : > { %9683 = vrcp.f32 %v4603_v39 }
 0xccb   : > { %v9678_v5 = vpop.eup %9677 }
 0xccc   : > { %v11474_v15 = vmul.f32 %v9678_v5, %v11347_v16 }
 0xccd   : > { %v4600_v9 = vpop.xlane.xlu1 %4599 }
 0xcce   : > { %9685 = vrcp.f32 %v4600_v9  ;;  %9093 = vmatpush3.msra.mxu1 %v11474_v15 }
 0xccf   : > { %v9680_v18 = vpop.eup %9679  ;;  %9094 = vmatprep.subr.mxu1 %v12606_v62 }
 0xcd0   : > { %v11479_v60 = vmul.f32 %v9680_v18, %v11352_v57  ;;  %v12615_v18 = vld [vmem:[#allocation29_spill] sm:$0xff] }
 0xcd1   : > { %v4597_v44 = vpop.xlane.xlu1 %4596 }
 0xcd2   : > { %9687 = vrcp.f32 %v4597_v44  ;;  %9095 = vmatpush3.msra.mxu1 %v11479_v60 }
 0xcd3   : > { %v9682_v46 = vpop.eup %9681  ;;  %9096 = vmatprep.subr.mxu1 %v12606_v62 }
 0xcd4   : > { %v11486_v16 = vmul.f32 %v9682_v46, %v11354_v12 }
 0xcd5   : > { %v4594_v13 = vpop.xlane.xlu1 %4593  ;;  %v11488_v7 = vpop.xlane.xlu0 %5020 }
 0xcd6   : > { %9689 = vrcp.f32 %v4594_v13  ;;  %9097 = vmatpush3.msra.mxu1 %v11486_v16 }
 0xcd7   : > { %v9684_v57 = vpop.eup %9683  ;;  %9098 = vmatprep.subr.mxu1 %v12606_v62 }
 0xcd8   : > { %v11493_v19 = vmul.f32 %v9684_v57, %v11362_v55  ;;  %v12616_v57 = vld [vmem:[#allocation27_spill] sm:$0xff] }
 0xcd9   : > { %v4591_v31 = vpop.xlane.xlu1 %4590  ;;  %v11495_v17 = vpop.xlane.xlu0 %5017 }
 0xcda   : > { %9691 = vrcp.f32 %v4591_v31  ;;  %9099 = vmatpush3.msra.mxu1 %v11493_v19 }
 0xcdb   : > { %v9686_v12 = vpop.eup %9685  ;;  %9100 = vmatprep.subr.mxu1 %v12606_v62 }
 0xcdc   : > { %v11500_v54 = vmul.f32 %v9686_v12, %v11369_v23 }
 0xcdd   : > { %v1200_v41 = vpop.permute.xlu1 %1199  ;;  %v11502_v52 = vpop.xlane.xlu0 %5026 }
 0xcde   : > { %9101 = vmatpush3.msra.mxu1 %v11500_v54 }
 0xcdf   : > { %v9688_v38 = vpop.eup %9687  ;;  %9102 = vmatprep.subr.mxu1 %v12606_v62 }
 0xce0   : > { %v11507_v55 = vmul.f32 %v9688_v38, %v11374_v30 }
 0xce1   : > { %v1379_v1 = vpop.permute.xlu1 %1378  ;;  %v11509_v48 = vpop.xlane.xlu0 %5023 }
 0xce2   : > { %9103 = vmatpush3.msra.mxu1 %v11507_v55 }
 0xce3   : > { %v9690_v58 = vpop.eup %9689  ;;  %9104 = vmatprep.subr.mxu1 %v12606_v62 }
 0xce4   : > { %v11514_v23 = vmul.f32 %v9690_v58, %v11379_v61  ;;  %v12617_v58 = vld [vmem:[#allocation33_spill] sm:$0xff] }
 0xce5   : > { %v1394_v14 = vpop.permute.xlu1 %1393  ;;  %v5033_v6 = vpop.xlane.xlu0 %5032 }
 0xce6   : > { %9105 = vmatpush3.msra.mxu1 %v11514_v23  ;;  %v1407_v11 = vmul.f32 %v1394_v14, %v12610_v43 }
 0xce7   : > { %v9692_v3 = vpop.eup %9691  ;;  %9106 = vmatprep.subr.mxu1 %v12606_v62 }
 0xce8   : > { %v11519_v30 = vmul.f32 %v9692_v3, %v11389_v29  ;;  %v1415_v29 = vadd.f32 %v1407_v11, %v1228_v21  ;;  %v12619_v11 = vld [vmem:[#allocation4_spill] sm:$0xff] }
 0xce9   : > { %v1573_v24 = vpop.permute.xlu1 %1572  ;;  %v5030_v2 = vpop.xlane.xlu0 %5029  ;;  %v1225_v35 = vmul.f32 %v12619_v11, %v1200_v41 }
 0xcea   : > { %9107 = vmatpush3.msra.mxu1 %v11519_v30  ;;  %v1586_v26 = vmul.f32 %v1573_v24, %v12612_v42 }
 0xceb   : > { %9111 = vmatprep.subr.mxu1 %v12606_v62 }
 0xcec   : > { %v1594_v37 = vadd.f32 %v1586_v26, %v1415_v29 }
 0xced   : > { %v1752_v28 = vpop.permute.xlu1 %1751  ;;  %v5039_v36 = vpop.xlane.xlu0 %5038 }
 0xcee   : > { %9693 = vrcp.f32 %v5039_v36  ;;  %v1765_v0 = vmul.f32 %v1752_v28, %v12613_v50 }
 0xcef   : > { %9695 = vrcp.f32 %v5033_v6  ;;  %v12625_v6 = vld [vmem:[#allocation30_spill] sm:$0xff] }
 0xcf0   : > { %v1773_v9 = vadd.f32 %v1765_v0, %v1594_v37  ;;  %v12626_v0 = vld [vmem:[#allocation6_spill] sm:$0xff] }
 0xcf1   : > { %v1931_v61 = vpop.permute.xlu1 %1930 }
 0xcf2   : > { %v1944_v39 = vmul.f32 %v1931_v61, %v12614_v4 }
 0xcf4   : > { %v1952_v13 = vadd.f32 %v1944_v39, %v1773_v9  ;;  %v12627_v39 = vld [vmem:[#allocation9_spill] sm:$0xff] }
 0xcf5   : > { %v2110_v33 = vpop.permute.xlu1 %2109 }
 0xcf6   : > { %v2123_v44 = vmul.f32 %v2110_v33, %v12615_v18 }
 0xcf8   : > { %v2131_v38 = vadd.f32 %v2123_v44, %v1952_v13 }
 0xcf9   : > { %v2289_v5 = vpop.permute.xlu1 %2288 }
 0xcfa   : > { %v2302_v31 = vmul.f32 %v2289_v5, %v12616_v57 }
 0xcfb   : > { %v9694_v46 = vpop.eup %9693 }
 0xcfc   : > { %v11532_v12 = vmul.f32 %v9694_v46, %v11416_v63  ;;  %v2310_v3 = vadd.f32 %v2302_v31, %v2131_v38  ;;  %v12618_v63 = vld [vmem:[#allocation13_spill] sm:$0xff] }
 0xcfd   : > { %v2468_v10 = vpop.permute.xlu1 %2467  ;;  %v1404_v43 = vmul.f32 %v12618_v63, %v1379_v1 }
 0xcfe   : > { %v2481_v14 = vmul.f32 %v2468_v10, %v12617_v58  ;;  %9145 = vmatpush3.msra.mxu0 %v11532_v12 }
 0xcff   : > { %9146 = vmatprep.subr.mxu0 %v12606_v62  ;;  %v1412_v21 = vadd.f32 %v1404_v43, %v1225_v35 }
 0xd00   : > { %v2489_v28 = vadd.f32 %v2481_v14, %v2310_v3 }
 0xd01   : > { %v2647_v24 = vpop.permute.xlu1 %2646 }
 0xd02   : > { %v2660_v36 = vmul.f32 %v2647_v24, %v10697_v32  ;;  %v12620_v32 = vld [vmem:[#allocation11_spill] sm:$0xff] }
 0xd03   : > { %v1583_v42 = vmul.f32 %v12620_v32, %v11431_v49  ;;  %v12623_v49 = vld [vmem:[#allocation25_spill] sm:$0xff] }
 0xd04   : > { %v11538_v61 = vadd.f32 %v2660_v36, %v2489_v28 }
 0xd05   : > { %v1591_v1 = vadd.f32 %v1583_v42, %v1412_v21 }
 0xd06   : > { %9109 = vmatmul.mubr.msk.f32.vlgmr.msra.gmra.mxu1 %vm1052_vm1, %v11538_v61  ;;  %v5056_v31 = vrot.slane %v11538_v61, 4 }
 0xd07   : > { %9112 = vmatpush3.xpose.msk.msra.mxu1 %vm2836_vm4, %v11474_v15  ;;  %9127 = vmatprep.mubr.msk.f32.mxu1 %vm9791_vm5, %v12606_v62  ;;  %v12621_v15 = vld [vmem:[#allocation19_spill] sm:$0xff] }
 0xd08   : > { %9113 = vmatprep.subr.mxu1 %v12606_v62  ;;  %v1762_v26 = vmul.f32 %v12621_v15, %v11439_v20 }
 0xd0a   : > { %v1770_v33 = vadd.f32 %v1762_v26, %v1591_v1 }
 0xd0b   : > { %9114 = vmatpush3.xpose.msk.msra.mxu1 %vm2836_vm4, %v11479_v60  ;;  %v12622_v60 = vld [vmem:[#allocation17_spill] sm:$0xff] }
 0xd0c   : > { %9115 = vmatprep.subr.mxu1 %v12606_v62  ;;  %v1941_v41 = vmul.f32 %v12622_v60, %v11444_v59  ;;  %v12624_v59 = vld [vmem:[#allocation23_spill] sm:$0xff] }
 0xd0d   : > { %v2299_v50 = vmul.f32 %v12624_v59, %v11471_v8 }
 0xd0e   : > { %v1949_v29 = vadd.f32 %v1941_v41, %v1770_v33 }
 0xd0f   : > { %9116 = vmatpush3.xpose.msk.msra.mxu1 %vm2836_vm4, %v11486_v16  ;;  %v2120_v16 = vmul.f32 %v12623_v49, %v11469_v27 }
 0xd10   : > { %9117 = vmatprep.subr.mxu1 %v12606_v62 }
 0xd13   : > { %9118 = vmatpush3.xpose.msk.msra.mxu1 %vm2836_vm4, %v11493_v19  ;;  %v2128_v19 = vadd.f32 %v2120_v16, %v1949_v29 }
 0xd14   : > { %9119 = vmatprep.subr.mxu1 %v12606_v62 }
 0xd15   : > { %v2307_v27 = vadd.f32 %v2299_v50, %v2128_v19 }
 0xd17   : > { %9120 = vmatpush3.xpose.msk.msra.mxu1 %vm2836_vm4, %v11500_v54  ;;  %v917_v54 = vpop.permute.xlu1 %916 }
 0xd18   : > { %9121 = vmatprep.subr.mxu1 %v12606_v62  ;;  %v11582_v37 = vadd.f32 %v12626_v0, %v917_v54 }
 0xd1a   : > { %v5036_v20 = vpop.xlane.xlu0 %5035 }
 0xd1b   : > { %9122 = vmatpush3.xpose.msk.msra.mxu1 %vm2836_vm4, %v11507_v55  ;;  %9697 = vrcp.f32 %v5036_v20  ;;  %v2478_v55 = vmul.f32 %v12625_v6, %v11481_v34 }
 0xd1c   : > { %9123 = vmatprep.subr.mxu1 %v12606_v62  ;;  %9699 = vrcp.f32 %v5030_v2 }
 0xd1d   : > { %9701 = vrcp.f32 %v11502_v52  ;;  %v2486_v8 = vadd.f32 %v2478_v55, %v2307_v27 }
 0xd1e   : > { %9703 = vrcp.f32 %v11509_v48  ;;  %v9696_v48 = vpop.eup %9695 }
 0xd1f   : > { %9124 = vmatpush3.xpose.msk.msra.mxu1 %vm2836_vm4, %v11514_v23  ;;  %9705 = vrcp.f32 %v11488_v7 }
 0xd20   : > { %9125 = vmatprep.subr.mxu1 %v12606_v62  ;;  %9707 = vrcp.f32 %v11495_v17 }
 0xd22   : > { %v2632_v4 = vpop.permute.xlu0 %2631 }
 0xd23   : > { %9126 = vmatpush3.xpose.msk.msra.mxu1 %vm2836_vm4, %v11519_v30  ;;  %v2657_v52 = vmul.f32 %v10639_v56, %v2632_v4  ;;  %v5053_v56 = vmul.f32 %v9696_v48, %v11405_v53 }
 0xd24   : > { %9182 = vmatprep.subr.msk.mxu1 %vm2727_vm2, %v11582_v37 }
 0xd25   : > { %v2665_v34 = vadd.f32 %v2657_v52, %v2486_v8 }
 0xd26   : > { %v932_v23 = vpop.permute.xlu0 %931 }
 0xd27   : > { %v5653_v2 = vrot.slane %v2665_v34, 4  ;;  %v1030_v5 = vadd.f32 %v12627_v39, %v932_v23  ;;  %5228 = vxpose.xlu0.b32.start.end [1/1] (short) (narrow) %v2665_v34, 64 }
 0xd28   : > { %v9698_v9 = vpop.eup %9697 }
 0xd29   : > { %5655 = vxpose.xlu1.b32.start.end [1/1] (short) (narrow) %v5653_v2, 64  ;;  %9128 = vmatmul.mubr.msk.f32.vlgmr.msra.gmra.mxu1 %vm2836_vm4, %v1030_v5  ;;  %v5054_v7 = vmul.f32 %v9698_v9, %v11459_v51  ;;  %v9700_v30 = vpop.eup %9699 }
 0xd2a   : > { %9183 = vmatpush3.msk.msra.mxu1 %vm2727_vm2, %v11582_v37  ;;  %v9702_v17 = vpop.eup %9701  ;;  %v5052_v18 = vmul.f32 %v9700_v30, %v11409_v40 }
 0xd2b   : > { %9147 = vmatpush3.msra.mxu0 %v5054_v7  ;;  %9196 = vmatprep.subr.mxu1 %v12606_v62  ;;  %v9704_v44 = vpop.eup %9703  ;;  %v5051_v51 = vmul.f32 %v9702_v17, %v11397_v47 }
 0xd2c   : > { %9148 = vmatprep.subr.mxu0 %v12606_v62  ;;  %v9706_v46 = vpop.eup %9705  ;;  %v5050_v53 = vmul.f32 %v9704_v44, %v11401_v25 }
 0xd2d   : > { %9149 = vmatpush3.msra.mxu0 %v5053_v56  ;;  %v9708_v13 = vpop.eup %9707  ;;  %v5049_v57 = vmul.f32 %v9706_v46, %v11381_v22  ;;  %v5687_v22 = vrot.slane %v11582_v37, 4 }
 0xd2e   : > { %9150 = vmatprep.subr.mxu0 %v12606_v62  ;;  %v5048_v40 = vmul.f32 %v9708_v13, %v11391_v45  ;;  %v5130_v45 = vrot.slane %v1030_v5, 4  ;;  %v7691_v13 = vld [vmem:[%s12555_s8 + $0x138] sm:$0xff] }
 0xd2f   : > { %9151 = vmatpush3.msra.mxu0 %v5052_v18 }
 0xd30   : > { %9152 = vmatprep.subr.mxu0 %v12606_v62 }
 0xd31   : > { %9153 = vmatpush3.msra.mxu0 %v5051_v51 }
 0xd32   : > { %9154 = vmatprep.subr.mxu0 %v12606_v62 }
 0xd33   : > { %9155 = vmatpush3.msra.mxu0 %v5050_v53 }
 0xd34   : > { %9156 = vmatprep.subr.mxu0 %v12606_v62 }
 0xd35   : > { %9157 = vmatpush3.msra.mxu0 %v5049_v57 }
 0xd36   : > { %9158 = vmatprep.subr.mxu0 %v12606_v62 }
 0xd37   : > { %9159 = vmatpush3.msra.mxu0 %v5048_v40 }
 0xd38   : > { %9161 = vmatmul.mubr.msk.f32.vlgmr.msra.gmra.mxu0 %vm1052_vm1, %v5056_v31  ;;  %9163 = vmatprep.subr.mxu0 %v12606_v62 }
 0xd39   : > { %9164 = vmatpush3.xpose.msk.msra.mxu0 %vm2836_vm4, %v11532_v12  ;;  %9179 = vmatprep.mubr.msk.f32.mxu0 %vm9791_vm5, %v12606_v62 }
 0xd3a   : > { %9165 = vmatprep.subr.mxu0 %v12606_v62 }
 0xd3d   : > { %9166 = vmatpush3.xpose.msk.msra.mxu0 %vm2836_vm4, %v5054_v7 }
 0xd3e   : > { %9167 = vmatprep.subr.mxu0 %v12606_v62 }
 0xd41   : > { %9168 = vmatpush3.xpose.msk.msra.mxu0 %vm2836_vm4, %v5053_v56 }
 0xd42   : > { %9169 = vmatprep.subr.mxu0 %v12606_v62 }
 0xd45   : > { %9170 = vmatpush3.xpose.msk.msra.mxu0 %vm2836_vm4, %v5052_v18 }
 0xd46   : > { %9171 = vmatprep.subr.mxu0 %v12606_v62 }
 0xd49   : > { %9172 = vmatpush3.xpose.msk.msra.mxu0 %vm2836_vm4, %v5051_v51 }
 0xd4a   : > { %9173 = vmatprep.subr.mxu0 %v12606_v62 }
 0xd4d   : > { %9174 = vmatpush3.xpose.msk.msra.mxu0 %vm2836_vm4, %v5050_v53  ;;  %v7619_v53 = vld [vmem:[%s12555_s8 + $0x78] sm:$0xff] }
 0xd4e   : > { %9175 = vmatprep.subr.mxu0 %v12606_v62 }
 0xd51   : > { %9176 = vmatpush3.xpose.msk.msra.mxu0 %vm2836_vm4, %v5049_v57  ;;  %v7739_v57 = vld [vmem:[%s12555_s8 + $0x1b8] sm:$0xff] }
 0xd52   : > { %9177 = vmatprep.subr.mxu0 %v12606_v62 }
 0xd55   : > { %9178 = vmatpush3.xpose.msk.msra.mxu0 %vm2836_vm4, %v5048_v40 }
 0xd56   : > { %9234 = vmatprep.subr.msk.mxu0 %vm2727_vm2, %v5687_v22 }
 0xd58   : > { %9180 = vmatmul.mubr.msk.f32.vlgmr.msra.gmra.mxu0 %vm2836_vm4, %v5130_v45 }
 0xd59   : > { %9235 = vmatpush3.msk.msra.mxu0 %vm2727_vm2, %v5687_v22 }
 0xd5a   : > { %9248 = vmatprep.subr.mxu0 %v12606_v62 }
 0xda3   : > { %v5244_v47 = vpop.trf.xlu0 }
 0xda4   : > { %9184 = vmatprep.mubr.msk.f32.mxu1 %vm2702_vm3, %v5244_v47 }
 0xda5   : > { %v5671_v25 = vpop.trf.xlu1 }
 0xda6   : > { %9236 = vmatprep.mubr.msk.f32.mxu0 %vm2702_vm3, %v5671_v25 }
 0xda7   : > { %v5245_v12 = vpop.trf.xlu0 }
 0xda8   : > { %9185 = vmatmul.mubr.msk.f32.vlgmr.msra.gmra.mxu1 %vm2702_vm3, %v5245_v12 }
 0xda9   : > { %v5672_v10 = vpop.trf.xlu1 }
 0xdaa   : > { %9237 = vmatmul.mubr.msk.f32.vlgmr.msra.gmra.mxu0 %vm2702_vm3, %v5672_v10 }
 0xdab   : > { %v5246_v38 = vpop.trf.xlu0 }
 0xdac   : > { %9187 = vmatprep.mubr.msk.f32.mxu1 %vm2702_vm3, %v5246_v38 }
 0xdad   : > { %v5673_v58 = vpop.trf.xlu1 }
 0xdae   : > { %9239 = vmatprep.mubr.msk.f32.mxu0 %vm2702_vm3, %v5673_v58 }
 0xdaf   : > { %v5247_v14 = vpop.trf.xlu0 }
 0xdb0   : > { %9188 = vmatmul.mubr.msk.f32.gmra.mxu1 %vm2702_vm3, %v5247_v14 }
 0xdb1   : > { %v5674_v3 = vpop.trf.xlu1 }
 0xdb2   : > { %9240 = vmatmul.mubr.msk.f32.gmra.mxu0 %vm2702_vm3, %v5674_v3 }
 0xdb3   : > { %v5248_v24 = vpop.trf.xlu0 }
 0xdb4   : > { %9190 = vmatprep.mubr.msk.f32.mxu1 %vm2702_vm3, %v5248_v24 }
 0xdb5   : > { %v5675_v28 = vpop.trf.xlu1 }
 0xdb6   : > { %9242 = vmatprep.mubr.msk.f32.mxu0 %vm2702_vm3, %v5675_v28 }
 0xdb7   : > { %v5249_v36 = vpop.trf.xlu0 }
 0xdb8   : > { %9191 = vmatmul.mubr.msk.f32.gmra.mxu1 %vm2702_vm3, %v5249_v36 }
 0xdb9   : > { %v5676_v61 = vpop.trf.xlu1 }
 0xdba   : > { %9243 = vmatmul.mubr.msk.f32.gmra.mxu0 %vm2702_vm3, %v5676_v61 }
 0xdbb   : > { %v5250_v63 = vpop.trf.xlu0 }
 0xdbc   : > { %9193 = vmatprep.mubr.msk.f32.mxu1 %vm2702_vm3, %v5250_v63 }
 0xdbd   : > { %v5677_v43 = vpop.trf.xlu1 }
 0xdbe   : > { %9245 = vmatprep.mubr.msk.f32.mxu0 %vm2702_vm3, %v5677_v43 }
 0xdbf   : > { %v5251_v11 = vpop.trf.xlu0 }
 0xdc0   : > { %9194 = vmatmul.mubr.msk.f32.gmra.mxu1 %vm2702_vm3, %v5251_v11 }
 0xdc1   : > { %v5678_v35 = vpop.trf.xlu1  ;;  %9212 = vmatprep.mubr.msk.f32.mxu1 %vm9791_vm5, %v12606_v62 }
 0xdc2   : > { %9246 = vmatmul.mubr.msk.f32.gmra.mxu0 %vm2702_vm3, %v5678_v35 }
 0xdc3   : > { %9264 = vmatprep.mubr.msk.f32.mxu0 %vm9791_vm5, %v12606_v62 }
 0xdc6   : > { %v4698_v21 = vpop.f32.mrf.mxu1 }
 0xdc7   : > { %4702 = vst.msk [vmem:[#allocation3 + $0x10] sm:$0xf] %vm2998_vm6, %v4698_v21 }
 0xdc8   : > { %v9110_v32 = vpop.f32.mrf.mxu1 }
 0xde9   : > { %v4796_v42 = vpop.f32.mrf.mxu1 }
 0xdea   : > { %4800 = vst.msk [vmem:[#allocation2 + $0x10] sm:$0xf] %vm3097_vm7, %v4796_v42 }
 0xdeb   : > { %v9129_v1 = vpop.f32.mrf.mxu1 }
 0xdf8   : > { %v5125_v15 = vpop.f32.mrf.mxu0 }
 0xdf9   : > { %5129 = vst.msk [vmem:[#allocation3 + $0x14] sm:$0xf] %vm2998_vm6, %v5125_v15 }
 0xdfa   : > { %v9162_v26 = vpop.f32.mrf.mxu0 }
 0xe18   : > { %v5223_v33 = vpop.f32.mrf.mxu0 }
 0xe19   : > { %5227 = vst.msk [vmem:[#allocation2 + $0x14] sm:$0xf] %vm3097_vm7, %v5223_v33 }
 0xe1a   : > { %v9181_v60 = vpop.f32.mrf.mxu0 }
 0xe68   : > { %v11661_v29 = vpop.f32.mrf.mxu1 }
 0xe69   : > { %v5395_v7 = vsel %vm2836_vm4, %v11661_v29, -inf }
 0xe6a   : > { %v11659_v41 = vpop.f32.mrf.mxu0  ;;  %v11665_v16 = vpop.f32.mrf.mxu1 }
 0xe6b   : > { %v5392_v56 = vsel %vm2836_vm4, %v11665_v16, -inf  ;;  %v5822_v18 = vsel %vm2836_vm4, %v11659_v41, -inf }
 0xe6c   : > { %v11663_v49 = vpop.f32.mrf.mxu0 }
 0xe6d   : > { %v5819_v51 = vsel %vm2836_vm4, %v11663_v49, -inf }
 0xe70   : > { %v11667_v20 = vpop.f32.mrf.mxu1 }
 0xe71   : > { %v5401_v2 = vsel %vm2836_vm4, %v11667_v20, -inf }
 0xe72   : > { %v11669_v19 = vpop.f32.mrf.mxu0  ;;  %v11671_v59 = vpop.f32.mrf.mxu1 }
 0xe73   : > { %v5398_v5 = vsel %vm2836_vm4, %v11671_v59, -inf  ;;  %v5828_v30 = vsel %vm2836_vm4, %v11669_v19, -inf }
 0xe74   : > { %v11673_v50 = vpop.f32.mrf.mxu0 }
 0xe75   : > { %v5825_v17 = vsel %vm2836_vm4, %v11673_v50, -inf }
 0xe78   : > { %v9192_v54 = vpop.f32.mrf.mxu1 }
 0xe79   : > { %v5407_v27 = vsel %vm2836_vm4, %v9192_v54, -inf }
 0xe7a   : > { %5408 = vmax.xlane.f32.xlu1 %v5407_v27  ;;  %v5373_v6 = vpop.f32.mrf.mxu1  ;;  %v11676_v55 = vpop.f32.mrf.mxu0 }
 0xe7b   : > { %v5404_v0 = vsel %vm2836_vm4, %v5373_v6, -inf  ;;  %v5834_v39 = vsel %vm2836_vm4, %v11676_v55, -inf }
 0xe7c   : > { %v11679_v37 = vpop.f32.mrf.mxu0 }
 0xe7d   : > { %v5831_v9 = vsel %vm2836_vm4, %v11679_v37, -inf }
 0xe7e   : > { %5405 = vmax.xlane.f32.xlu1 %v5404_v0 }
 0xe80   : > { %v9195_v4 = vpop.f32.mrf.mxu1 }
 0xe81   : > { %v5413_v8 = vsel %vm2836_vm4, %v9195_v4, -inf }
 0xe82   : > { %v11682_v52 = vpop.f32.mrf.mxu0  ;;  %5414 = vmax.xlane.f32.xlu0 %v5413_v8  ;;  %v5383_v34 = vpop.f32.mrf.mxu1 }
 0xe83   : > { %v5840_v23 = vsel %vm2836_vm4, %v11682_v52, -inf  ;;  %v5410_v48 = vsel %vm2836_vm4, %v5383_v34, -inf }
 0xe84   : > { %5841 = vmax.xlane.f32.xlu1 %v5840_v23  ;;  %v11705_v44 = vpop.f32.mrf.mxu0 }
 0xe85   : > { %v5837_v46 = vsel %vm2836_vm4, %v11705_v44, -inf }
 0xe86   : > { %5411 = vmax.xlane.f32.xlu0 %v5410_v48 }
 0xe88   : > { %5402 = vmax.xlane.f32.xlu1 %v5401_v2 }
 0xe8a   : > { %5835 = vmax.xlane.f32.xlu0 %v5834_v39 }
 0xe8c   : > { %5399 = vmax.xlane.f32.xlu1 %v5398_v5 }
 0xe8e   : > { %5832 = vmax.xlane.f32.xlu0 %v5831_v9 }
 0xe90   : > { %5396 = vmax.xlane.f32.xlu1 %v5395_v7 }
 0xe92   : > { %5829 = vmax.xlane.f32.xlu0 %v5828_v30 }
 0xe94   : > { %5393 = vmax.xlane.f32.xlu1 %v5392_v56 }
 0xe96   : > { %5826 = vmax.xlane.f32.xlu0 %v5825_v17 }
 0xe9a   : > { %5823 = vmax.xlane.f32.xlu0 %v5822_v18 }
 0xe9e   : > { %5820 = vmax.xlane.f32.xlu0 %v5819_v51 }
 0xea2   : > { %5838 = vmax.xlane.f32.xlu0 %v5837_v46 }
 0xeb8   : > { %1398 = vperm.xlu0 %9503, %v7619_v53  }
 0xebc   : > { %1935 = vperm.xlu0 %9503, %v7691_v13  }
 0xec0   : > { %2293 = vperm.xlu0 %9503, %v7739_v57  }
 0xf03   : > { %v5409_v40 = vpop.xlane.xlu1 %5408 }
 0xf04   : > { %v5421_v47 = vsub.f32 %v9192_v54, %v5409_v40 }
 0xf06   : > { %v5434_v58 = vmul.f32 1.442695, %v5421_v47 }
 0xf07   : > { %v5406_v31 = vpop.xlane.xlu1 %5405 }
 0xf08   : > { %v5420_v14 = vsub.f32 %v5373_v6, %v5406_v31 }
 0xf0a   : > { %v5432_v36 = vmul.f32 1.442695, %v5420_v14 }
 0xf0b   : > { %v5415_v22 = vpop.xlane.xlu0 %5414 }
 0xf0c   : > { %v5423_v45 = vsub.f32 %v9195_v4, %v5415_v22 }
 0xf0d   : > { %v11720_v25 = vpop.xlane.xlu1 %5841 }
 0xf0e   : > { %v5438_v12 = vmul.f32 1.442695, %v5423_v45 }
 0xf0f   : > { %v5412_v10 = vpop.xlane.xlu0 %5411 }
 0xf10   : > { %9709 = vpow2.f32 %v5438_v12  ;;  %v5422_v38 = vsub.f32 %v5383_v34, %v5412_v10 }
 0xf11   : > { %v5403_v3 = vpop.xlane.xlu1 %5402 }
 0xf12   : > { %v5436_v24 = vmul.f32 1.442695, %v5422_v38  ;;  %v5419_v63 = vsub.f32 %v11667_v20, %v5403_v3 }
 0xf13   : > { %v5836_v28 = vpop.xlane.xlu0 %5835 }
 0xf14   : > { %9711 = vpow2.f32 %v5436_v24  ;;  %v5430_v35 = vmul.f32 1.442695, %v5419_v63  ;;  %v1043_v24 = vld [vmem:[%s12555_s8 + $0x38] sm:$0xff] }
 0xf15   : > { %9713 = vpow2.f32 %v5434_v58  ;;  %v5400_v61 = vpop.xlane.xlu1 %5399 }
 0xf16   : > { %9715 = vpow2.f32 %v5432_v36  ;;  %v5418_v21 = vsub.f32 %v11671_v59, %v5400_v61  ;;  %v7643_v61 = vld [vmem:[%s12555_s8 + $0xb8] sm:$0xff] }
 0xf17   : > { %v5833_v43 = vpop.xlane.xlu0 %5832  ;;  %9717 = vpow2.f32 %v5430_v35 }
 0xf18   : > { %v5428_v1 = vmul.f32 1.442695, %v5418_v21  ;;  %v5847_v18 = vsub.f32 %v11679_v37, %v5833_v43  ;;  %v7715_v21 = vld [vmem:[%s12555_s8 + $0x178] sm:$0xff] }
 0xf19   : > { %v5397_v11 = vpop.xlane.xlu1 %5396 }
 0xf1a   : > { %v5417_v15 = vsub.f32 %v11661_v29, %v5397_v11  ;;  %9719 = vpow2.f32 %v5428_v1  ;;  %v5859_v53 = vmul.f32 1.442695, %v5847_v18  ;;  %v7667_v11 = vld [vmem:[%s12555_s8 + $0xf8] sm:$0xff]  ;;  %v7997_v18 = vld [vmem:[%s12561_s14 + $0x68] sm:$0xff] }
 0xf1b   : > { %v5830_v32 = vpop.xlane.xlu0 %5829  ;;  %v898_v1 = vld [vmem:[%s12554_s7 + $0x38] sm:$0xff] }
 0xf1c   : > { %v5426_v27 = vmul.f32 1.442695, %v5417_v15  ;;  %v5846_v34 = vsub.f32 %v11669_v19, %v5830_v32  ;;  %v5848_v19 = vsub.f32 %v11676_v55, %v5836_v28  ;;  %v5850_v55 = vsub.f32 %v11682_v52, %v11720_v25  ;;  %v7763_v32 = vld [vmem:[%s12555_s8 + $0x1f8] sm:$0xff]  ;;  %v6090_v15 = vld [vmem:[%s12558_s11 + $0x8] sm:$0xff] }
 0xf1d   : > { %v11724_v42 = vpop.eup %9709  ;;  %v5394_v33 = vpop.xlane.xlu1 %5393 }
 0xf1e   : > { %v5461_v26 = vsel %vm2836_vm4, %v11724_v42, 0.0  ;;  %v5416_v59 = vsub.f32 %v11665_v16, %v5394_v33  ;;  %9721 = vpow2.f32 %v5426_v27  ;;  %v5857_v5 = vmul.f32 1.442695, %v5846_v34  ;;  %v7787_v33 = vld [vmem:[%s12555_s8 + $0x238] sm:$0xff]  ;;  %v6089_v27 = vld [vmem:[%s12558_s11] sm:$0xff]  ;;  %v6188_v34 = vld [vmem:[%s12559_s12 + $0x10] sm:$0xff] }
 0xf1f   : > { %5462 = vadd.xlane.f32.xlu1 %v5461_v26  ;;  %v5827_v60 = vpop.xlane.xlu0 %5826  ;;  %v5861_v17 = vmul.f32 1.442695, %v5848_v19  ;;  %v5865_v22 = vmul.f32 1.442695, %v5850_v55  ;;  %v6092_v26 = vld [vmem:[%s12558_s11 + $0x18] sm:$0xff]  ;;  %v7981_v19 = vld [vmem:[%s12561_s14 + $0x48] sm:$0xff] }
 0xf20   : > { %v5424_v23 = vmul.f32 1.442695, %v5416_v59  ;;  %v6189_v59 = vld [vmem:[%s12559_s12 + $0x18] sm:$0xff] }
 0xf21   : > { %v11729_v20 = vpop.eup %9711  ;;  %v7999_v55 = vld [vmem:[%s12561_s14 + $0x78] sm:$0xff] }
 0xf22   : > { %v11731_v54 = vpop.eup %9713  ;;  %v5458_v6 = vsel %vm2836_vm4, %v11729_v20, 0.0 }
 0xf23   : > { %5459 = vadd.xlane.f32.xlu1 %v5458_v6  ;;  %v5824_v0 = vpop.xlane.xlu0 %5823  ;;  %v5455_v4 = vsel %vm2836_vm4, %v11731_v54, 0.0  ;;  %v11739_v8 = vpop.eup %9715  ;;  %v6091_v6 = vld [vmem:[%s12558_s11 + $0x10] sm:$0xff] }
 0xf24   : > { %v5844_v29 = vsub.f32 %v11659_v41, %v5824_v0  ;;  %v5452_v39 = vsel %vm2836_vm4, %v11739_v8, 0.0  ;;  %v5845_v41 = vsub.f32 %v11673_v50, %v5827_v60  ;;  %v11746_v7 = vpop.eup %9717  ;;  %v6187_v60 = vld [vmem:[%s12559_s12 + $0x8] sm:$0xff] }
 0xf25   : > { %v5449_v56 = vsel %vm2836_vm4, %v11746_v7, 0.0  ;;  %v6215_v0 = vld [vmem:[%s12560_s13 + $0x8] sm:$0xff] }
 0xf26   : > { %v5853_v48 = vmul.f32 1.442695, %v5844_v29  ;;  %v5855_v30 = vmul.f32 1.442695, %v5845_v41  ;;  %v6186_v29 = vld [vmem:[%s12559_s12] sm:$0xff]  ;;  %v7967_v41 = vld [vmem:[%s12561_s14 + $0x38] sm:$0xff] }
 0xf27   : > { %5456 = vadd.xlane.f32.xlu1 %v5455_v4  ;;  %v5821_v2 = vpop.xlane.xlu0 %5820  ;;  %v6217_v4 = vld [vmem:[%s12560_s13 + $0x18] sm:$0xff] }
 0xf28   : > { %9723 = vpow2.f32 %v5853_v48  ;;  %v5843_v16 = vsub.f32 %v11663_v49, %v5821_v2  ;;  %v11751_v49 = vpop.eup %9719  ;;  %v6214_v48 = vld [vmem:[%s12560_s13] sm:$0xff]  ;;  %v6257_v2 = vld [vmem:[%s12561_s14 + $0x18] sm:$0xff] }
 0xf29   : > { %9725 = vpow2.f32 %v5424_v23  ;;  %v5446_v50 = vsel %vm2836_vm4, %v11751_v49, 0.0  ;;  %v6255_v23 = vld [vmem:[%s12561_s14 + $0x8] sm:$0xff] }
 0xf2a   : > { %v5851_v9 = vmul.f32 1.442695, %v5843_v16  ;;  %v6216_v16 = vld [vmem:[%s12560_s13 + $0x10] sm:$0xff] }
 0xf2b   : > { %5453 = vadd.xlane.f32.xlu1 %v5452_v39  ;;  %v11756_v51 = vpop.eup %9721  ;;  %v5839_v40 = vpop.xlane.xlu0 %5838  ;;  %v7965_v39 = vld [vmem:[%s12561_s14 + $0x28] sm:$0xff] }
 0xf2c   : > { %9727 = vpow2.f32 %v5851_v9  ;;  %v5443_v13 = vsel %vm2836_vm4, %v11756_v51, 0.0  ;;  %v5849_v45 = vsub.f32 %v11705_v44, %v5839_v40  ;;  %v6256_v9 = vld [vmem:[%s12561_s14 + $0x10] sm:$0xff]  ;;  %v8015_v40 = vld [vmem:[%s12561_s14 + $0x98] sm:$0xff] }
 0xf2d   : > { %9729 = vpow2.f32 %v5857_v5  ;;  %v6254_v5 = vld [vmem:[%s12561_s14] sm:$0xff] }
 0xf2e   : > { %9731 = vpow2.f32 %v5855_v30  ;;  %v5863_v12 = vmul.f32 1.442695, %v5849_v45  ;;  %v7964_v30 = vld [vmem:[%s12561_s14 + $0x20] sm:$0xff]  ;;  %v8029_v45 = vld [vmem:[%s12561_s14 + $0xa8] sm:$0xff] }
 0xf2f   : > { %5450 = vadd.xlane.f32.xlu1 %v5449_v56  ;;  %9733 = vpow2.f32 %v5861_v17  ;;  %v7983_v56 = vld [vmem:[%s12561_s14 + $0x58] sm:$0xff]  ;;  %v7966_v17 = vld [vmem:[%s12561_s14 + $0x30] sm:$0xff] }
 0xf30   : > { %9735 = vpow2.f32 %v5859_v53  ;;  %v7982_v53 = vld [vmem:[%s12561_s14 + $0x50] sm:$0xff] }
 0xf31   : > { %9737 = vpow2.f32 %v5865_v22  ;;  %v7998_v22 = vld [vmem:[%s12561_s14 + $0x70] sm:$0xff] }
 0xf32   : > { %9739 = vpow2.f32 %v5863_v12  ;;  %v8014_v12 = vld [vmem:[%s12561_s14 + $0x90] sm:$0xff] }
 0xf33   : > { %5447 = vadd.xlane.f32.xlu1 %v5446_v50  ;;  %v7980_v50 = vld [vmem:[%s12561_s14 + $0x40] sm:$0xff] }
 0xf35   : > { %v11758_v46 = vpop.eup %9723 }
 0xf36   : > { %v5870_v37 = vsel %vm2836_vm4, %v11758_v46, 0.0  ;;  %v11766_v57 = vpop.eup %9725 }
 0xf37   : > { %5444 = vadd.xlane.f32.xlu1 %v5443_v13  ;;  %5871 = vadd.xlane.f32.xlu0 %v5870_v37  ;;  %v5440_v52 = vsel %vm2836_vm4, %v11766_v57, 0.0  ;;  %v8013_v13 = vld [vmem:[%s12561_s14 + $0x88] sm:$0xff]  ;;  %v7996_v37 = vld [vmem:[%s12561_s14 + $0x60] sm:$0xff] }
 0xf39   : > { %v11768_v31 = vpop.eup %9727 }
 0xf3a   : > { %v5867_v47 = vsel %vm2836_vm4, %v11768_v31, 0.0  ;;  %v11775_v25 = vpop.eup %9729 }
 0xf3b   : > { %5441 = vadd.xlane.f32.xlu1 %v5440_v52  ;;  %5868 = vadd.xlane.f32.xlu0 %v5867_v47  ;;  %v5876_v10 = vsel %vm2836_vm4, %v11775_v25, 0.0  ;;  %v11779_v38 = vpop.eup %9731  ;;  %v8012_v52 = vld [vmem:[%s12561_s14 + $0x80] sm:$0xff]  ;;  %v8031_v47 = vld [vmem:[%s12561_s14 + $0xb8] sm:$0xff] }
 0xf3c   : > { %v5873_v44 = vsel %vm2836_vm4, %v11779_v38, 0.0  ;;  %v11783_v58 = vpop.eup %9733 }
 0xf3d   : > { %v5882_v14 = vsel %vm2836_vm4, %v11783_v58, 0.0  ;;  %v11787_v3 = vpop.eup %9735 }
 0xf3e   : > { %v5879_v28 = vsel %vm2836_vm4, %v11787_v3, 0.0  ;;  %v11794_v36 = vpop.eup %9737 }
 0xf3f   : > { %5877 = vadd.xlane.f32.xlu0 %v5876_v10  ;;  %v5888_v63 = vsel %vm2836_vm4, %v11794_v36, 0.0  ;;  %v11801_v43 = vpop.eup %9739 }
 0xf40   : > { %v5885_v35 = vsel %vm2836_vm4, %v11801_v43, 0.0 }
 0xf43   : > { %5874 = vadd.xlane.f32.xlu0 %v5873_v44  ;;  %v8045_v44 = vld [vmem:[%s12561_s14 + $0xc8] sm:$0xff] }
 0xf47   : > { %5883 = vadd.xlane.f32.xlu0 %v5882_v14  ;;  %v8028_v14 = vld [vmem:[%s12561_s14 + $0xa0] sm:$0xff] }
 0xf4b   : > { %5880 = vadd.xlane.f32.xlu0 %v5879_v28  ;;  %v8047_v28 = vld [vmem:[%s12561_s14 + $0xd8] sm:$0xff] }
 0xf4c   : > { %1219 = vperm.xlu1 %9504, %v1043_v24  }
 0xf4f   : > { %5889 = vadd.xlane.f32.xlu0 %v5888_v63  ;;  %v11934_v63 = vpop.permute.xlu0 %1398 }
 0xf50   : > { %1577 = vperm.xlu1 %9504, %v7643_v61   ;;  %v8030_v61 = vld [vmem:[%s12561_s14 + $0xb0] sm:$0xff] }
 0xf53   : > { %5886 = vadd.xlane.f32.xlu0 %v5885_v35  ;;  %v8061_v35 = vld [vmem:[%s12561_s14 + $0xe8] sm:$0xff] }
 0xf54   : > { %1756 = vperm.xlu1 %9504, %v7667_v11  }
 0xf58   : > { %2114 = vperm.xlu1 %9504, %v7715_v21   ;;  %v8044_v21 = vld [vmem:[%s12561_s14 + $0xc0] sm:$0xff] }
 0xf5c   : > { %2472 = vperm.xlu1 %9504, %v7763_v32  }
 0xf60   : > { %936 = vperm.xlu1 %9504, %v898_v1   ;;  %v8063_v1 = vld [vmem:[%s12561_s14 + $0xf8] sm:$0xff] }
 0xf64   : > { %6100 = vperm.xlu1 %9504, %v6090_v15  }
 0xf68   : > { %6110 = vperm.xlu1 %9504, %v6092_v26   ;;  %v11945_v26 = vpop.permute.xlu0 %1935 }
 0xf69   : > { %2651 = vperm.xlu0 %9503, %v7787_v33   ;;  %v8046_v33 = vld [vmem:[%s12561_s14 + $0xd0] sm:$0xff] }
 0xf6c   : > { %6197 = vperm.xlu1 %9504, %v6187_v60  }
 0xf6d   : > { %6095 = vperm.xlu0 %9503, %v6089_v27  }
 0xf70   : > { %6207 = vperm.xlu1 %9504, %v6189_v59   ;;  %v8077_v59 = vld [vmem:[%s12561_s14 + $0x108] sm:$0xff] }
 0xf71   : > { %6105 = vperm.xlu0 %9503, %v6091_v6  }
 0xf74   : > { %6225 = vperm.xlu1 %9504, %v6215_v0   ;;  %v8060_v0 = vld [vmem:[%s12561_s14 + $0xe0] sm:$0xff] }
 0xf75   : > { %6192 = vperm.xlu0 %9503, %v6186_v29   ;;  %v11964_v29 = vpop.permute.xlu0 %2293 }
 0xf78   : > { %6235 = vperm.xlu1 %9504, %v6217_v4  }
 0xf79   : > { %6202 = vperm.xlu0 %9503, %v6188_v34   ;;  %v8079_v34 = vld [vmem:[%s12561_s14 + $0x118] sm:$0xff] }
 0xf7c   : > { %6370 = vperm.xlu1 %9504, %v6255_v23  }
 0xf7d   : > { %6220 = vperm.xlu0 %9503, %v6214_v48  }
 0xf80   : > { %6380 = vperm.xlu1 %9504, %v6257_v2  }
 0xf81   : > { %6230 = vperm.xlu0 %9503, %v6216_v16  }
 0xf84   : > { %6496 = vperm.xlu1 %9504, %v7965_v39   ;;  %v7408_v39 = vld [vmem:[%s12562_s15 + $0x8] sm:$0xff] }
 0xf85   : > { %6365 = vperm.xlu0 %9503, %v6254_v5  }
 0xf88   : > { %6506 = vperm.xlu1 %9504, %v7967_v41  }
 0xf89   : > { %6375 = vperm.xlu0 %9503, %v6256_v9  }
 0xf8c   : > { %6622 = vperm.xlu1 %9504, %v7981_v19  }
 0xf8d   : > { %6491 = vperm.xlu0 %9503, %v7964_v30   ;;  %v7410_v30 = vld [vmem:[%s12562_s15 + $0x18] sm:$0xff] }
 0xf90   : > { %6632 = vperm.xlu1 %9504, %v7983_v56  }
 0xf91   : > { %6501 = vperm.xlu0 %9503, %v7966_v17  }
 0xf94   : > { %6748 = vperm.xlu1 %9504, %v7997_v18  }
 0xf95   : > { %6617 = vperm.xlu0 %9503, %v7980_v50  }
 0xf98   : > { %6758 = vperm.xlu1 %9504, %v7999_v55   ;;  %v7436_v55 = vld [vmem:[%s12563_s16 + $0x8] sm:$0xff] }
 0xf99   : > { %6627 = vperm.xlu0 %9503, %v7982_v53  }
 0xf9c   : > { %6874 = vperm.xlu1 %9504, %v8013_v13   ;;  %v7407_v13 = vld [vmem:[%s12562_s15] sm:$0xff] }
 0xf9d   : > { %6743 = vperm.xlu0 %9503, %v7996_v37  }
 0xfa0   : > { %6884 = vperm.xlu1 %9504, %v8015_v40  }
 0xfa1   : > { %6753 = vperm.xlu0 %9503, %v7998_v22   ;;  %v12628_v22 = vld [vmem:[#allocation7_spill] sm:$0xff] }
 0xfa4   : > { %7000 = vperm.xlu1 %9504, %v8029_v45  }
 0xfa5   : > { %6869 = vperm.xlu0 %9503, %v8012_v52   ;;  %v7438_v52 = vld [vmem:[%s12563_s16 + $0x18] sm:$0xff] }
 0xfa8   : > { %v5463_v10 = vpop.xlane.xlu1 %5462  ;;  %7010 = vperm.xlu1 %9504, %v8031_v47  }
 0xfa9   : > { %9741 = vrcp.f32 %v5463_v10  ;;  %6879 = vperm.xlu0 %9503, %v8014_v12   ;;  %v12629_v12 = vld [vmem:[#allocation16_spill] sm:$0xff] }
 0xfaa   : > { %v1408_v10 = vmul.f32 %v12629_v12, %v11934_v63  ;;  %v7435_v63 = vld [vmem:[%s12563_s16] sm:$0xff]  ;;  %v7986_v12 = vld [vmem:[%s12556_s9 + $0x90] sm:$0xff] }
 0xfac   : > { %7126 = vperm.xlu1 %9504, %v8045_v44   ;;  %v5460_v24 = vpop.xlane.xlu1 %5459  ;;  %v12630_v44 = vld [vmem:[#allocation14_spill] sm:$0xff] }
 0xfad   : > { %9743 = vrcp.f32 %v5460_v24  ;;  %6995 = vperm.xlu0 %9503, %v8028_v14  }
 0xfb0   : > { %7136 = vperm.xlu1 %9504, %v8047_v28   ;;  %v5457_v11 = vpop.xlane.xlu1 %5456 }
 0xfb1   : > { %9745 = vrcp.f32 %v5457_v11  ;;  %7005 = vperm.xlu0 %9503, %v8030_v61  }
 0xfb4   : > { %7252 = vperm.xlu1 %9504, %v8061_v35   ;;  %v5454_v32 = vpop.xlane.xlu1 %5453  ;;  %v12631_v35 = vld [vmem:[#allocation22_spill] sm:$0xff] }
 0xfb5   : > { %9747 = vrcp.f32 %v5454_v32  ;;  %7121 = vperm.xlu0 %9503, %v8044_v21  }
 0xfb6   : > { %v9742_v15 = vpop.eup %9741 }
 0xfb7   : > { %v11951_v60 = vmul.f32 %v9742_v15, %v11724_v42 }
 0xfb8   : > { %7262 = vperm.xlu1 %9504, %v8063_v1   ;;  %v5451_v27 = vpop.xlane.xlu1 %5450 }
 0xfb9   : > { %9749 = vrcp.f32 %v5451_v27  ;;  %9197 = vmatpush3.msra.mxu1 %v11951_v60  ;;  %7131 = vperm.xlu0 %9503, %v8046_v33  }
 0xfba   : > { %v9744_v6 = vpop.eup %9743  ;;  %9198 = vmatprep.subr.mxu1 %v12606_v62 }
 0xfbb   : > { %v11962_v42 = vmul.f32 %v9744_v6, %v11729_v20  ;;  %v8062_v20 = vld [vmem:[%s12561_s14 + $0xf0] sm:$0xff]  ;;  %v12632_v6 = vld [vmem:[#allocation20_spill] sm:$0xff] }
 0xfbc   : > { %7378 = vperm.xlu1 %9504, %v8077_v59   ;;  %v5448_v4 = vpop.xlane.xlu1 %5447  ;;  %v7437_v59 = vld [vmem:[%s12563_s16 + $0x10] sm:$0xff] }
 0xfbd   : > { %9751 = vrcp.f32 %v5448_v4  ;;  %9199 = vmatpush3.msra.mxu1 %v11962_v42  ;;  %7247 = vperm.xlu0 %9503, %v8060_v0   ;;  %v1945_v0 = vmul.f32 %v12632_v6, %v11945_v26 }
 0xfbe   : > { %v9746_v23 = vpop.eup %9745  ;;  %9200 = vmatprep.subr.mxu1 %v12606_v62 }
 0xfbf   : > { %v11975_v48 = vmul.f32 %v9746_v23, %v11731_v54  ;;  %v8076_v54 = vld [vmem:[%s12561_s14 + $0x100] sm:$0xff] }
 0xfc0   : > { %7388 = vperm.xlu1 %9504, %v8079_v34   ;;  %v5445_v2 = vpop.xlane.xlu1 %5444  ;;  %v11977_v16 = vpop.xlane.xlu0 %5871  ;;  %v12633_v23 = vld [vmem:[#allocation28_spill] sm:$0xff] }
 0xfc1   : > { %9753 = vrcp.f32 %v5445_v2  ;;  %9201 = vmatpush3.msra.mxu1 %v11975_v48  ;;  %7257 = vperm.xlu0 %9503, %v8062_v20  }
 0xfc2   : > { %v9748_v5 = vpop.eup %9747  ;;  %9202 = vmatprep.subr.mxu1 %v12606_v62 }
 0xfc3   : > { %v11988_v41 = vmul.f32 %v9748_v5, %v11739_v8  ;;  %v8078_v8 = vld [vmem:[%s12561_s14 + $0x110] sm:$0xff] }
 0xfc4   : > { %7418 = vperm.xlu1 %9504, %v7408_v39   ;;  %v5442_v9 = vpop.xlane.xlu1 %5441  ;;  %v11990_v19 = vpop.xlane.xlu0 %5868  ;;  %v12634_v5 = vld [vmem:[#allocation26_spill] sm:$0xff] }
 0xfc5   : > { %9755 = vrcp.f32 %v5442_v9  ;;  %9203 = vmatpush3.msra.mxu1 %v11988_v41  ;;  %7373 = vperm.xlu0 %9503, %v8076_v54   ;;  %v2303_v54 = vmul.f32 %v12634_v5, %v11964_v29  ;;  %v9516_v5 = vld [vmem:[%s12557_s10 + $0x8] sm:$0xff]  }
 0xfc6   : > { %v9750_v56 = vpop.eup %9749  ;;  %9204 = vmatprep.subr.mxu1 %v12606_v62 }
 0xfc7   : > { %v12001_v17 = vmul.f32 %v9750_v56, %v11746_v7 }
 0xfc8   : > { %7428 = vperm.xlu1 %9504, %v7410_v30   ;;  %v1220_v18 = vpop.permute.xlu1 %1219  ;;  %v5878_v50 = vpop.xlane.xlu0 %5877  ;;  %v12635_v30 = vld [vmem:[#allocation32_spill] sm:$0xff] }
 0xfc9   : > { %9205 = vmatpush3.msra.mxu1 %v12001_v17  ;;  %7383 = vperm.xlu0 %9503, %v8078_v8   ;;  %v1229_v45 = vmul.f32 %v12628_v22, %v1220_v18  ;;  %v12636_v18 = vld [vmem:[#allocation34_spill] sm:$0xff] }
 0xfca   : > { %v9752_v53 = vpop.eup %9751  ;;  %9206 = vmatprep.subr.mxu1 %v12606_v62 }
 0xfcb   : > { %v12012_v7 = vmul.f32 %v9752_v53, %v11751_v49  ;;  %v7409_v49 = vld [vmem:[%s12562_s15 + $0x10] sm:$0xff]  ;;  %v1416_v11 = vadd.f32 %v1408_v10, %v1229_v45  ;;  %v7985_v10 = vld [vmem:[%s12556_s9 + $0x88] sm:$0xff] }
 0xfcc   : > { %7446 = vperm.xlu1 %9504, %v7436_v55   ;;  %v1578_v37 = vpop.permute.xlu1 %1577  ;;  %v5875_v40 = vpop.xlane.xlu0 %5874 }
 0xfcd   : > { %9207 = vmatpush3.msra.mxu1 %v12012_v7  ;;  %7413 = vperm.xlu0 %9503, %v7407_v13   ;;  %v1587_v14 = vmul.f32 %v12630_v44, %v1578_v37  ;;  %v7984_v44 = vld [vmem:[%s12556_s9 + $0x80] sm:$0xff] }
 0xfce   : > { %v9754_v47 = vpop.eup %9753  ;;  %9208 = vmatprep.subr.mxu1 %v12606_v62 }
 0xfcf   : > { %v12027_v24 = vmul.f32 %v9754_v47, %v11756_v51  ;;  %v1595_v1 = vadd.f32 %v1587_v14, %v1416_v11  ;;  %v7988_v47 = vld [vmem:[%s12556_s9 + $0xa0] sm:$0xff]  ;;  %v12143_v14 = vld [vmem:[#allocation2 + $0x8] sm:$0xff]  ;;  %v8022_v11 = vld [vmem:[%s12556_s9 + $0x130] sm:$0xff] }
 0xfd0   : > { %7456 = vperm.xlu1 %9504, %v7438_v52   ;;  %v1757_v28 = vpop.permute.xlu1 %1756  ;;  %v5884_v61 = vpop.xlane.xlu0 %5883  ;;  %v12121_v52 = vld [vmem:[#allocation2] sm:$0xff] }
 0xfd1   : > { %v1766_v21 = vmul.f32 %v12631_v35, %v1757_v28  ;;  %9209 = vmatpush3.msra.mxu1 %v12027_v24  ;;  %7423 = vperm.xlu0 %9503, %v7409_v49   ;;  %v7987_v49 = vld [vmem:[%s12556_s9 + $0x98] sm:$0xff]  ;;  %v9515_v28 = vld [vmem:[%s12557_s10] sm:$0xff]   ;;  %v8021_v35 = vld [vmem:[%s12556_s9 + $0x128] sm:$0xff] }
 0xfd2   : > { %v9756_v32 = vpop.eup %9755  ;;  %9210 = vmatprep.subr.mxu1 %v12606_v62 }
 0xfd3   : > { %v12036_v51 = vmul.f32 %v9756_v32, %v11766_v57  ;;  %v1774_v33 = vadd.f32 %v1766_v21, %v1595_v1  ;;  %v8020_v21 = vld [vmem:[%s12556_s9 + $0x120] sm:$0xff]  ;;  %v8019_v32 = vld [vmem:[%s12556_s9 + $0x118] sm:$0xff]  ;;  %v8017_v1 = vld [vmem:[%s12556_s9 + $0x108] sm:$0xff] }
 0xfd4   : > { %v5881_v15 = vpop.xlane.xlu0 %5880  ;;  %v2115_v27 = vpop.permute.xlu1 %2114 }
 0xfd5   : > { %9211 = vmatpush3.msra.mxu1 %v12036_v51  ;;  %7441 = vperm.xlu0 %9503, %v7435_v63   ;;  %v1953_v34 = vadd.f32 %v1945_v0, %v1774_v33  ;;  %v2124_v57 = vmul.f32 %v12633_v23, %v2115_v27  ;;  %v8018_v63 = vld [vmem:[%s12556_s9 + $0x110] sm:$0xff] }
 0xfd6   : > { %9215 = vmatprep.subr.mxu1 %v12606_v62  ;;  %v6085_v0 = vld [vmem:[#allocation3 + $0x10] sm:$0xff] }
 0xfd7   : > { %v2132_v2 = vadd.f32 %v2124_v57, %v1953_v34  ;;  %v6084_v34 = vld [vmem:[#allocation3 + $0x8] sm:$0xff]  ;;  %v6083_v57 = vld [vmem:[#allocation3] sm:$0xff] }
 0xfd8   : > { %v5890_v4 = vpop.xlane.xlu0 %5889  ;;  %v2473_v39 = vpop.permute.xlu1 %2472 }
 0xfd9   : > { %9757 = vrcp.f32 %v5890_v4  ;;  %7451 = vperm.xlu0 %9503, %v7437_v59   ;;  %v2311_v9 = vadd.f32 %v2303_v54, %v2132_v2  ;;  %v2482_v56 = vmul.f32 %v12635_v30, %v2473_v39  ;;  %v6265_v2 = vld [vmem:[%s12556_s9 + $0x38] sm:$0xff]  ;;  %v6263_v30 = vld [vmem:[%s12556_s9 + $0x28] sm:$0xff] }
 0xfda   : > { %9759 = vrcp.f32 %v5884_v61  ;;  %v8023_v61 = vld [vmem:[%s12556_s9 + $0x138] sm:$0xff] }
 0xfdb   : > { %v2490_v8 = vadd.f32 %v2482_v56, %v2311_v9  ;;  %v6264_v9 = vld [vmem:[%s12556_s9 + $0x30] sm:$0xff]  ;;  %v6262_v56 = vld [vmem:[%s12556_s9 + $0x20] sm:$0xff] }
 0xfdc   : > { %v5887_v20 = vpop.xlane.xlu0 %5886 }
 0xfdd   : > { %9761 = vrcp.f32 %v5887_v20  ;;  %v6087_v20 = vpack.c.bf16 %v6084_v34, %v6083_v57  ;;  %v8067_v34 = vld [vmem:[%s12556_s9 + $0x1d8] sm:$0xff]  ;;  %v8065_v57 = vld [vmem:[%s12556_s9 + $0x1c8] sm:$0xff] }
 0xfde   : > { %9763 = vrcp.f32 %v5881_v15  ;;  %v12182_v15 = vld [vmem:[%s12556_s9 + $0x1b8] sm:$0xff] }
 0xfdf   : > { %9765 = vrcp.f32 %v5878_v50 }
 0xfe0   : > { %9767 = vrcp.f32 %v5875_v40 }
 0xfe1   : > { %9769 = vrcp.f32 %v11977_v16 }
 0xfe2   : > { %9771 = vrcp.f32 %v11990_v19 }
 0xfe4   : > { %v2652_v26 = vpop.permute.xlu0 %2651 }
 0xfe5   : > { %v2661_v55 = vmul.f32 %v12636_v18, %v2652_v26  ;;  %v6261_v26 = vld [vmem:[%s12556_s9 + $0x18] sm:$0xff]  ;;  %v6259_v18 = vld [vmem:[%s12556_s9 + $0x8] sm:$0xff] }
 0xfe6   : > { %v9758_v53 = vpop.eup %9757 }
 0xfe7   : > { %v2669_v13 = vadd.f32 %v2661_v55, %v2490_v8  ;;  %v5906_v37 = vmul.f32 %v9758_v53, %v11794_v36  ;;  %v9760_v22 = vpop.eup %9759  ;;  %v6260_v8 = vld [vmem:[%s12556_s9 + $0x10] sm:$0xff]  ;;  %v6258_v55 = vld [vmem:[%s12556_s9] sm:$0xff]  ;;  %v7975_v53 = vld [vmem:[%s12556_s9 + $0x78] sm:$0xff] }
 0xfe8   : > { %v5904_v36 = vmul.f32 %v9760_v22, %v11783_v58 }
 0xfe9   : > { %9213 = vmatmul.mubr.msk.f32.vlgmr.msra.gmra.mxu1 %vm1052_vm1, %v2669_v13  ;;  %9249 = vmatpush3.msra.mxu0 %v5906_v37 }
 0xfea   : > { %v9762_v29 = vpop.eup %9761  ;;  %9216 = vmatpush3.xpose.msk.msra.mxu1 %vm2836_vm4, %v11951_v60  ;;  %9250 = vmatprep.subr.mxu0 %v12606_v62 }
 0xfeb   : > { %9217 = vmatprep.subr.mxu1 %v12606_v62  ;;  %v5905_v16 = vmul.f32 %v9762_v29, %v11801_v43  ;;  %9231 = vmatprep.mubr.msk.f32.mxu1 %vm9791_vm5, %v12606_v62  ;;  %v9764_v19 = vpop.eup %9763  ;;  %v7973_v29 = vld [vmem:[%s12556_s9 + $0x68] sm:$0xff] }
 0xfec   : > { %v9766_v50 = vpop.eup %9765  ;;  %v5903_v60 = vmul.f32 %v9764_v19, %v11787_v3 }
 0xfed   : > { %9251 = vmatpush3.msra.mxu0 %v5905_v16  ;;  %v9768_v40 = vpop.eup %9767  ;;  %v5902_v43 = vmul.f32 %v9766_v50, %v11775_v25  ;;  %v7970_v50 = vld [vmem:[%s12556_s9 + $0x50] sm:$0xff] }
 0xfee   : > { %9218 = vmatpush3.xpose.msk.msra.mxu1 %vm2836_vm4, %v11962_v42  ;;  %9252 = vmatprep.subr.mxu0 %v12606_v62  ;;  %v9770_v45 = vpop.eup %9769  ;;  %v5901_v58 = vmul.f32 %v9768_v40, %v11779_v38  ;;  %v7969_v40 = vld [vmem:[%s12556_s9 + $0x48] sm:$0xff] }
 0xfef   : > { %9253 = vmatpush3.msra.mxu0 %v5904_v36  ;;  %9219 = vmatprep.subr.mxu1 %v12606_v62  ;;  %v9772_v42 = vpop.eup %9771  ;;  %v5900_v3 = vmul.f32 %v9770_v45, %v11758_v46  ;;  %v937_v46 = vpop.permute.xlu1 %936  ;;  %v7968_v45 = vld [vmem:[%s12556_s9 + $0x40] sm:$0xff] }
 0xff0   : > { %9254 = vmatprep.subr.mxu0 %v12606_v62  ;;  %v5899_v25 = vmul.f32 %v9772_v42, %v11768_v31  ;;  %v12637_v31 = vld [vmem:[#allocation10_spill] sm:$0xff]  ;;  %v8007_v42 = vld [vmem:[%s12556_s9 + $0xf8] sm:$0xff] }
 0xff1   : > { %9255 = vmatpush3.msra.mxu0 %v5903_v60  ;;  %v1033_v38 = vadd.f32 %v12637_v31, %v937_v46  ;;  %v8005_v46 = vld [vmem:[%s12556_s9 + $0xe8] sm:$0xff] }
 0xff2   : > { %9220 = vmatpush3.xpose.msk.msra.mxu1 %vm2836_vm4, %v11975_v48  ;;  %9256 = vmatprep.subr.mxu0 %v12606_v62  ;;  %v5907_v48 = vrot.slane %v2669_v13, 4  ;;  %v8049_v31 = vld [vmem:[%s12556_s9 + $0x188] sm:$0xff] }
 0xff3   : > { %9257 = vmatpush3.msra.mxu0 %v5902_v43  ;;  %9221 = vmatprep.subr.mxu1 %v12606_v62 }
 0xff4   : > { %9258 = vmatprep.subr.mxu0 %v12606_v62 }
 0xff5   : > { %9259 = vmatpush3.msra.mxu0 %v5901_v58 }
 0xff6   : > { %9222 = vmatpush3.xpose.msk.msra.mxu1 %vm2836_vm4, %v11988_v41  ;;  %9260 = vmatprep.subr.mxu0 %v12606_v62  ;;  %v7991_v41 = vld [vmem:[%s12556_s9 + $0xb8] sm:$0xff] }
 0xff7   : > { %9261 = vmatpush3.msra.mxu0 %v5900_v3  ;;  %9223 = vmatprep.subr.mxu1 %v12606_v62 }
 0xff8   : > { %9262 = vmatprep.subr.mxu0 %v12606_v62 }
 0xff9   : > { %9263 = vmatpush3.msra.mxu0 %v5899_v25 }
 0xffa   : > { %9224 = vmatpush3.xpose.msk.msra.mxu1 %vm2836_vm4, %v12001_v17  ;;  %9265 = vmatmul.mubr.msk.f32.vlgmr.msra.gmra.mxu0 %vm1052_vm1, %v5907_v48  ;;  %v5981_v17 = vrot.slane %v1033_v38, 4  ;;  %v8050_v48 = vld [vmem:[%s12556_s9 + $0x190] sm:$0xff] }
 0xffb   : > { %9267 = vmatprep.subr.mxu0 %v12606_v62  ;;  %9225 = vmatprep.subr.mxu1 %v12606_v62 }
 0xffc   : > { %9268 = vmatpush3.xpose.msk.msra.mxu0 %vm2836_vm4, %v5906_v37  ;;  %9283 = vmatprep.mubr.msk.f32.mxu0 %vm9791_vm5, %v12606_v62  ;;  %v7974_v37 = vld [vmem:[%s12556_s9 + $0x70] sm:$0xff] }
 0xffd   : > { %9269 = vmatprep.subr.mxu0 %v12606_v62 }
 0xffe   : > { %9226 = vmatpush3.xpose.msk.msra.mxu1 %vm2836_vm4, %v12012_v7  ;;  %v7990_v7 = vld [vmem:[%s12556_s9 + $0xb0] sm:$0xff] }
 0xfff   : > { %9227 = vmatprep.subr.mxu1 %v12606_v62 }
0x1000   : > { %9270 = vmatpush3.xpose.msk.msra.mxu0 %vm2836_vm4, %v5905_v16  ;;  %v7972_v16 = vld [vmem:[%s12556_s9 + $0x60] sm:$0xff] }
0x1001   : > { %9271 = vmatprep.subr.mxu0 %v12606_v62 }
0x1002   : > { %9228 = vmatpush3.xpose.msk.msra.mxu1 %vm2836_vm4, %v12027_v24  ;;  %v12147_v24 = vld [vmem:[#allocation2 + $0x10] sm:$0xff] }
0x1003   : > { %9229 = vmatprep.subr.mxu1 %v12606_v62 }
0x1004   : > { %9272 = vmatpush3.xpose.msk.msra.mxu0 %vm2836_vm4, %v5904_v36  ;;  %v7971_v36 = vld [vmem:[%s12556_s9 + $0x58] sm:$0xff] }
0x1005   : > { %9273 = vmatprep.subr.mxu0 %v12606_v62 }
0x1006   : > { %9230 = vmatpush3.xpose.msk.msra.mxu1 %vm2836_vm4, %v12036_v51  ;;  %v8016_v51 = vld [vmem:[%s12556_s9 + $0x100] sm:$0xff] }
0x1008   : > { %9274 = vmatpush3.xpose.msk.msra.mxu0 %vm2836_vm4, %v5903_v60  ;;  %v8054_v60 = vld [vmem:[%s12556_s9 + $0x1b0] sm:$0xff] }
0x1009   : > { %9232 = vmatmul.mubr.msk.f32.vlgmr.msra.gmra.mxu1 %vm2836_vm4, %v1033_v38  ;;  %9275 = vmatprep.subr.mxu0 %v12606_v62  ;;  %v8004_v38 = vld [vmem:[%s12556_s9 + $0xe0] sm:$0xff] }
0x100a   : > { %9290 = vmatprep.mubr.msk.bf16.mxu1 %vm696_vm0, %v9515_v28  ;;  %v8039_v28 = vld [vmem:[%s12556_s9 + $0x178] sm:$0xff] }
0x100c   : > { %9276 = vmatpush3.xpose.msk.msra.mxu0 %vm2836_vm4, %v5902_v43  ;;  %v8053_v43 = vld [vmem:[%s12556_s9 + $0x1a8] sm:$0xff] }
0x100d   : > { %9277 = vmatprep.subr.mxu0 %v12606_v62 }
0x1010   : > { %9278 = vmatpush3.xpose.msk.msra.mxu0 %vm2836_vm4, %v5901_v58  ;;  %v8052_v58 = vld [vmem:[%s12556_s9 + $0x1a0] sm:$0xff] }
0x1011   : > { %9279 = vmatprep.subr.mxu0 %v12606_v62 }
0x1014   : > { %9280 = vmatpush3.xpose.msk.msra.mxu0 %vm2836_vm4, %v5900_v3  ;;  %v8051_v3 = vld [vmem:[%s12556_s9 + $0x198] sm:$0xff] }
0x1015   : > { %9281 = vmatprep.subr.mxu0 %v12606_v62  ;;  %v7989_v62 = vld [vmem:[%s12556_s9 + $0xa8] sm:$0xff] }
0x1018   : > { %9282 = vmatpush3.xpose.msk.msra.mxu0 %vm2836_vm4, %v5899_v25  ;;  %v8006_v25 = vld [vmem:[%s12556_s9 + $0xf0] sm:$0xff] }
0x1019   : > { %9338 = vmatprep.subr.mxu0 %v7991_v41 }
0x101b   : > { %9284 = vmatmul.mubr.msk.f32.vlgmr.msra.gmra.mxu0 %vm2836_vm4, %v5981_v17  ;;  %v8003_v17 = vld [vmem:[%s12556_s9 + $0xd8] sm:$0xff] }
0x101c   : > { %9339 = vmatpush3.msra.mxu0 %v7991_v41  ;;  %9354 = vmatprep.mubr.msk.f32.mxu0 %vm1052_vm1, %v12121_v52  ;;  %v8048_v41 = vld [vmem:[%s12556_s9 + $0x180] sm:$0xff] }
0x101d   : > { %9340 = vmatprep.subr.mxu0 %v7990_v7 }
0x101e   : > { %9341 = vmatpush3.msra.mxu0 %v7990_v7  ;;  %v8087_v7 = vld [vmem:[%s12556_s9 + $0x238] sm:$0xff] }
0x101f   : > { %9342 = vmatprep.subr.mxu0 %v7989_v62 }
0x1020   : > { %9343 = vmatpush3.msra.mxu0 %v7989_v62  ;;  %v8002_v62 = vld [vmem:[%s12556_s9 + $0xd0] sm:$0xff] }
0x1021   : > { %9344 = vmatprep.subr.mxu0 %v7988_v47 }
0x1022   : > { %9345 = vmatpush3.msra.mxu0 %v7988_v47  ;;  %v8086_v47 = vld [vmem:[%s12556_s9 + $0x230] sm:$0xff] }
0x1023   : > { %9346 = vmatprep.subr.mxu0 %v7987_v49 }
0x1024   : > { %9347 = vmatpush3.msra.mxu0 %v7987_v49  ;;  %v8001_v49 = vld [vmem:[%s12556_s9 + $0xc8] sm:$0xff] }
0x1025   : > { %9348 = vmatprep.subr.mxu0 %v7986_v12 }
0x1026   : > { %9349 = vmatpush3.msra.mxu0 %v7986_v12  ;;  %v8085_v12 = vld [vmem:[%s12556_s9 + $0x228] sm:$0xff] }
0x1027   : > { %9350 = vmatprep.subr.mxu0 %v7985_v10 }
0x1028   : > { %9351 = vmatpush3.msra.mxu0 %v7985_v10  ;;  %v8000_v10 = vld [vmem:[%s12556_s9 + $0xc0] sm:$0xff] }
0x1029   : > { %9352 = vmatprep.subr.mxu0 %v7984_v44 }
0x102a   : > { %9353 = vmatpush3.msra.mxu0 %v7984_v44  ;;  %v8084_v44 = vld [vmem:[%s12556_s9 + $0x220] sm:$0xff] }
0x102b   : > { %9355 = vmatmul.mubr.msk.f32.vlgmr.msra.gmra.mxu0 %vm1052_vm1, %v12143_v14  ;;  %9382 = vmatprep.subr.mxu0 %v8023_v61 }
0x102c   : > { %9357 = vmatprep.mubr.msk.f32.mxu0 %vm1052_vm1, %v12147_v24  ;;  %9383 = vmatpush3.msra.mxu0 %v8023_v61  ;;  %v8083_v61 = vld [vmem:[%s12556_s9 + $0x218] sm:$0xff] }
0x102d   : > { %9384 = vmatprep.subr.mxu0 %v8022_v11 }
0x102e   : > { %9385 = vmatpush3.msra.mxu0 %v8022_v11  ;;  %v8038_v11 = vld [vmem:[%s12556_s9 + $0x170] sm:$0xff] }
0x102f   : > { %9386 = vmatprep.subr.mxu0 %v8021_v35 }
0x1030   : > { %9387 = vmatpush3.msra.mxu0 %v8021_v35  ;;  %v8082_v35 = vld [vmem:[%s12556_s9 + $0x210] sm:$0xff] }
0x1031   : > { %9388 = vmatprep.subr.mxu0 %v8020_v21 }
0x1032   : > { %9389 = vmatpush3.msra.mxu0 %v8020_v21  ;;  %v8037_v21 = vld [vmem:[%s12556_s9 + $0x168] sm:$0xff] }
0x1033   : > { %9390 = vmatprep.subr.mxu0 %v8019_v32 }
0x1034   : > { %9391 = vmatpush3.msra.mxu0 %v8019_v32  ;;  %v8081_v32 = vld [vmem:[%s12556_s9 + $0x208] sm:$0xff] }
0x1035   : > { %9392 = vmatprep.subr.mxu0 %v8018_v63 }
0x1036   : > { %9393 = vmatpush3.msra.mxu0 %v8018_v63  ;;  %v8036_v63 = vld [vmem:[%s12556_s9 + $0x160] sm:$0xff] }
0x1037   : > { %9394 = vmatprep.subr.mxu0 %v8017_v1 }
0x1038   : > { %9395 = vmatpush3.msra.mxu0 %v8017_v1  ;;  %v8080_v1 = vld [vmem:[%s12556_s9 + $0x200] sm:$0xff] }
0x1039   : > { %9396 = vmatprep.subr.mxu0 %v8016_v51 }
0x103a   : > { %9397 = vmatpush3.msra.mxu0 %v8016_v51  ;;  %v8035_v51 = vld [vmem:[%s12556_s9 + $0x158] sm:$0xff] }
0x103b   : > { %9426 = vmatprep.subr.mxu0 %v12182_v15 }
0x10a9   : > { %v5549_v33 = vpop.f32.mrf.mxu1 }
0x10aa   : > { %5553 = vst.msk [vmem:[#allocation3 + $0x18] sm:$0xf] %vm2998_vm6, %v5549_v33  ;;  %v8033_v33 = vld [vmem:[%s12556_s9 + $0x148] sm:$0xff] }
0x10ab   : > { %v9214_v27 = vpop.f32.mrf.mxu1 }
0x10ac   : > { %v8032_v27 = vld [vmem:[%s12556_s9 + $0x140] sm:$0xff] }
0x10ba   : > { %v5976_v59 = vpop.f32.mrf.mxu0 }
0x10bb   : > { %5980 = vst.msk [vmem:[#allocation3 + $0x1c] sm:$0xf] %vm2998_vm6, %v5976_v59  ;;  %v8071_v59 = vld [vmem:[%s12556_s9 + $0x1f8] sm:$0xff] }
0x10bc   : > { %v9266_v6 = vpop.f32.mrf.mxu0 }
0x10bd   : > { %v8070_v6 = vld [vmem:[%s12556_s9 + $0x1f0] sm:$0xff] }
0x10c2   : > { %v6086_v4 = vld [vmem:[#allocation3 + $0x18] sm:$0xff] }
0x10c3   : > { %v6088_v23 = vpack.c.bf16 %v6086_v4, %v6085_v0  ;;  %v8069_v0 = vld [vmem:[%s12556_s9 + $0x1e8] sm:$0xff]  ;;  %v8068_v4 = vld [vmem:[%s12556_s9 + $0x1e0] sm:$0xff] }
0x10c5   : > { %9286 = vmatprep.subr.bf16.mxu1 %v6088_v23 }
0x10c6   : > { %9287 = vmatpush3.bf16.msra.mxu1 %v6088_v23  ;;  %v8066_v23 = vld [vmem:[%s12556_s9 + $0x1d0] sm:$0xff] }
0x10c7   : > { %9288 = vmatprep.subr.bf16.mxu1 %v6087_v20 }
0x10c9   : > { %v5647_v39 = vpop.f32.mrf.mxu1 }
0x10ca   : > { %5651 = vst.msk [vmem:[#allocation2 + $0x18] sm:$0xf] %vm3097_vm7, %v5647_v39  ;;  %9289 = vmatpush3.bf16.msra.mxu1 %v6087_v20  ;;  %v6101_v20 = vpop.permute.xlu1 %6100 }
0x10cb   : > { %v9233_v54 = vpop.f32.mrf.mxu1  ;;  %9294 = vmatprep.subr.mxu1 %v6265_v2 }
0x10cd   : > { %9291 = vmatmul.mubr.msk.bf16.vlgmr.msra.gmra.mxu1 %vm696_vm0, %v9516_v5 }
0x10ce   : > { %9295 = vmatpush3.msra.mxu1 %v6265_v2  ;;  %9310 = vmatprep.mubr.msk.f32.mxu1 %vm1052_vm1, %v12121_v52  ;;  %v6096_v2 = vpop.permute.xlu0 %6095  ;;  %v6111_v39 = vpop.permute.xlu1 %6110 }
0x10cf   : > { %9296 = vmatprep.subr.mxu1 %v6264_v9 }
0x10d0   : > { %9297 = vmatpush3.msra.mxu1 %v6264_v9 }
0x10d1   : > { %9298 = vmatprep.subr.mxu1 %v6263_v30 }
0x10d2   : > { %9299 = vmatpush3.msra.mxu1 %v6263_v30  ;;  %v6106_v5 = vpop.permute.xlu0 %6105  ;;  %v6198_v54 = vpop.permute.xlu1 %6197 }
0x10d3   : > { %9300 = vmatprep.subr.mxu1 %v6262_v56 }
0x10d4   : > { %9301 = vmatpush3.msra.mxu1 %v6262_v56 }
0x10d5   : > { %9302 = vmatprep.subr.mxu1 %v6261_v26 }
0x10d6   : > { %9303 = vmatpush3.msra.mxu1 %v6261_v26  ;;  %v6193_v9 = vpop.permute.xlu0 %6192  ;;  %v6208_v30 = vpop.permute.xlu1 %6207 }
0x10d7   : > { %9304 = vmatprep.subr.mxu1 %v6260_v8 }
0x10d8   : > { %9305 = vmatpush3.msra.mxu1 %v6260_v8 }
0x10d9   : > { %9306 = vmatprep.subr.mxu1 %v6259_v18 }
0x10da   : > { %9307 = vmatpush3.msra.mxu1 %v6259_v18  ;;  %v6203_v56 = vpop.permute.xlu0 %6202  ;;  %v6226_v26 = vpop.permute.xlu1 %6225 }
0x10db   : > { %v6074_v13 = vpop.f32.mrf.mxu0  ;;  %9308 = vmatprep.subr.mxu1 %v6258_v55 }
0x10dc   : > { %6078 = vst.msk [vmem:[#allocation2 + $0x1c] sm:$0xf] %vm3097_vm7, %v6074_v13  ;;  %9309 = vmatpush3.msra.mxu1 %v6258_v55 }
0x10dd   : > { %v9285_v22 = vpop.f32.mrf.mxu0  ;;  %9311 = vmatmul.mubr.msk.f32.vlgmr.msra.gmra.mxu1 %vm1052_vm1, %v12143_v14  ;;  %9316 = vmatprep.subr.mxu1 %v7975_v53 }
0x10de   : > { %9313 = vmatprep.mubr.msk.f32.mxu1 %vm1052_vm1, %v12147_v24  ;;  %9317 = vmatpush3.msra.mxu1 %v7975_v53  ;;  %v6221_v8 = vpop.permute.xlu0 %6220  ;;  %v6236_v18 = vpop.permute.xlu1 %6235 }
0x10df   : > { %9318 = vmatprep.subr.mxu1 %v7974_v37 }
0x10e0   : > { %9319 = vmatpush3.msra.mxu1 %v7974_v37 }
0x10e1   : > { %9320 = vmatprep.subr.mxu1 %v7973_v29 }
0x10e2   : > { %9321 = vmatpush3.msra.mxu1 %v7973_v29  ;;  %v6231_v55 = vpop.permute.xlu0 %6230  ;;  %v12427_v53 = vpop.permute.xlu1 %6370 }
0x10e3   : > { %v12235_v19 = vld [vmem:[#allocation2 + $0x18] sm:$0xff]  ;;  %9322 = vmatprep.subr.mxu1 %v7972_v16 }
0x10e4   : > { %9314 = vmatmul.mubr.msk.f32.gmra.mxu1 %vm1052_vm1, %v12235_v19  ;;  %9358 = vmatmul.mubr.msk.f32.gmra.mxu0 %vm1052_vm1, %v12235_v19 }
0x10e5   : > { %9323 = vmatpush3.msra.mxu1 %v7972_v16  ;;  %9332 = vmatprep.mubr.msk.f32.mxu1 %vm1052_vm1, %v12121_v52 }
0x10e6   : > { %9398 = vmatprep.mubr.msk.f32.mxu0 %vm1052_vm1, %v12121_v52  ;;  %9324 = vmatprep.subr.mxu1 %v7971_v36 }
0x10e7   : > { %9325 = vmatpush3.msra.mxu1 %v7971_v36 }
0x10e8   : > { %9326 = vmatprep.subr.mxu1 %v7970_v50  ;;  %9399 = vmatmul.mubr.msk.f32.vlgmr.msra.gmra.mxu0 %vm1052_vm1, %v12143_v14 }
0x10e9   : > { %9427 = vmatpush3.msra.mxu0 %v12182_v15  ;;  %9327 = vmatpush3.msra.mxu1 %v7970_v50  ;;  %v8034_v15 = vld [vmem:[%s12556_s9 + $0x150] sm:$0xff] }
0x10ea   : > { %9401 = vmatprep.mubr.msk.f32.mxu0 %vm1052_vm1, %v12147_v24  ;;  %9428 = vmatprep.subr.mxu0 %v8054_v60 }
0x10eb   : > { %9328 = vmatprep.subr.mxu1 %v7969_v40  ;;  %9429 = vmatpush3.msra.mxu0 %v8054_v60 }
0x10ec   : > { %9329 = vmatpush3.msra.mxu1 %v7969_v40  ;;  %9430 = vmatprep.subr.mxu0 %v8053_v43 }
0x10ed   : > { %9330 = vmatprep.subr.mxu1 %v7968_v45  ;;  %9402 = vmatmul.mubr.msk.f32.gmra.mxu0 %vm1052_vm1, %v12235_v19 }
0x10ee   : > { %9431 = vmatpush3.msra.mxu0 %v8053_v43  ;;  %9331 = vmatpush3.msra.mxu1 %v7968_v45 }
0x10ef   : > { %9432 = vmatprep.subr.mxu0 %v8052_v58  ;;  %9442 = vmatprep.mubr.msk.f32.mxu0 %vm1052_vm1, %v12121_v52 }
0x10f0   : > { %9333 = vmatmul.mubr.msk.f32.vlgmr.msra.gmra.mxu1 %vm1052_vm1, %v12143_v14  ;;  %9360 = vmatprep.subr.mxu1 %v8007_v42 }
0x10f1   : > { %9433 = vmatpush3.msra.mxu0 %v8052_v58  ;;  %9335 = vmatprep.mubr.msk.f32.mxu1 %vm1052_vm1, %v12147_v24 }
0x10f2   : > { %9361 = vmatpush3.msra.mxu1 %v8007_v42  ;;  %9434 = vmatprep.subr.mxu0 %v8051_v3  ;;  %v9773_v42 = vld [vmem:[%s9917_s28 + $0x10] sm:$0xff] }
0x10f3   : > { %9362 = vmatprep.subr.mxu1 %v8006_v25  ;;  %9435 = vmatpush3.msra.mxu0 %v8051_v3 }
0x10f4   : > { %9363 = vmatpush3.msra.mxu1 %v8006_v25  ;;  %9436 = vmatprep.subr.mxu0 %v8050_v48 }
0x10f5   : > { %9336 = vmatmul.mubr.msk.f32.gmra.mxu1 %vm1052_vm1, %v12235_v19  ;;  %9364 = vmatprep.subr.mxu1 %v8005_v46 }
0x10f6   : > { %9437 = vmatpush3.msra.mxu0 %v8050_v48  ;;  %9365 = vmatpush3.msra.mxu1 %v8005_v46 }
0x10f7   : > { %9376 = vmatprep.mubr.msk.f32.mxu1 %vm1052_vm1, %v12121_v52  ;;  %9438 = vmatprep.subr.mxu0 %v8049_v31 }
0x10f8   : > { %9366 = vmatprep.subr.mxu1 %v8004_v38  ;;  %9439 = vmatpush3.msra.mxu0 %v8049_v31 }
0x10f9   : > { %9367 = vmatpush3.msra.mxu1 %v8004_v38  ;;  %9440 = vmatprep.subr.mxu0 %v8048_v41  ;;  %v9774_v38 = vld [vmem:[%s9917_s28] sm:$0xff] }
0x10fa   : > { %9368 = vmatprep.subr.mxu1 %v8003_v17  ;;  %9441 = vmatpush3.msra.mxu0 %v8048_v41 }
0x10fb   : > { %9369 = vmatpush3.msra.mxu1 %v8003_v17  ;;  %9443 = vmatmul.mubr.msk.f32.vlgmr.msra.gmra.mxu0 %vm1052_vm1, %v12143_v14 }
0x10fc   : > { %9470 = vmatprep.subr.mxu0 %v8087_v7  ;;  %9370 = vmatprep.subr.mxu1 %v8002_v62 }
0x10fd   : > { %9445 = vmatprep.mubr.msk.f32.mxu0 %vm1052_vm1, %v12147_v24  ;;  %9471 = vmatpush3.msra.mxu0 %v8087_v7 }
0x10fe   : > { %9371 = vmatpush3.msra.mxu1 %v8002_v62  ;;  %9472 = vmatprep.subr.mxu0 %v8086_v47 }
0x10ff   : > { %9372 = vmatprep.subr.mxu1 %v8001_v49  ;;  %9473 = vmatpush3.msra.mxu0 %v8086_v47 }
0x1100   : > { %9373 = vmatpush3.msra.mxu1 %v8001_v49  ;;  %9446 = vmatmul.mubr.msk.f32.gmra.mxu0 %vm1052_vm1, %v12235_v19 }
0x1101   : > { %9474 = vmatprep.subr.mxu0 %v8085_v12  ;;  %9374 = vmatprep.subr.mxu1 %v8000_v10 }
0x1102   : > { %9475 = vmatpush3.msra.mxu0 %v8085_v12  ;;  %9486 = vmatprep.mubr.msk.f32.mxu0 %vm1052_vm1, %v12121_v52  ;;  %v9775_v12 = vld [vmem:[%s9917_s28 + $0x18] sm:$0xff] }
0x1103   : > { %9375 = vmatpush3.msra.mxu1 %v8000_v10  ;;  %9476 = vmatprep.subr.mxu0 %v8084_v44 }
0x1104   : > { %9377 = vmatmul.mubr.msk.f32.vlgmr.msra.gmra.mxu1 %vm1052_vm1, %v12143_v14  ;;  %9404 = vmatprep.subr.mxu1 %v8039_v28 }
0x1105   : > { %9477 = vmatpush3.msra.mxu0 %v8084_v44  ;;  %9379 = vmatprep.mubr.msk.f32.mxu1 %vm1052_vm1, %v12147_v24 }
0x1106   : > { %9405 = vmatpush3.msra.mxu1 %v8039_v28  ;;  %9478 = vmatprep.subr.mxu0 %v8083_v61 }
0x1107   : > { %9406 = vmatprep.subr.mxu1 %v8038_v11  ;;  %9479 = vmatpush3.msra.mxu0 %v8083_v61 }
0x1108   : > { %9407 = vmatpush3.msra.mxu1 %v8038_v11  ;;  %9480 = vmatprep.subr.mxu0 %v8082_v35 }
0x1109   : > { %9380 = vmatmul.mubr.msk.f32.gmra.mxu1 %vm1052_vm1, %v12235_v19  ;;  %9408 = vmatprep.subr.mxu1 %v8037_v21 }
0x110a   : > { %9481 = vmatpush3.msra.mxu0 %v8082_v35  ;;  %9409 = vmatpush3.msra.mxu1 %v8037_v21  ;;  %v9776_v21 = vld [vmem:[%s9917_s28 + $0x8] sm:$0xff] }
0x110b   : > { %9420 = vmatprep.mubr.msk.f32.mxu1 %vm1052_vm1, %v12121_v52  ;;  %9482 = vmatprep.subr.mxu0 %v8081_v32 }
0x110c   : > { %9410 = vmatprep.subr.mxu1 %v8036_v63  ;;  %9483 = vmatpush3.msra.mxu0 %v8081_v32 }
0x110d   : > { %9411 = vmatpush3.msra.mxu1 %v8036_v63  ;;  %9484 = vmatprep.subr.mxu0 %v8080_v1 }
0x110e   : > { %9412 = vmatprep.subr.mxu1 %v8035_v51  ;;  %9485 = vmatpush3.msra.mxu0 %v8080_v1 }
0x110f   : > { %9413 = vmatpush3.msra.mxu1 %v8035_v51  ;;  %9487 = vmatmul.mubr.msk.f32.vlgmr.msra.gmra.mxu0 %vm1052_vm1, %v12143_v14 }
0x1110   : > { %9414 = vmatprep.subr.mxu1 %v8034_v15  ;;  %9489 = vmatprep.mubr.msk.f32.mxu0 %vm1052_vm1, %v12147_v24 }
0x1111   : > { %9415 = vmatpush3.msra.mxu1 %v8034_v15 }
0x1112   : > { %9416 = vmatprep.subr.mxu1 %v8033_v33 }
0x1113   : > { %9417 = vmatpush3.msra.mxu1 %v8033_v33  ;;  %9490 = vmatmul.mubr.msk.f32.gmra.mxu0 %vm1052_vm1, %v12235_v19 }
0x1114   : > { %9418 = vmatprep.subr.mxu1 %v8032_v27 }
0x1115   : > { %9419 = vmatpush3.msra.mxu1 %v8032_v27 }
0x1116   : > { %9421 = vmatmul.mubr.msk.f32.vlgmr.msra.gmra.mxu1 %vm1052_vm1, %v12143_v14  ;;  %9448 = vmatprep.subr.mxu1 %v8071_v59 }
0x1117   : > { %9423 = vmatprep.mubr.msk.f32.mxu1 %vm1052_vm1, %v12147_v24  ;;  %9449 = vmatpush3.msra.mxu1 %v8071_v59 }
0x1118   : > { %9450 = vmatprep.subr.mxu1 %v8070_v6 }
0x1119   : > { %9451 = vmatpush3.msra.mxu1 %v8070_v6 }
0x111a   : > { %9424 = vmatmul.mubr.msk.f32.gmra.mxu1 %vm1052_vm1, %v12235_v19  ;;  %9452 = vmatprep.subr.mxu1 %v8069_v0 }
0x111b   : > { %9453 = vmatpush3.msra.mxu1 %v8069_v0  ;;  %9464 = vmatprep.mubr.msk.f32.mxu1 %vm1052_vm1, %v12121_v52  ;;  %v8064_v52 = vld [vmem:[%s12556_s9 + $0x1c0] sm:$0xff] }
0x111c   : > { %9454 = vmatprep.subr.mxu1 %v8068_v4 }
0x111d   : > { %9455 = vmatpush3.msra.mxu1 %v8068_v4 }
0x111e   : > { %9456 = vmatprep.subr.mxu1 %v8067_v34 }
0x111f   : > { %9457 = vmatpush3.msra.mxu1 %v8067_v34 }
0x1120   : > { %9458 = vmatprep.subr.mxu1 %v8066_v23 }
0x1121   : > { %9459 = vmatpush3.msra.mxu1 %v8066_v23 }
0x1122   : > { %9460 = vmatprep.subr.mxu1 %v8065_v57 }
0x1123   : > { %9461 = vmatpush3.msra.mxu1 %v8065_v57 }
0x1124   : > { %9462 = vmatprep.subr.mxu1 %v8064_v52 }
0x1125   : > { %9463 = vmatpush3.msra.mxu1 %v8064_v52 }
0x1126   : > { %9465 = vmatmul.mubr.msk.f32.vlgmr.msra.gmra.mxu1 %vm1052_vm1, %v12143_v14  ;;  %v12429_v14 = vpop.permute.xlu0 %6365 }
0x1127   : > { %9467 = vmatprep.mubr.msk.f32.mxu1 %vm1052_vm1, %v12147_v24  ;;  %v12431_v24 = vpop.permute.xlu1 %6380 }
0x112a   : > { %9468 = vmatmul.mubr.msk.f32.gmra.mxu1 %vm1052_vm1, %v12235_v19  ;;  %v12433_v13 = vpop.permute.xlu0 %6375 }
0x112b   : > { %v12435_v37 = vpop.permute.xlu1 %6496 }
0x112e   : > { %v12437_v22 = vpop.permute.xlu0 %6491 }
0x112f   : > { %v12439_v29 = vpop.permute.xlu1 %6506 }
0x1132   : > { %v12441_v16 = vpop.permute.xlu0 %6501 }
0x1133   : > { %v12443_v60 = vpop.permute.xlu1 %6622 }
0x1136   : > { %v12445_v58 = vpop.permute.xlu0 %6617 }
0x1137   : > { %v12449_v62 = vpop.permute.xlu1 %6632 }
0x113a   : > { %v12456_v28 = vpop.permute.xlu0 %6627 }
0x113b   : > { %v6749_v15 = vpop.permute.xlu1 %6748 }
0x113e   : > { %v12461_v59 = vpop.permute.xlu0 %6743 }
0x113f   : > { %v12465_v0 = vpop.permute.xlu1 %6758 }
0x1142   : > { %v12467_v4 = vpop.permute.xlu0 %6753 }
0x1143   : > { %v12469_v34 = vpop.permute.xlu1 %6874 }
0x1146   : > { %v12471_v23 = vpop.permute.xlu0 %6869 }
0x1147   : > { %v12473_v57 = vpop.permute.xlu1 %6884 }
0x118d   : > { %v9292_v19 = vpop.f32.mrf.mxu1 }
0x118e   : > { %v6172_v36 = vadd.f32 %v9292_v19, %v6106_v5 }
0x118f   : > { %v6163_v50 = vpop.f32.mrf.mxu1 }
0x1190   : > { %v6180_v40 = vmax.f32 %v6172_v36, 0.0  ;;  %v6164_v43 = vadd.f32 %v6163_v50, %v6096_v2 }
0x1191   : > { %v9293_v45 = vpop.f32.mrf.mxu1 }
0x1192   : > { %v6184_v3 = vadd.f32 %v9773_v42, %v6180_v40  ;;  %v6178_v25 = vmax.f32 %v6164_v43, 0.0  ;;  %v6175_v48 = vadd.f32 %v9293_v45, %v6111_v39  ;;  %v12477_v39 = vpop.permute.xlu1 %7000 }
0x1193   : > { %v6166_v46 = vpop.f32.mrf.mxu1 }
0x1194   : > { %v6212_v31 = vmul.f32 %v6203_v56, %v6184_v3  ;;  %v6182_v41 = vadd.f32 %v9774_v38, %v6178_v25  ;;  %v6181_v17 = vmax.f32 %v6175_v48, 0.0  ;;  %v6167_v7 = vadd.f32 %v6166_v46, %v6101_v20  ;;  %v12475_v20 = vpop.permute.xlu0 %6879 }
0x1196   : > { %v6240_v47 = vadd.f32 %v6231_v55, %v6212_v31  ;;  %v6210_v49 = vmul.f32 %v6193_v9, %v6182_v41  ;;  %v6185_v10 = vadd.f32 %v9775_v12, %v6181_v17  ;;  %v6179_v44 = vmax.f32 %v6167_v7, 0.0 }
0x1198   : > { %v6244_v61 = vmax.f32 %v6240_v47, 0.0  ;;  %v6238_v11 = vadd.f32 %v6221_v8, %v6210_v49  ;;  %v6213_v35 = vmul.f32 %v6208_v30, %v6185_v10  ;;  %v6183_v32 = vadd.f32 %v9776_v21, %v6179_v44  ;;  %v12479_v9 = vpop.permute.xlu0 %6995 }
0x119a   : > { %6248 = vst.msk [vmem:[%s608_s2 + $0x10] sm:$0xff] %vm2836_vm4, %v6244_v61  ;;  %v6242_v63 = vmax.f32 %v6238_v11, 0.0  ;;  %v6241_v1 = vadd.f32 %v6236_v18, %v6213_v35  ;;  %v6211_v51 = vmul.f32 %v6198_v54, %v6183_v32  ;;  %v9356_v54 = vpop.f32.mrf.mxu0 }
0x119c   : > { %6246 = vst.msk [vmem:[%s608_s2] sm:$0xff] %vm2836_vm4, %v6242_v63  ;;  %v6245_v33 = vmax.f32 %v6241_v1, 0.0  ;;  %v6239_v27 = vadd.f32 %v6226_v26, %v6211_v51  ;;  %v6596_v56 = vpop.f32.mrf.mxu0  ;;  %v12481_v26 = vpop.permute.xlu1 %7010 }
0x119d   : > { %v9312_v52 = vpop.f32.mrf.mxu1  ;;  %v12483_v55 = vpop.permute.xlu0 %7005 }
0x119e   : > { %6249 = vst.msk [vmem:[%s608_s2 + $0x18] sm:$0xff] %vm2836_vm4, %v6245_v33  ;;  %v6243_v6 = vmax.f32 %v6239_v27, 0.0  ;;  %v6384_v11 = vmul.f32 %v9312_v52, %v12427_v53 }
0x119f   : > { %v6344_v2 = vpop.f32.mrf.mxu1 }
0x11a0   : > { %6247 = vst.msk [vmem:[%s608_s2 + $0x8] sm:$0xff] %vm2836_vm4, %v6243_v6  ;;  %v12485_v50 = vpop.permute.xlu1 %7126  ;;  %v6383_v63 = vmul.f32 %v12429_v14, %v6344_v2  ;;  %v6636_v6 = vmul.f32 %v9356_v54, %v12443_v60 }
0x11a1   : > { %v12487_v40 = vpop.permute.xlu0 %7121 }
0x11a4   : > { %v9315_v5 = vpop.f32.mrf.mxu1  ;;  %v9359_v18 = vpop.f32.mrf.mxu0 }
0x11a5   : > { %v12489_v42 = vpop.permute.xlu1 %7136  ;;  %v12491_v48 = vpop.permute.xlu0 %7131 }
0x11a6   : > { %v6354_v30 = vpop.f32.mrf.mxu1  ;;  %v6606_v36 = vpop.f32.mrf.mxu0 }
0x11a8   : > { %v9400_v45 = vpop.f32.mrf.mxu0 }
0x11a9   : > { %v12493_v38 = vpop.permute.xlu1 %7252  ;;  %v12495_v17 = vpop.permute.xlu0 %7247 }
0x11aa   : > { %v6848_v25 = vpop.f32.mrf.mxu0 }
0x11ad   : > { %v9403_v31 = vpop.f32.mrf.mxu0  ;;  %v12497_v12 = vpop.permute.xlu1 %7262 }
0x11ae   : > { %12638 = vst [vmem:[#allocation31_spill] sm:$0xff] %v12497_v12  ;;  %v12500_v44 = vpop.permute.xlu0 %7257 }
0x11af   : > { %v6858_v7 = vpop.f32.mrf.mxu0  ;;  %12639 = vst [vmem:[#allocation5_spill] sm:$0xff] %v12500_v44 }
0x11b0   : > { %v9334_v8 = vpop.f32.mrf.mxu1 }
0x11b1   : > { %v6510_v10 = vmul.f32 %v9334_v8, %v12435_v37  ;;  %v7379_v33 = vpop.permute.xlu1 %7378  ;;  %v6386_v37 = vmul.f32 %v9315_v5, %v12431_v24 }
0x11b2   : > { %v6470_v19 = vpop.f32.mrf.mxu1  ;;  %v7374_v52 = vpop.permute.xlu0 %7373 }
0x11b3   : > { %v6509_v35 = vmul.f32 %v12437_v22, %v6470_v19  ;;  %v6514_v1 = vadd.f32 %v6510_v10, %v6384_v11  ;;  %v6385_v22 = vmul.f32 %v12433_v13, %v6354_v30  ;;  %v6635_v19 = vmul.f32 %v12445_v58, %v6596_v56 }
0x11b4   : > { %v6888_v58 = vmul.f32 %v9400_v45, %v12469_v34 }
0x11b5   : > { %v9337_v43 = vpop.f32.mrf.mxu1  ;;  %v6513_v8 = vadd.f32 %v6509_v35, %v6383_v63  ;;  %v6640_v2 = vadd.f32 %v6636_v6, %v6514_v1 }
0x11b6   : > { %v6512_v51 = vmul.f32 %v9337_v43, %v12439_v29 }
0x11b7   : > { %v6480_v3 = vpop.f32.mrf.mxu1  ;;  %v6639_v54 = vadd.f32 %v6635_v19, %v6513_v8 }
0x11b8   : > { %v6511_v27 = vmul.f32 %v12441_v16, %v6480_v3  ;;  %v6516_v14 = vadd.f32 %v6512_v51, %v6386_v37  ;;  %v6638_v16 = vmul.f32 %v9359_v18, %v12449_v62  ;;  %v6887_v18 = vmul.f32 %v12471_v23, %v6848_v25 }
0x11ba   : > { %v6515_v43 = vadd.f32 %v6511_v27, %v6385_v22  ;;  %v6642_v56 = vadd.f32 %v6638_v16, %v6516_v14 }
0x11bb   : > { %v9444_v49 = vpop.f32.mrf.mxu0 }
0x11bc   : > { %v7140_v23 = vmul.f32 %v9444_v49, %v12485_v50 }
0x11bd   : > { %v7100_v21 = vpop.f32.mrf.mxu0 }
0x11be   : > { %v7139_v27 = vmul.f32 %v12487_v40, %v7100_v21 }
0x11c0   : > { %v9447_v44 = vpop.f32.mrf.mxu0 }
0x11c2   : > { %v7110_v3 = vpop.f32.mrf.mxu0 }
0x11c3   : > { %v7141_v22 = vmul.f32 %v12491_v48, %v7110_v3 }
0x11c4   : > { %v9378_v46 = vpop.f32.mrf.mxu1 }
0x11c5   : > { %v6762_v12 = vmul.f32 %v9378_v46, %v6749_v15  ;;  %v7389_v15 = vpop.permute.xlu1 %7388  ;;  %v6637_v46 = vmul.f32 %v12456_v28, %v6606_v36  ;;  %v6890_v28 = vmul.f32 %v9403_v31, %v12473_v57 }
0x11c6   : > { %v6722_v41 = vpop.f32.mrf.mxu1 }
0x11c7   : > { %v6761_v29 = vmul.f32 %v12461_v59, %v6722_v41  ;;  %v6766_v60 = vadd.f32 %v6762_v12, %v6640_v2  ;;  %v7384_v41 = vpop.permute.xlu0 %7383  ;;  %v6641_v62 = vadd.f32 %v6637_v46, %v6515_v43 }
0x11c9   : > { %v9381_v47 = vpop.f32.mrf.mxu1  ;;  %v6765_v30 = vadd.f32 %v6761_v29, %v6639_v54  ;;  %v6892_v11 = vadd.f32 %v6888_v58, %v6766_v60 }
0x11ca   : > { %v6764_v24 = vmul.f32 %v9381_v47, %v12465_v0 }
0x11cb   : > { %v6732_v61 = vpop.f32.mrf.mxu1  ;;  %v6891_v34 = vadd.f32 %v6887_v18, %v6765_v30  ;;  %v7414_v1 = vpop.permute.xlu0 %7413 }
0x11cc   : > { %v6763_v13 = vmul.f32 %v12467_v4, %v6732_v61  ;;  %v6768_v12 = vadd.f32 %v6764_v24, %v6642_v56  ;;  %v7419_v61 = vpop.permute.xlu1 %7418  ;;  %v12641_v24 = vld [vmem:[#allocation5_spill] sm:$0xff] }
0x11ce   : > { %v6767_v35 = vadd.f32 %v6763_v13, %v6641_v62  ;;  %v6894_v63 = vadd.f32 %v6890_v28, %v6768_v12 }
0x11cf   : > { %v9488_v10 = vpop.f32.mrf.mxu0 }
0x11d0   : > { %v7429_v49 = vpop.permute.xlu1 %7428 }
0x11d1   : > { %v7352_v4 = vpop.f32.mrf.mxu0 }
0x11d2   : > { %v7391_v19 = vmul.f32 %v7374_v52, %v7352_v4  ;;  %v9777_v52 = vld [vmem:[%s9909_s23 + $0x8] sm:$0xff] }
0x11d3   : > { %v9491_v57 = vpop.f32.mrf.mxu0 }
0x11d4   : > { %v7447_v30 = vpop.permute.xlu1 %7446 }
0x11d5   : > { %v7362_v21 = vpop.f32.mrf.mxu0 }
0x11d6   : > { %v9422_v32 = vpop.f32.mrf.mxu1  ;;  %v7393_v48 = vmul.f32 %v7384_v41, %v7362_v21 }
0x11d7   : > { %v7014_v59 = vmul.f32 %v9422_v32, %v12477_v39  ;;  %v6889_v39 = vmul.f32 %v12475_v20, %v6858_v7  ;;  %v7392_v7 = vmul.f32 %v9488_v10, %v7379_v33  ;;  %v9778_v10 = vld [vmem:[%s9909_s23] sm:$0xff] }
0x11d8   : > { %v6974_v53 = vpop.f32.mrf.mxu1 }
0x11d9   : > { %v7013_v0 = vmul.f32 %v12479_v9, %v6974_v53  ;;  %v7018_v36 = vadd.f32 %v7014_v59, %v6892_v11  ;;  %v6893_v9 = vadd.f32 %v6889_v39, %v6767_v35 }
0x11da   : > { %v9425_v5 = vpop.f32.mrf.mxu1 }
0x11db   : > { %v7016_v45 = vmul.f32 %v9425_v5, %v12481_v26  ;;  %v7017_v25 = vadd.f32 %v7013_v0, %v6891_v34  ;;  %v7144_v6 = vadd.f32 %v7140_v23, %v7018_v36  ;;  %v7142_v26 = vmul.f32 %v9447_v44, %v12489_v42  ;;  %v7424_v42 = vpop.permute.xlu0 %7423  ;;  %v9779_v0 = vld [vmem:[%s9909_s23 + $0x18] sm:$0xff]  ;;  %v9780_v36 = vld [vmem:[%s9909_s23 + $0x10] sm:$0xff] }
0x11dc   : > { %v6984_v47 = vpop.f32.mrf.mxu1  ;;  %v7394_v44 = vmul.f32 %v9491_v57, %v7389_v15 }
0x11dd   : > { %v7015_v32 = vmul.f32 %v12483_v55, %v6984_v47  ;;  %v7020_v31 = vadd.f32 %v7016_v45, %v6894_v63  ;;  %v7143_v53 = vadd.f32 %v7139_v27, %v7017_v25  ;;  %v7457_v45 = vpop.permute.xlu1 %7456 }
0x11df   : > { %v7019_v8 = vadd.f32 %v7015_v32, %v6893_v9  ;;  %v7146_v29 = vadd.f32 %v7142_v26, %v7020_v31  ;;  %v7442_v18 = vpop.permute.xlu0 %7441 }
0x11e1   : > { %v7145_v33 = vadd.f32 %v7141_v22, %v7019_v8 }
0x11e3   : > { %v7452_v23 = vpop.permute.xlu0 %7451 }
0x11e6   : > { %v9466_v51 = vpop.f32.mrf.mxu1 }
0x11e7   : > { %v7266_v37 = vmul.f32 %v9466_v51, %v12493_v38  ;;  %v12640_v38 = vld [vmem:[#allocation31_spill] sm:$0xff] }
0x11e8   : > { %v7226_v20 = vpop.f32.mrf.mxu1 }
0x11e9   : > { %v7270_v55 = vadd.f32 %v7266_v37, %v7144_v6  ;;  %v7265_v50 = vmul.f32 %v12495_v17, %v7226_v20 }
0x11ea   : > { %v9469_v40 = vpop.f32.mrf.mxu1 }
0x11eb   : > { %v7396_v14 = vadd.f32 %v7392_v7, %v7270_v55  ;;  %v7269_v2 = vadd.f32 %v7265_v50, %v7143_v53  ;;  %v7268_v43 = vmul.f32 %v9469_v40, %v12640_v38 }
0x11ec   : > { %v7236_v16 = vpop.f32.mrf.mxu1 }
0x11ed   : > { %v7400_v60 = vmax.f32 %v7396_v14, 0.0  ;;  %v7395_v54 = vadd.f32 %v7391_v19, %v7269_v2  ;;  %v7272_v17 = vadd.f32 %v7268_v43, %v7146_v29  ;;  %v7267_v5 = vmul.f32 %v12641_v24, %v7236_v16 }
0x11ef   : > { %v7404_v3 = vadd.f32 %v9777_v52, %v7400_v60  ;;  %v7399_v46 = vmax.f32 %v7395_v54, 0.0  ;;  %v7398_v13 = vadd.f32 %v7394_v44, %v7272_v17  ;;  %v7271_v58 = vadd.f32 %v7267_v5, %v7145_v33 }
0x11f1   : > { %v7432_v56 = vmul.f32 %v7419_v61, %v7404_v3  ;;  %v7403_v15 = vadd.f32 %v9778_v10, %v7399_v46  ;;  %v7402_v59 = vmax.f32 %v7398_v13, 0.0  ;;  %v7397_v62 = vadd.f32 %v7393_v48, %v7271_v58 }
0x11f3   : > { %v7460_v12 = vadd.f32 %v7447_v30, %v7432_v56  ;;  %v7431_v11 = vmul.f32 %v7414_v1, %v7403_v15  ;;  %v7406_v47 = vadd.f32 %v9779_v0, %v7402_v59  ;;  %v7401_v35 = vmax.f32 %v7397_v62, 0.0 }
0x11f5   : > { %v7464_v41 = vmax.f32 %v7460_v12, 0.0  ;;  %v7459_v28 = vadd.f32 %v7442_v18, %v7431_v11  ;;  %v7434_v4 = vmul.f32 %v7429_v49, %v7406_v47  ;;  %v7405_v34 = vadd.f32 %v9780_v36, %v7401_v35 }
0x11f7   : > { %7468 = vst.msk [vmem:[%s603_s25 + $0x8] sm:$0xff] %vm1052_vm1, %v7464_v41  ;;  %v7463_v61 = vmax.f32 %v7459_v28, 0.0  ;;  %v7462_v39 = vadd.f32 %v7457_v45, %v7434_v4  ;;  %v7433_v32 = vmul.f32 %v7424_v42, %v7405_v34 }
0x11f9   : > { %7467 = vst.msk [vmem:[%s603_s25] sm:$0xff] %vm1052_vm1, %v7463_v61  ;;  %v7466_v25 = vmax.f32 %v7462_v39, 0.0  ;;  %v7461_v63 = vadd.f32 %v7452_v23, %v7433_v32 }
0x11fb   : > { %7470 = vst.msk [vmem:[%s603_s25 + $0x18] sm:$0xff] %vm1052_vm1, %v7466_v25  ;;  %v7465_v1 = vmax.f32 %v7461_v63, 0.0 }
0x11fd   : > { %7469 = vst.msk [vmem:[%s603_s25 + $0x10] sm:$0xff] %vm1052_vm1, %v7465_v1 }
0x11fe PF: > { %s29_s27 = sadd.s32 1, %s9787_s27  }
0x11ff   : > { %p26_p4 = scmp.ge.s32.totalorder %s29_s27, 4  }
0x1201   :  { %28 = sbr.rel (!%p26_p4) target bundleno = 4 (0x4), region = 157 }

</bundles_post_ra>
